<compile_context>
chip_gen: v7x
topology: tpu7x:2x2x1
jax: 0.10.0
libtpu: 0.0.40
codegen_flags: <defaults>
</compile_context>

<pallas_src>
import functools

import numpy as np
import jax
import jax.numpy as jnp
from jax.experimental import pallas as pl
from jax.experimental.pallas import tpu as pltpu


_FAR = 1.0e6  # pad coordinate: RBF weight exp(-(x - _FAR)^2 * inv) underflows to 0.


def _round_up(x, m):
    return ((x + m - 1) // m) * m


def _cdiv(a, b):
    return -(-a // b)


def _tpu_tuning():
    """Best-effort per-generation tuning: (bf16_rbf_ok, m_tile_cap, vmem_limit_bytes)."""
    try:
        kind = jax.devices()[0].device_kind.lower()
    except Exception:
        kind = ""
    if "v5" in kind:                       # v5e/v5p: 128 MiB VMEM, no bf16 EUP/VPU
        return False, 1024, 64 * 1024 * 1024
    if "v6" in kind:                       # v6e: 128 MiB VMEM, bf16 EUP/VPU
        return True, 1024, 64 * 1024 * 1024
    if "v7" in kind or "7x" in kind:       # v7x: 64 MiB VMEM, bf16 EUP/VPU
        return True, 512, 32 * 1024 * 1024
    return False, 512, 32 * 1024 * 1024    # unknown: conservative f32 path


# ----------------------------- fused Pallas kernel -----------------------------

def _fused_convcnp_kernel(
        x_ref, dens_ref, enc_lhs_ref,
        grow_ref, gcol_ref, xo_ref,
        inv_enc_ref, w_enc0_ref, b_enc_ref,
        w1_ref, b1_ref, w2_ref, b2_ref,
        inv_m_ref, inv_s_ref, wm_ref, ws_ref, bm_ref, bs_ref,
        mean_ref, sigma_ref,
        *, compute_dtype):
    # grid = (B, m_tiles); axis 1 (m) is the reduction axis for the heads.
    f32 = jnp.float32
    fast = compute_dtype != f32
    j = pl.program_id(1)

    @pl.when(j == 0)
    def _init():
        # Output blocks stay VMEM-resident across j (out index map is (b,0,0)),
        # so they double as the reduction accumulators.
        mean_ref[...] = jnp.zeros_like(mean_ref)
        sigma_ref[...] = jnp.zeros_like(sigma_ref)

    def cexp(a):
        # RBF exponentials on the EUP; bf16 on v6e / v7x, f32 elsewhere.
        return jnp.exp(a.astype(compute_dtype))

    # ---------------- encoder (ConvDeepSet) on this m tile ----------------
    xc = x_ref[0]                                    # (n_pad, 1) context locations
    g_row = grow_ref[0]                              # (1, Mt)   grid tile, lane dense
    neg_dctx = -((xc - g_row) ** 2)                  # (n_pad, Mt), hoisted once
    inv_enc = inv_enc_ref[...]                       # (C_enc, 1, 1)

    n_pad, mt = neg_dctx.shape
    c_enc = inv_enc.shape[0]

    # density channel: one (1, n_pad) @ (n_pad, Mt) matmul.
    wt0 = cexp(neg_dctx * inv_enc[0])
    density = jnp.dot(dens_ref[0].astype(compute_dtype), wt0,
                      preferred_element_type=f32)                    # (1, Mt)
    if fast:
        recip = pl.reciprocal(density + 1e-8, approx=True)           # EUP slot
    else:
        recip = 1.0 / (density + 1e-8)                               # exact path

    # remaining channels as ONE block-stacked matmul:
    #   S = sum_{c>=1} w_enc[:, c] (x) ( y[c, :] @ exp(-d_ctx * inv_enc[c]) )
    # LHS (rho_in, (C_enc-1)*n_pad) is precomputed in the wrapper.
    rhs_enc = cexp(neg_dctx[None, :, :] * inv_enc[1:]).reshape(
        (c_enc - 1) * n_pad, mt)                                     # ((C-1)*n, Mt)
    s_enc = jnp.dot(enc_lhs_ref[0].astype(compute_dtype), rhs_enc,
                    preferred_element_type=f32)                      # (rho_in, Mt)
    pre = w_enc0_ref[...] * density + s_enc * recip + b_enc_ref[...]
    h = jax.nn.sigmoid(pre)                                          # (rho_in, Mt)

    # ---------------- rho stand-in: 2 pointwise Conv1d + ReLU ----------------
    z = jnp.maximum(
        jnp.dot(w1_ref[...], h, preferred_element_type=f32) + b1_ref[...], 0.0)
    h2 = jnp.dot(w2_ref[...], z, preferred_element_type=f32) + b2_ref[...]   # (C2, Mt)

    # -------- fused mean/sigma heads: one block-stacked matmul per head --------
    g_col = gcol_ref[0]                              # (Mt, 1) pre-transposed grid
    neg_dout = -((g_col - xo_ref[0]) ** 2)           # (Mt, m_out_pad), shared
    c2 = h2.shape[0]
    m_out_pad = neg_dout.shape[1]

    def flat_rows(a):
        # (C2, Mt) -> (1, C2*Mt) via static row slices + lane concatenation
        # (avoids an unsupported/slow sublane->lane reshape).
        return jnp.concatenate([a[c:c + 1, :] for c in range(c2)], axis=1)

    lhs_m = flat_rows(wm_ref[...] * h2).astype(compute_dtype)        # (1, C2*Mt)
    lhs_s = flat_rows(ws_ref[...] * h2).astype(compute_dtype)
    rhs_m = cexp(neg_dout[None, :, :] * inv_m_ref[...]).reshape(c2 * mt, m_out_pad)
    rhs_s = cexp(neg_dout[None, :, :] * inv_s_ref[...]).reshape(c2 * mt, m_out_pad)

    mean_ref[0] = mean_ref[0] + jnp.dot(lhs_m, rhs_m, preferred_element_type=f32)
    sigma_ref[0] = sigma_ref[0] + jnp.dot(lhs_s, rhs_s, preferred_element_type=f32)

    @pl.when(j == pl.num_programs(1) - 1)
    def _finalize():
        mean_ref[0] = mean_ref[0] + bm_ref[0]
        s = sigma_ref[0] + bs_ref[0]
        # numerically-stable softplus fused into the kernel.
        sigma_ref[0] = jnp.maximum(s, 0.0) + jnp.log1p(jnp.exp(-jnp.abs(s)))


# ----------------------------- wrapper -----------------------------

def convcnp_pallas_forward(params, x, y, x_out, x_grid, m_tile=None,
                           use_bf16_exp=None):
    x = x.astype(jnp.float32)
    y = y.astype(jnp.float32)
    x_out = x_out.astype(jnp.float32)
    x_grid = x_grid.astype(jnp.float32)

    B, n, _ = x.shape
    m = int(x_grid.shape[0])
    m_out = x_out.shape[1]
    C_enc = y.shape[-1] + 1
    rho_in = params["w_enc"].shape[0]
    hid = params["w1"].shape[0]
    C2 = params["w2"].shape[0]

    bf16_ok, m_tile_cap, vmem_limit = _tpu_tuning()
    if use_bf16_exp is None:
        use_bf16_exp = bf16_ok
    compute_dtype = jnp.bfloat16 if use_bf16_exp else jnp.float32

    # padding: far-away pad coordinates contribute exactly 0 RBF weight,
    # pad context rows additionally carry zero y / zero density mask.
    n_pad = _round_up(n, 16)          # 16 keeps bf16 (16,128) sublane tiling aligned
    m_aligned = _round_up(m, 128)
    if m_tile is None:
        num_tiles = _cdiv(m_aligned, m_tile_cap)
        m_tile = _round_up(_cdiv(m_aligned, num_tiles), 128)
    else:
        assert m_tile % 128 == 0, "m_tile must be a multiple of 128 (lane tiling)"
    m_pad = _round_up(m_aligned, m_tile)
    m_out_pad = _round_up(m_out, 128)

    x_p = jnp.pad(x, ((0, 0), (0, n_pad - n), (0, 0)), constant_values=_FAR)
    dens = jnp.pad(jnp.ones((B, 1, n), jnp.float32),
                   ((0, 0), (0, 0), (0, n_pad - n)))                 # (B, 1, n_pad)
    y_cf = jnp.transpose(jnp.pad(y, ((0, 0), (0, n_pad - n), (0, 0))),
                         (0, 2, 1))                                  # (B, C_in, n_pad)

    w_enc = params["w_enc"].astype(jnp.float32)                      # (rho_in, C_enc)
    # precomputed block-stacked encoder LHS, flattened over (channel, context pt)
    enc_lhs = (w_enc[:, 1:][None, :, :, None] * y_cf[:, None, :, :]).reshape(
        B, rho_in, (C_enc - 1) * n_pad)

    grid_flat = jnp.pad(x_grid, (0, m_pad - m), constant_values=_FAR)
    grid_row = grid_flat.reshape(1, 1, m_pad)                        # lane-dense view
    grid_col = grid_flat.reshape(1, m_pad, 1)                        # pre-transposed view
    xout_row = jnp.pad(jnp.transpose(x_out, (0, 2, 1)),
                       ((0, 0), (0, 0), (0, m_out_pad - m_out)),
                       constant_values=_FAR)                         # (B, 1, m_out_pad)

    inv_enc = (0.5 / jnp.exp(params["sigma_enc"]) ** 2).astype(jnp.float32)
    inv_m = (0.5 / jnp.exp(params["sigma_mean"]) ** 2).astype(jnp.float32)
    inv_s = (0.5 / jnp.exp(params["sigma_sigma"]) ** 2).astype(jnp.float32)
    inv_enc = inv_enc.reshape(C_enc, 1, 1)
    inv_m = inv_m.reshape(C2, 1, 1)
    inv_s = inv_s.reshape(C2, 1, 1)
    w_enc0 = w_enc[:, 0:1]                                           # (rho_in, 1)
    w_mean = params["w_mean"].reshape(C2, 1).astype(jnp.float32)
    w_sig = params["w_sigma"].reshape(C2, 1).astype(jnp.float32)
    b_mean = params["b_mean"].reshape(1).astype(jnp.float32)
    b_sig = params["b_sigma"].reshape(1).astype(jnp.float32)

    def smem():
        return pl.BlockSpec(memory_space=pltpu.MemorySpace.SMEM)

    def w2d(r, c):
        return pl.BlockSpec((r, c), lambda b, j: (0, 0))

    def w3d(a, bb, c):
        return pl.BlockSpec((a, bb, c), lambda b, j: (0, 0, 0))

    grid = (B, m_pad // m_tile)
    out_shape = (jax.ShapeDtypeStruct((B, 1, m_out_pad), jnp.float32),
                 jax.ShapeDtypeStruct((B, 1, m_out_pad), jnp.float32))

    kernel = functools.partial(_fused_convcnp_kernel, compute_dtype=compute_dtype)

    mean_p, sig_p = pl.pallas_call(
        kernel,
        out_shape=out_shape,
        grid_spec=pltpu.PrefetchScalarGridSpec(
            num_scalar_prefetch=0,
            grid=grid,
            in_specs=[
                pl.BlockSpec((1, n_pad, 1), lambda b, j: (b, 0, 0)),       # x (context)
                pl.BlockSpec((1, 1, n_pad), lambda b, j: (b, 0, 0)),       # density mask
                pl.BlockSpec((1, rho_in, (C_enc - 1) * n_pad),
                             lambda b, j: (b, 0, 0)),                      # enc block LHS
                pl.BlockSpec((1, 1, m_tile), lambda b, j: (0, 0, j)),      # grid tile (row)
                pl.BlockSpec((1, m_tile, 1), lambda b, j: (0, j, 0)),      # grid tile (col)
                pl.BlockSpec((1, 1, m_out_pad), lambda b, j: (b, 0, 0)),   # x_out
                w3d(C_enc, 1, 1),                                          # inv_enc
                w2d(rho_in, 1), w2d(rho_in, 1),                            # w_enc[:,0], b_enc
                w2d(hid, rho_in), w2d(hid, 1),                             # rho conv1
                w2d(C2, hid), w2d(C2, 1),                                  # rho conv2
                w3d(C2, 1, 1), w3d(C2, 1, 1),                              # inv_m, inv_s
                w2d(C2, 1), w2d(C2, 1),                                    # w_mean, w_sigma
                smem(), smem(),                                            # b_mean, b_sigma
            ],
            out_specs=[
                pl.BlockSpec((1, 1, m_out_pad), lambda b, j: (b, 0, 0)),
                pl.BlockSpec((1, 1, m_out_pad), lambda b, j: (b, 0, 0)),
            ]),
        compiler_params=pltpu.CompilerParams(
            dimension_semantics=("parallel", "arbitrary"),
            vmem_limit_bytes=vmem_limit),
    )(x_p, dens, enc_lhs, grid_row, grid_col, xout_row,
      inv_enc, w_enc0, params["b_enc"].astype(jnp.float32),
      params["w1"].astype(jnp.float32), params["b1"].astype(jnp.float32),
      params["w2"].astype(jnp.float32), params["b2"].astype(jnp.float32),
      inv_m, inv_s, w_mean, w_sig, b_mean, b_sig)

    mean = jnp.transpose(mean_p[:, :, :m_out], (0, 2, 1))    # (B, m_out, 1)
    sigma = jnp.transpose(sig_p[:, :, :m_out], (0, 2, 1))    # (B, m_out, 1)
    return mean, sigma


# ----------------------------- grid construction (host side) -----------------------------

def to_multiple(x, multiple):
    if x % multiple == 0:
        return x
    return x + multiple - (x % multiple)


def make_grid(x, x_out, points_per_unit, multiplier):
    # Mirrors the PyTorch module: bounds taken on host via .cpu().numpy().
    # (Intentionally outside jit; the grid length is data-dependent.)
    x_np = np.asarray(x)
    xo_np = np.asarray(x_out)
    x_min = min(float(x_np[:, :, 0].min()), float(xo_np[:, :, 0].min()), 0.0) - 0.1
    x_max = max(float(x_np[:, :, 0].max()), float(xo_np[:, :, 0].max()), 1.0) + 0.1
    num_points = int(to_multiple(points_per_unit * (x_max - x_min), multiplier))
    return jnp.linspace(x_min, x_max, num_points).astype(jnp.float32)


# ----------------------------- pure-JAX reference -----------------------------

def ref_forward(params, x, y, x_out, x_grid):
    B, n, _ = x.shape
    m = x_grid.shape[0]
    t = jnp.broadcast_to(x_grid[None, :, None], (B, m, 1))

    scales_e = jnp.exp(params["sigma_enc"])
    dists = (x - jnp.transpose(t, (0, 2, 1))) ** 2               # (B, n, m)
    wt = jnp.exp(-0.5 * dists[..., None] / scales_e ** 2)        # (B, n, m, C)
    yo = jnp.concatenate([jnp.ones((B, n, 1), jnp.float32), y], axis=-1)
    f = jnp.sum(yo[:, :, None, :] * wt, axis=1)                  # (B, m, C)
    d = f[..., :1]
    fc = jnp.concatenate([d, f[..., 1:] / (d + 1e-8)], axis=-1)
    h = jax.nn.sigmoid(fc @ params["w_enc"].T + params["b_enc"][:, 0])   # (B, m, rho_in)
    hc = jnp.transpose(h, (0, 2, 1))
    z = jnp.maximum(jnp.einsum("oc,bcm->bom", params["w1"], hc) + params["b1"][None], 0.0)
    hc2 = jnp.einsum("oc,bcm->bom", params["w2"], z) + params["b2"][None]
    ht = jnp.transpose(hc2, (0, 2, 1))                           # (B, m, rho_out)

    def head(sig, w, b):
        scales = jnp.exp(sig)
        d2 = (t - jnp.transpose(x_out, (0, 2, 1))) ** 2          # (B, m, m_out)
        w2_ = jnp.exp(-0.5 * d2[..., None] / scales ** 2)        # (B, m, m_out, C2)
        f2 = jnp.sum(ht[:, :, None, :] * w2_, axis=1)            # (B, m_out, C2)
        return f2 @ w.T + b[:, 0]

    mean = head(params["sigma_mean"], params["w_mean"], params["b_mean"])
    sigma = jax.nn.softplus(head(params["sigma_sigma"], params["w_sigma"], params["b_sigma"]))
    return mean, sigma


# ----------------------------- main -----------------------------

if __name__ == "__main__":
    key = jax.random.PRNGKey(0)
    B, n, m_out = 2, 8, 12
    in_channels = 4                 # len(channel_names)
    rho_in, rho_hid, rho_out = 8, 16, 8
    points_per_unit = 64
    num_halving_layers = 2          # stand-in rho
    multiplier = 2 ** num_halving_layers

    ks = jax.random.split(key, 14)
    x = jax.random.uniform(ks[0], (B, n, 1), jnp.float32)
    y = jax.random.normal(ks[1], (B, n, in_channels), jnp.float32)
    x_out = jax.random.uniform(ks[2], (B, m_out, 1), jnp.float32)

    C_enc = in_channels + 1
    init_ls = 2.0 / points_per_unit
    params = {
        "sigma_enc": jnp.full((C_enc,), np.log(init_ls), jnp.float32),
        "w_enc": 0.2 * jax.random.normal(ks[3], (rho_in, C_enc), jnp.float32),
        "b_enc": 0.05 * jax.random.normal(ks[4], (rho_in, 1), jnp.float32),
        "w1": 0.2 * jax.random.normal(ks[5], (rho_hid, rho_in), jnp.float32),
        "b1": 0.05 * jax.random.normal(ks[6], (rho_hid, 1), jnp.float32),
        "w2": 0.2 * jax.random.normal(ks[7], (rho_out, rho_hid), jnp.float32),
        "b2": 0.05 * jax.random.normal(ks[8], (rho_out, 1), jnp.float32),
        "sigma_mean": jnp.full((rho_out,), np.log(init_ls), jnp.float32),
        "w_mean": 0.2 * jax.random.normal(ks[9], (1, rho_out), jnp.float32),
        "b_mean": 0.05 * jax.random.normal(ks[10], (1, 1), jnp.float32),
        "sigma_sigma": jnp.full((rho_out,), np.log(init_ls), jnp.float32),
        "w_sigma": 0.2 * jax.random.normal(ks[11], (1, rho_out), jnp.float32),
        "b_sigma": 0.05 * jax.random.normal(ks[12], (1, 1), jnp.float32),
    }

    x_grid = make_grid(x, x_out, points_per_unit, multiplier)
    mean_ref, sigma_ref = ref_forward(params, x, y, x_out, x_grid)

    # exact (f32 RBF) path: validated against the pure-JAX reference.
    fwd_exact = jax.jit(functools.partial(convcnp_pallas_forward, use_bf16_exp=False))
    mean, sigma = fwd_exact(params, x, y, x_out, x_grid)
    jax.block_until_ready((mean, sigma))
    assert mean.shape == (B, m_out, 1) and sigma.shape == (B, m_out, 1)
    assert jnp.allclose(mean, mean_ref, rtol=5e-3, atol=5e-3), "mean mismatch (f32 path)"
    assert jnp.allclose(sigma, sigma_ref, rtol=5e-3, atol=5e-3), "sigma mismatch (f32 path)"

    # fast path: bf16 RBF exps on v6e / v7x (auto-detected), f32 elsewhere.
    fwd_fast = jax.jit(convcnp_pallas_forward)
    mean_f, sigma_f = fwd_fast(params, x, y, x_out, x_grid)
    jax.block_until_ready((mean_f, sigma_f))
    assert jnp.allclose(mean_f, mean_ref, rtol=5e-2, atol=5e-2), "mean mismatch (fast path)"
    assert jnp.allclose(sigma_f, sigma_ref, rtol=5e-2, atol=5e-2), "sigma mismatch (fast path)"

    print("KERNEL_OK")
</pallas_src>

<mosaic_0001>
module attributes {stable_mosaic.version = 11 : i64} {
  func.func @_fused_convcnp_kernel(%arg0: i32, %arg1: i32, %arg2: memref<1x16x1xf32, #tpu.memory_space<vmem>>, %arg3: memref<1x1x16xf32, #tpu.memory_space<vmem>>, %arg4: memref<1x8x64xf32, #tpu.memory_space<vmem>>, %arg5: memref<1x1x128xf32, #tpu.memory_space<vmem>>, %arg6: memref<1x128x1xf32, #tpu.memory_space<vmem>>, %arg7: memref<1x1x128xf32, #tpu.memory_space<vmem>>, %arg8: memref<5x1x1xf32, #tpu.memory_space<vmem>>, %arg9: memref<8x1xf32, #tpu.memory_space<vmem>>, %arg10: memref<8x1xf32, #tpu.memory_space<vmem>>, %arg11: memref<16x8xf32, #tpu.memory_space<vmem>>, %arg12: memref<16x1xf32, #tpu.memory_space<vmem>>, %arg13: memref<8x16xf32, #tpu.memory_space<vmem>>, %arg14: memref<8x1xf32, #tpu.memory_space<vmem>>, %arg15: memref<8x1x1xf32, #tpu.memory_space<vmem>>, %arg16: memref<8x1x1xf32, #tpu.memory_space<vmem>>, %arg17: memref<8x1xf32, #tpu.memory_space<vmem>>, %arg18: memref<8x1xf32, #tpu.memory_space<vmem>>, %arg19: memref<1xf32, #tpu.memory_space<smem>>, %arg20: memref<1xf32, #tpu.memory_space<smem>>, %arg21: memref<1x1x128xf32, #tpu.memory_space<vmem>>, %arg22: memref<1x1x128xf32, #tpu.memory_space<vmem>>) attributes {dimension_semantics = [#tpu.dimension_semantics<parallel>, #tpu.dimension_semantics<arbitrary>], iteration_bounds = array<i64: 2, 1>, scalar_prefetch = 0 : i64, scratch_operands = 0 : i64, tpu.core_type = #tpu.core_type<tc>, window_params = [{transform_indices = @transform_0, window_bounds = array<i64: 1, 16, 1>}, {transform_indices = @transform_1, window_bounds = array<i64: 1, 1, 16>}, {transform_indices = @transform_2, window_bounds = array<i64: 1, 8, 64>}, {transform_indices = @transform_3, window_bounds = array<i64: 1, 1, 128>}, {transform_indices = @transform_4, window_bounds = array<i64: 1, 128, 1>}, {transform_indices = @transform_5, window_bounds = array<i64: 1, 1, 128>}, {pipeline_mode = #tpu.pipeline_mode<synchronous>, transform_indices = @transform_6, window_bounds = array<i64: 5, 1, 1>}, {pipeline_mode = #tpu.pipeline_mode<synchronous>, transform_indices = @transform_7, window_bounds = array<i64: 8, 1>}, {pipeline_mode = #tpu.pipeline_mode<synchronous>, transform_indices = @transform_8, window_bounds = array<i64: 8, 1>}, {pipeline_mode = #tpu.pipeline_mode<synchronous>, transform_indices = @transform_9, window_bounds = array<i64: 16, 8>}, {pipeline_mode = #tpu.pipeline_mode<synchronous>, transform_indices = @transform_10, window_bounds = array<i64: 16, 1>}, {pipeline_mode = #tpu.pipeline_mode<synchronous>, transform_indices = @transform_11, window_bounds = array<i64: 8, 16>}, {pipeline_mode = #tpu.pipeline_mode<synchronous>, transform_indices = @transform_12, window_bounds = array<i64: 8, 1>}, {pipeline_mode = #tpu.pipeline_mode<synchronous>, transform_indices = @transform_13, window_bounds = array<i64: 8, 1, 1>}, {pipeline_mode = #tpu.pipeline_mode<synchronous>, transform_indices = @transform_14, window_bounds = array<i64: 8, 1, 1>}, {pipeline_mode = #tpu.pipeline_mode<synchronous>, transform_indices = @transform_15, window_bounds = array<i64: 8, 1>}, {pipeline_mode = #tpu.pipeline_mode<synchronous>, transform_indices = @transform_16, window_bounds = array<i64: 8, 1>}, {transform_indices = @transform_17, window_bounds = array<i64: 1>}, {transform_indices = @transform_18, window_bounds = array<i64: 1>}, {transform_indices = @transform_19, window_bounds = array<i64: 1, 1, 128>}, {transform_indices = @transform_20, window_bounds = array<i64: 1, 1, 128>}]} {
    %c0_i32 = arith.constant 0 : i32
    %0 = arith.cmpi eq, %arg1, %c0_i32 : i32
    %1 = arith.extui %0 : i1 to i32
    %c0_i32_0 = arith.constant 0 : i32
    %2 = arith.cmpi ne, %1, %c0_i32_0 : i32
    scf.if %2 {
      %cst_68 = arith.constant 0.000000e+00 : f32
      %128 = vector.broadcast %cst_68 : f32 to vector<1x1x128xf32>
      %c0_69 = arith.constant 0 : index
      %c0_70 = arith.constant 0 : index
      %c0_71 = arith.constant 0 : index
      %129 = vector.load %arg21[%c0_69, %c0_70, %c0_71] : memref<1x1x128xf32, #tpu.memory_space<vmem>>, vector<1x1x128xf32>
      tpu.vector_store %arg21[%c0_69, %c0_70, %c0_71], %128 {strides = array<i32>} : memref<1x1x128xf32, #tpu.memory_space<vmem>>, vector<1x1x128xf32>,
      %cst_72 = arith.constant 0.000000e+00 : f32
      %130 = vector.broadcast %cst_72 : f32 to vector<1x1x128xf32>
      %c0_73 = arith.constant 0 : index
      %c0_74 = arith.constant 0 : index
      %c0_75 = arith.constant 0 : index
      %131 = vector.load %arg22[%c0_73, %c0_74, %c0_75] : memref<1x1x128xf32, #tpu.memory_space<vmem>>, vector<1x1x128xf32>
      tpu.vector_store %arg22[%c0_73, %c0_74, %c0_75], %130 {strides = array<i32>} : memref<1x1x128xf32, #tpu.memory_space<vmem>>, vector<1x1x128xf32>,
    } else {
    }
    %c0 = arith.constant 0 : index
    %c0_1 = arith.constant 0 : index
    %c0_2 = arith.constant 0 : index
    %3 = vector.load %arg2[%c0, %c0_1, %c0_2] : memref<1x16x1xf32, #tpu.memory_space<vmem>>, vector<1x16x1xf32>
    %4 = vector.shape_cast %3 : vector<1x16x1xf32> to vector<16x1xf32>
    %c0_3 = arith.constant 0 : index
    %c0_4 = arith.constant 0 : index
    %c0_5 = arith.constant 0 : index
    %5 = vector.load %arg5[%c0_3, %c0_4, %c0_5] : memref<1x1x128xf32, #tpu.memory_space<vmem>>, vector<1x1x128xf32>
    %6 = vector.shape_cast %5 : vector<1x1x128xf32> to vector<1x128xf32>
    %7 = vector.broadcast %4 : vector<16x1xf32> to vector<16x128xf32>
    %8 = vector.broadcast %6 : vector<1x128xf32> to vector<16x128xf32>
    %9 = arith.subf %7, %8 : vector<16x128xf32>
    %10 = arith.mulf %9, %9 : vector<16x128xf32>
    %cst = arith.constant 0.000000e+00 : f32
    %11 = vector.broadcast %cst : f32 to vector<16x128xf32>
    %12 = arith.subf %11, %10 : vector<16x128xf32>
    %c0_6 = arith.constant 0 : index
    %c0_7 = arith.constant 0 : index
    %c0_8 = arith.constant 0 : index
    %13 = vector.load %arg8[%c0_6, %c0_7, %c0_8] : memref<5x1x1xf32, #tpu.memory_space<vmem>>, vector<5x1x1xf32>
    %14 = vector.extract_strided_slice %13 {offsets = [0, 0, 0], sizes = [1, 1, 1], strides = [1, 1, 1]} : vector<5x1x1xf32> to vector<1x1x1xf32>
    %15 = vector.shape_cast %14 : vector<1x1x1xf32> to vector<1x1xf32>
    %16 = vector.broadcast %15 : vector<1x1xf32> to vector<16x128xf32>
    %17 = arith.mulf %12, %16 : vector<16x128xf32>
    %18 = math.exp %17 : vector<16x128xf32>
    %c0_9 = arith.constant 0 : index
    %c0_10 = arith.constant 0 : index
    %c0_11 = arith.constant 0 : index
    %19 = vector.load %arg3[%c0_9, %c0_10, %c0_11] : memref<1x1x16xf32, #tpu.memory_space<vmem>>, vector<1x1x16xf32>
    %20 = vector.shape_cast %19 : vector<1x1x16xf32> to vector<1x16xf32>
    %cst_12 = arith.constant dense<0.000000e+00> : vector<1x128xf32>
    %21 = tpu.matmul %20, %18, %cst_12 {dimension_numbers = #tpu.dot_dimension_numbers<[1], [0], [0], [1], [0, 0, 1, 1], [], []>} : vector<1x16xf32>, vector<16x128xf32>, vector<1x128xf32> -> vector<1x128xf32>
    %cst_13 = arith.constant 9.99999993E-9 : f32
    %22 = vector.broadcast %cst_13 : f32 to vector<1x128xf32>
    %23 = arith.addf %21, %22 : vector<1x128xf32>
    %cst_14 = arith.constant 1.000000e+00 : f32
    %24 = vector.broadcast %cst_14 : f32 to vector<1x128xf32>
    %25 = arith.divf %24, %23 : vector<1x128xf32>
    %26 = vector.shape_cast %12 : vector<16x128xf32> to vector<1x16x128xf32>
    %27 = vector.extract_strided_slice %13 {offsets = [1, 0, 0], sizes = [4, 1, 1], strides = [1, 1, 1]} : vector<5x1x1xf32> to vector<4x1x1xf32>
    %28 = vector.broadcast %26 : vector<1x16x128xf32> to vector<4x16x128xf32>
    %29 = vector.broadcast %27 : vector<4x1x1xf32> to vector<4x16x128xf32>
    %30 = arith.mulf %28, %29 : vector<4x16x128xf32>
    %31 = math.exp %30 : vector<4x16x128xf32>
    %32 = vector.shape_cast %31 : vector<4x16x128xf32> to vector<64x128xf32>
    %c0_15 = arith.constant 0 : index
    %c0_16 = arith.constant 0 : index
    %c0_17 = arith.constant 0 : index
    %33 = vector.load %arg4[%c0_15, %c0_16, %c0_17] : memref<1x8x64xf32, #tpu.memory_space<vmem>>, vector<1x8x64xf32>
    %34 = vector.shape_cast %33 : vector<1x8x64xf32> to vector<8x64xf32>
    %cst_18 = arith.constant dense<0.000000e+00> : vector<8x128xf32>
    %35 = tpu.matmul %34, %32, %cst_18 {dimension_numbers = #tpu.dot_dimension_numbers<[1], [0], [0], [1], [0, 0, 1, 1], [], []>} : vector<8x64xf32>, vector<64x128xf32>, vector<8x128xf32> -> vector<8x128xf32>
    %c0_19 = arith.constant 0 : index
    %c0_20 = arith.constant 0 : index
    %36 = vector.load %arg9[%c0_19, %c0_20] : memref<8x1xf32, #tpu.memory_space<vmem>>, vector<8x1xf32>
    %37 = vector.broadcast %36 : vector<8x1xf32> to vector<8x128xf32>
    %38 = vector.broadcast %21 : vector<1x128xf32> to vector<8x128xf32>
    %39 = arith.mulf %37, %38 : vector<8x128xf32>
    %40 = vector.broadcast %25 : vector<1x128xf32> to vector<8x128xf32>
    %41 = arith.mulf %35, %40 : vector<8x128xf32>
    %42 = arith.addf %39, %41 : vector<8x128xf32>
    %c0_21 = arith.constant 0 : index
    %c0_22 = arith.constant 0 : index
    %43 = vector.load %arg10[%c0_21, %c0_22] : memref<8x1xf32, #tpu.memory_space<vmem>>, vector<8x1xf32>
    %44 = vector.broadcast %43 : vector<8x1xf32> to vector<8x128xf32>
    %45 = arith.addf %42, %44 : vector<8x128xf32>
    %46 = arith.negf %45 : vector<8x128xf32>
    %47 = math.exp %46 : vector<8x128xf32>
    %cst_23 = arith.constant 1.000000e+00 : f32
    %48 = vector.broadcast %cst_23 : f32 to vector<8x128xf32>
    %49 = arith.addf %48, %47 : vector<8x128xf32>
    %50 = arith.divf %48, %49 : vector<8x128xf32>
    %c0_24 = arith.constant 0 : index
    %c0_25 = arith.constant 0 : index
    %51 = vector.load %arg11[%c0_24, %c0_25] : memref<16x8xf32, #tpu.memory_space<vmem>>, vector<16x8xf32>
    %cst_26 = arith.constant dense<0.000000e+00> : vector<16x128xf32>
    %52 = tpu.matmul %51, %50, %cst_26 {dimension_numbers = #tpu.dot_dimension_numbers<[1], [0], [0], [1], [0, 0, 1, 1], [], []>} : vector<16x8xf32>, vector<8x128xf32>, vector<16x128xf32> -> vector<16x128xf32>
    %c0_27 = arith.constant 0 : index
    %c0_28 = arith.constant 0 : index
    %53 = vector.load %arg12[%c0_27, %c0_28] : memref<16x1xf32, #tpu.memory_space<vmem>>, vector<16x1xf32>
    %54 = vector.broadcast %53 : vector<16x1xf32> to vector<16x128xf32>
    %55 = arith.addf %52, %54 : vector<16x128xf32>
    %cst_29 = arith.constant 0.000000e+00 : f32
    %56 = vector.broadcast %cst_29 : f32 to vector<16x128xf32>
    %57 = arith.maximumf %55, %56 : vector<16x128xf32>
    %c0_30 = arith.constant 0 : index
    %c0_31 = arith.constant 0 : index
    %58 = vector.load %arg13[%c0_30, %c0_31] : memref<8x16xf32, #tpu.memory_space<vmem>>, vector<8x16xf32>
    %cst_32 = arith.constant dense<0.000000e+00> : vector<8x128xf32>
    %59 = tpu.matmul %58, %57, %cst_32 {dimension_numbers = #tpu.dot_dimension_numbers<[1], [0], [0], [1], [0, 0, 1, 1], [], []>} : vector<8x16xf32>, vector<16x128xf32>, vector<8x128xf32> -> vector<8x128xf32>
    %c0_33 = arith.constant 0 : index
    %c0_34 = arith.constant 0 : index
    %60 = vector.load %arg14[%c0_33, %c0_34] : memref<8x1xf32, #tpu.memory_space<vmem>>, vector<8x1xf32>
    %61 = vector.broadcast %60 : vector<8x1xf32> to vector<8x128xf32>
    %62 = arith.addf %59, %61 : vector<8x128xf32>
    %c0_35 = arith.constant 0 : index
    %c0_36 = arith.constant 0 : index
    %c0_37 = arith.constant 0 : index
    %63 = vector.load %arg6[%c0_35, %c0_36, %c0_37] : memref<1x128x1xf32, #tpu.memory_space<vmem>>, vector<1x128x1xf32>
    %64 = vector.shape_cast %63 : vector<1x128x1xf32> to vector<128x1xf32>
    %c0_38 = arith.constant 0 : index
    %c0_39 = arith.constant 0 : index
    %c0_40 = arith.constant 0 : index
    %65 = vector.load %arg7[%c0_38, %c0_39, %c0_40] : memref<1x1x128xf32, #tpu.memory_space<vmem>>, vector<1x1x128xf32>
    %66 = vector.shape_cast %65 : vector<1x1x128xf32> to vector<1x128xf32>
    %67 = vector.broadcast %64 : vector<128x1xf32> to vector<128x128xf32>
    %68 = vector.broadcast %66 : vector<1x128xf32> to vector<128x128xf32>
    %69 = arith.subf %67, %68 : vector<128x128xf32>
    %70 = arith.mulf %69, %69 : vector<128x128xf32>
    %cst_41 = arith.constant 0.000000e+00 : f32
    %71 = vector.broadcast %cst_41 : f32 to vector<128x128xf32>
    %72 = arith.subf %71, %70 : vector<128x128xf32>
    %c0_42 = arith.constant 0 : index
    %c0_43 = arith.constant 0 : index
    %73 = vector.load %arg17[%c0_42, %c0_43] : memref<8x1xf32, #tpu.memory_space<vmem>>, vector<8x1xf32>
    %74 = vector.broadcast %73 : vector<8x1xf32> to vector<8x128xf32>
    %75 = arith.mulf %74, %62 : vector<8x128xf32>
    %76 = vector.extract_strided_slice %75 {offsets = [0, 0], sizes = [1, 128], strides = [1, 1]} : vector<8x128xf32> to vector<1x128xf32>
    %77 = vector.extract_strided_slice %75 {offsets = [1, 0], sizes = [1, 128], strides = [1, 1]} : vector<8x128xf32> to vector<1x128xf32>
    %78 = vector.extract_strided_slice %75 {offsets = [2, 0], sizes = [1, 128], strides = [1, 1]} : vector<8x128xf32> to vector<1x128xf32>
    %79 = vector.extract_strided_slice %75 {offsets = [3, 0], sizes = [1, 128], strides = [1, 1]} : vector<8x128xf32> to vector<1x128xf32>
    %80 = vector.extract_strided_slice %75 {offsets = [4, 0], sizes = [1, 128], strides = [1, 1]} : vector<8x128xf32> to vector<1x128xf32>
    %81 = vector.extract_strided_slice %75 {offsets = [5, 0], sizes = [1, 128], strides = [1, 1]} : vector<8x128xf32> to vector<1x128xf32>
    %82 = vector.extract_strided_slice %75 {offsets = [6, 0], sizes = [1, 128], strides = [1, 1]} : vector<8x128xf32> to vector<1x128xf32>
    %83 = vector.extract_strided_slice %75 {offsets = [7, 0], sizes = [1, 128], strides = [1, 1]} : vector<8x128xf32> to vector<1x128xf32>
    %84 = tpu.concatenate %76, %77, %78, %79, %80, %81, %82, %83 in 1 : vector<1x128xf32>, vector<1x128xf32>, vector<1x128xf32>, vector<1x128xf32>, vector<1x128xf32>, vector<1x128xf32>, vector<1x128xf32>, vector<1x128xf32> -> vector<1x1024xf32>
    %c0_44 = arith.constant 0 : index
    %c0_45 = arith.constant 0 : index
    %85 = vector.load %arg18[%c0_44, %c0_45] : memref<8x1xf32, #tpu.memory_space<vmem>>, vector<8x1xf32>
    %86 = vector.broadcast %85 : vector<8x1xf32> to vector<8x128xf32>
    %87 = arith.mulf %86, %62 : vector<8x128xf32>
    %88 = vector.extract_strided_slice %87 {offsets = [0, 0], sizes = [1, 128], strides = [1, 1]} : vector<8x128xf32> to vector<1x128xf32>
    %89 = vector.extract_strided_slice %87 {offsets = [1, 0], sizes = [1, 128], strides = [1, 1]} : vector<8x128xf32> to vector<1x128xf32>
    %90 = vector.extract_strided_slice %87 {offsets = [2, 0], sizes = [1, 128], strides = [1, 1]} : vector<8x128xf32> to vector<1x128xf32>
    %91 = vector.extract_strided_slice %87 {offsets = [3, 0], sizes = [1, 128], strides = [1, 1]} : vector<8x128xf32> to vector<1x128xf32>
    %92 = vector.extract_strided_slice %87 {offsets = [4, 0], sizes = [1, 128], strides = [1, 1]} : vector<8x128xf32> to vector<1x128xf32>
    %93 = vector.extract_strided_slice %87 {offsets = [5, 0], sizes = [1, 128], strides = [1, 1]} : vector<8x128xf32> to vector<1x128xf32>
    %94 = vector.extract_strided_slice %87 {offsets = [6, 0], sizes = [1, 128], strides = [1, 1]} : vector<8x128xf32> to vector<1x128xf32>
    %95 = vector.extract_strided_slice %87 {offsets = [7, 0], sizes = [1, 128], strides = [1, 1]} : vector<8x128xf32> to vector<1x128xf32>
    %96 = tpu.concatenate %88, %89, %90, %91, %92, %93, %94, %95 in 1 : vector<1x128xf32>, vector<1x128xf32>, vector<1x128xf32>, vector<1x128xf32>, vector<1x128xf32>, vector<1x128xf32>, vector<1x128xf32>, vector<1x128xf32> -> vector<1x1024xf32>
    %97 = vector.shape_cast %72 : vector<128x128xf32> to vector<1x128x128xf32>
    %c0_46 = arith.constant 0 : index
    %c0_47 = arith.constant 0 : index
    %c0_48 = arith.constant 0 : index
    %98 = vector.load %arg15[%c0_46, %c0_47, %c0_48] : memref<8x1x1xf32, #tpu.memory_space<vmem>>, vector<8x1x1xf32>
    %99 = vector.broadcast %97 : vector<1x128x128xf32> to vector<8x128x128xf32>
    %100 = vector.broadcast %98 : vector<8x1x1xf32> to vector<8x128x128xf32>
    %101 = arith.mulf %99, %100 : vector<8x128x128xf32>
    %102 = math.exp %101 : vector<8x128x128xf32>
    %103 = vector.shape_cast %102 : vector<8x128x128xf32> to vector<1024x128xf32>
    %104 = vector.shape_cast %72 : vector<128x128xf32> to vector<1x128x128xf32>
    %c0_49 = arith.constant 0 : index
    %c0_50 = arith.constant 0 : index
    %c0_51 = arith.constant 0 : index
    %105 = vector.load %arg16[%c0_49, %c0_50, %c0_51] : memref<8x1x1xf32, #tpu.memory_space<vmem>>, vector<8x1x1xf32>
    %106 = vector.broadcast %104 : vector<1x128x128xf32> to vector<8x128x128xf32>
    %107 = vector.broadcast %105 : vector<8x1x1xf32> to vector<8x128x128xf32>
    %108 = arith.mulf %106, %107 : vector<8x128x128xf32>
    %109 = math.exp %108 : vector<8x128x128xf32>
    %110 = vector.shape_cast %109 : vector<8x128x128xf32> to vector<1024x128xf32>
    %c0_52 = arith.constant 0 : index
    %c0_53 = arith.constant 0 : index
    %c0_54 = arith.constant 0 : index
    %111 = vector.load %arg21[%c0_52, %c0_53, %c0_54] : memref<1x1x128xf32, #tpu.memory_space<vmem>>, vector<1x1x128xf32>
    %112 = vector.shape_cast %111 : vector<1x1x128xf32> to vector<1x128xf32>
    %cst_55 = arith.constant dense<0.000000e+00> : vector<1x128xf32>
    %113 = tpu.matmul %84, %103, %cst_55 {dimension_numbers = #tpu.dot_dimension_numbers<[1], [0], [0], [1], [0, 0, 1, 1], [], []>} : vector<1x1024xf32>, vector<1024x128xf32>, vector<1x128xf32> -> vector<1x128xf32>
    %114 = arith.addf %112, %113 : vector<1x128xf32>
    %c0_56 = arith.constant 0 : index
    %c0_57 = arith.constant 0 : index
    %c0_58 = arith.constant 0 : index
    %115 = vector.load %arg21[%c0_56, %c0_57, %c0_58] : memref<1x1x128xf32, #tpu.memory_space<vmem>>, vector<1x1x128xf32>
    %116 = vector.shape_cast %115 : vector<1x1x128xf32> to vector<1x128xf32>
    %117 = vector.shape_cast %114 : vector<1x128xf32> to vector<1x1x128xf32>
    tpu.vector_store %arg21[%c0_56, %c0_57, %c0_58], %117 {strides = array<i32>} : memref<1x1x128xf32, #tpu.memory_space<vmem>>, vector<1x1x128xf32>,
    %c0_59 = arith.constant 0 : index
    %c0_60 = arith.constant 0 : index
    %c0_61 = arith.constant 0 : index
    %118 = vector.load %arg22[%c0_59, %c0_60, %c0_61] : memref<1x1x128xf32, #tpu.memory_space<vmem>>, vector<1x1x128xf32>
    %119 = vector.shape_cast %118 : vector<1x1x128xf32> to vector<1x128xf32>
    %cst_62 = arith.constant dense<0.000000e+00> : vector<1x128xf32>
    %120 = tpu.matmul %96, %110, %cst_62 {dimension_numbers = #tpu.dot_dimension_numbers<[1], [0], [0], [1], [0, 0, 1, 1], [], []>} : vector<1x1024xf32>, vector<1024x128xf32>, vector<1x128xf32> -> vector<1x128xf32>
    %121 = arith.addf %119, %120 : vector<1x128xf32>
    %c0_63 = arith.constant 0 : index
    %c0_64 = arith.constant 0 : index
    %c0_65 = arith.constant 0 : index
    %122 = vector.load %arg22[%c0_63, %c0_64, %c0_65] : memref<1x1x128xf32, #tpu.memory_space<vmem>>, vector<1x1x128xf32>
    %123 = vector.shape_cast %122 : vector<1x1x128xf32> to vector<1x128xf32>
    %124 = vector.shape_cast %121 : vector<1x128xf32> to vector<1x1x128xf32>
    tpu.vector_store %arg22[%c0_63, %c0_64, %c0_65], %124 {strides = array<i32>} : memref<1x1x128xf32, #tpu.memory_space<vmem>>, vector<1x1x128xf32>,
    %c0_i32_66 = arith.constant 0 : i32
    %125 = arith.cmpi eq, %arg1, %c0_i32_66 : i32
    %126 = arith.extui %125 : i1 to i32
    %c0_i32_67 = arith.constant 0 : i32
    %127 = arith.cmpi ne, %126, %c0_i32_67 : i32
    scf.if %127 {
      %c0_68 = arith.constant 0 : index
      %c0_69 = arith.constant 0 : index
      %c0_70 = arith.constant 0 : index
      %128 = vector.load %arg21[%c0_68, %c0_69, %c0_70] : memref<1x1x128xf32, #tpu.memory_space<vmem>>, vector<1x1x128xf32>
      %129 = vector.shape_cast %128 : vector<1x1x128xf32> to vector<1x128xf32>
      %c0_71 = arith.constant 0 : index
      %130 = memref.load %arg19[%c0_71] : memref<1xf32, #tpu.memory_space<smem>>
      %131 = vector.broadcast %130 : f32 to vector<1x128xf32>
      %132 = arith.addf %129, %131 : vector<1x128xf32>
      %c0_72 = arith.constant 0 : index
      %c0_73 = arith.constant 0 : index
      %c0_74 = arith.constant 0 : index
      %133 = vector.load %arg21[%c0_72, %c0_73, %c0_74] : memref<1x1x128xf32, #tpu.memory_space<vmem>>, vector<1x1x128xf32>
      %134 = vector.shape_cast %133 : vector<1x1x128xf32> to vector<1x128xf32>
      %135 = vector.shape_cast %132 : vector<1x128xf32> to vector<1x1x128xf32>
      tpu.vector_store %arg21[%c0_72, %c0_73, %c0_74], %135 {strides = array<i32>} : memref<1x1x128xf32, #tpu.memory_space<vmem>>, vector<1x1x128xf32>,
      %c0_75 = arith.constant 0 : index
      %c0_76 = arith.constant 0 : index
      %c0_77 = arith.constant 0 : index
      %136 = vector.load %arg22[%c0_75, %c0_76, %c0_77] : memref<1x1x128xf32, #tpu.memory_space<vmem>>, vector<1x1x128xf32>
      %137 = vector.shape_cast %136 : vector<1x1x128xf32> to vector<1x128xf32>
      %c0_78 = arith.constant 0 : index
      %138 = memref.load %arg20[%c0_78] : memref<1xf32, #tpu.memory_space<smem>>
      %139 = vector.broadcast %138 : f32 to vector<1x128xf32>
      %140 = arith.addf %137, %139 : vector<1x128xf32>
      %cst_79 = arith.constant 0.000000e+00 : f32
      %141 = vector.broadcast %cst_79 : f32 to vector<1x128xf32>
      %142 = arith.maximumf %140, %141 : vector<1x128xf32>
      %143 = math.absf %140 : vector<1x128xf32>
      %cst_80 = arith.constant 0.000000e+00 : f32
      %144 = vector.broadcast %cst_80 : f32 to vector<1x128xf32>
      %145 = arith.subf %144, %143 : vector<1x128xf32>
      %146 = math.exp %145 : vector<1x128xf32>
      %147 = math.log1p %146 : vector<1x128xf32>
      %148 = arith.addf %142, %147 : vector<1x128xf32>
      %c0_81 = arith.constant 0 : index
      %c0_82 = arith.constant 0 : index
      %c0_83 = arith.constant 0 : index
      %149 = vector.load %arg22[%c0_81, %c0_82, %c0_83] : memref<1x1x128xf32, #tpu.memory_space<vmem>>, vector<1x1x128xf32>
      %150 = vector.shape_cast %149 : vector<1x1x128xf32> to vector<1x128xf32>
      %151 = vector.shape_cast %148 : vector<1x128xf32> to vector<1x1x128xf32>
      tpu.vector_store %arg22[%c0_81, %c0_82, %c0_83], %151 {strides = array<i32>} : memref<1x1x128xf32, #tpu.memory_space<vmem>>, vector<1x1x128xf32>,
    } else {
    }
    return
  }
  func.func @transform_0(%arg0: i32, %arg1: i32) -> (i32, i32, i32) {
    %c0_i32 = arith.constant 0 : i32
    %c0_i32_0 = arith.constant 0 : i32
    %c0_i32_1 = arith.constant 0 : i32
    return %arg0, %c0_i32, %c0_i32_0 : i32, i32, i32
  }
  func.func @transform_1(%arg0: i32, %arg1: i32) -> (i32, i32, i32) {
    %c0_i32 = arith.constant 0 : i32
    %c0_i32_0 = arith.constant 0 : i32
    %c0_i32_1 = arith.constant 0 : i32
    return %arg0, %c0_i32, %c0_i32_0 : i32, i32, i32
  }
  func.func @transform_2(%arg0: i32, %arg1: i32) -> (i32, i32, i32) {
    %c0_i32 = arith.constant 0 : i32
    %c0_i32_0 = arith.constant 0 : i32
    %c0_i32_1 = arith.constant 0 : i32
    return %arg0, %c0_i32, %c0_i32_0 : i32, i32, i32
  }
  func.func @transform_3(%arg0: i32, %arg1: i32) -> (i32, i32, i32) {
    %c0_i32 = arith.constant 0 : i32
    %c0_i32_0 = arith.constant 0 : i32
    %c0_i32_1 = arith.constant 0 : i32
    return %c0_i32, %c0_i32_0, %arg1 : i32, i32, i32
  }
  func.func @transform_4(%arg0: i32, %arg1: i32) -> (i32, i32, i32) {
    %c0_i32 = arith.constant 0 : i32
    %c0_i32_0 = arith.constant 0 : i32
    %c0_i32_1 = arith.constant 0 : i32
    return %c0_i32, %arg1, %c0_i32_0 : i32, i32, i32
  }
  func.func @transform_5(%arg0: i32, %arg1: i32) -> (i32, i32, i32) {
    %c0_i32 = arith.constant 0 : i32
    %c0_i32_0 = arith.constant 0 : i32
    %c0_i32_1 = arith.constant 0 : i32
    return %arg0, %c0_i32, %c0_i32_0 : i32, i32, i32
  }
  func.func @transform_6(%arg0: i32, %arg1: i32) -> (i32, i32, i32) {
    %c0_i32 = arith.constant 0 : i32
    %c0_i32_0 = arith.constant 0 : i32
    %c0_i32_1 = arith.constant 0 : i32
    %c0_i32_2 = arith.constant 0 : i32
    return %c0_i32, %c0_i32_0, %c0_i32_1 : i32, i32, i32
  }
  func.func @transform_7(%arg0: i32, %arg1: i32) -> (i32, i32) {
    %c0_i32 = arith.constant 0 : i32
    %c0_i32_0 = arith.constant 0 : i32
    %c0_i32_1 = arith.constant 0 : i32
    return %c0_i32, %c0_i32_0 : i32, i32
  }
  func.func @transform_8(%arg0: i32, %arg1: i32) -> (i32, i32) {
    %c0_i32 = arith.constant 0 : i32
    %c0_i32_0 = arith.constant 0 : i32
    %c0_i32_1 = arith.constant 0 : i32
    return %c0_i32, %c0_i32_0 : i32, i32
  }
  func.func @transform_9(%arg0: i32, %arg1: i32) -> (i32, i32) {
    %c0_i32 = arith.constant 0 : i32
    %c0_i32_0 = arith.constant 0 : i32
    %c0_i32_1 = arith.constant 0 : i32
    return %c0_i32, %c0_i32_0 : i32, i32
  }
  func.func @transform_10(%arg0: i32, %arg1: i32) -> (i32, i32) {
    %c0_i32 = arith.constant 0 : i32
    %c0_i32_0 = arith.constant 0 : i32
    %c0_i32_1 = arith.constant 0 : i32
    return %c0_i32, %c0_i32_0 : i32, i32
  }
  func.func @transform_11(%arg0: i32, %arg1: i32) -> (i32, i32) {
    %c0_i32 = arith.constant 0 : i32
    %c0_i32_0 = arith.constant 0 : i32
    %c0_i32_1 = arith.constant 0 : i32
    return %c0_i32, %c0_i32_0 : i32, i32
  }
  func.func @transform_12(%arg0: i32, %arg1: i32) -> (i32, i32) {
    %c0_i32 = arith.constant 0 : i32
    %c0_i32_0 = arith.constant 0 : i32
    %c0_i32_1 = arith.constant 0 : i32
    return %c0_i32, %c0_i32_0 : i32, i32
  }
  func.func @transform_13(%arg0: i32, %arg1: i32) -> (i32, i32, i32) {
    %c0_i32 = arith.constant 0 : i32
    %c0_i32_0 = arith.constant 0 : i32
    %c0_i32_1 = arith.constant 0 : i32
    %c0_i32_2 = arith.constant 0 : i32
    return %c0_i32, %c0_i32_0, %c0_i32_1 : i32, i32, i32
  }
  func.func @transform_14(%arg0: i32, %arg1: i32) -> (i32, i32, i32) {
    %c0_i32 = arith.constant 0 : i32
    %c0_i32_0 = arith.constant 0 : i32
    %c0_i32_1 = arith.constant 0 : i32
    %c0_i32_2 = arith.constant 0 : i32
    return %c0_i32, %c0_i32_0, %c0_i32_1 : i32, i32, i32
  }
  func.func @transform_15(%arg0: i32, %arg1: i32) -> (i32, i32) {
    %c0_i32 = arith.constant 0 : i32
    %c0_i32_0 = arith.constant 0 : i32
    %c0_i32_1 = arith.constant 0 : i32
    return %c0_i32, %c0_i32_0 : i32, i32
  }
  func.func @transform_16(%arg0: i32, %arg1: i32) -> (i32, i32) {
    %c0_i32 = arith.constant 0 : i32
    %c0_i32_0 = arith.constant 0 : i32
    %c0_i32_1 = arith.constant 0 : i32
    return %c0_i32, %c0_i32_0 : i32, i32
  }
  func.func @transform_17(%arg0: i32, %arg1: i32) -> i32 {
    %c0_i32 = arith.constant 0 : i32
    %c0_i32_0 = arith.constant 0 : i32
    return %c0_i32 : i32
  }
  func.func @transform_18(%arg0: i32, %arg1: i32) -> i32 {
    %c0_i32 = arith.constant 0 : i32
    %c0_i32_0 = arith.constant 0 : i32
    return %c0_i32 : i32
  }
  func.func @transform_19(%arg0: i32, %arg1: i32) -> (i32, i32, i32) {
    %c0_i32 = arith.constant 0 : i32
    %c0_i32_0 = arith.constant 0 : i32
    %c0_i32_1 = arith.constant 0 : i32
    return %arg0, %c0_i32, %c0_i32_0 : i32, i32, i32
  }
  func.func @transform_20(%arg0: i32, %arg1: i32) -> (i32, i32, i32) {
    %c0_i32 = arith.constant 0 : i32
    %c0_i32_0 = arith.constant 0 : i32
    %c0_i32_1 = arith.constant 0 : i32
    return %arg0, %c0_i32, %c0_i32_0 : i32, i32, i32
  }
}

</mosaic_0001>

<bundles_post_ra>
// kernel: convcnp_pallas_forward.1
= control target key start
LH: loop header
LB: loop body
LE: loop exit
PB: predicated region body
PF: predicated region fallthrough
CT: control target
= control target key end

     0   :  { %s4422_s25 = smov 0   ;;  %s5859_s0 = inlined_call_operand.vmem [shape: f32[2,16,1], index: 0, kind: input, shape index: {}]   ;;  %s5860_s1 = inlined_call_operand.vmem [shape: f32[2,1,16], index: 1, kind: input, shape index: {}]   ;;  %s5861_s2 = inlined_call_operand.vmem [shape: f32[2,8,64], index: 2, kind: input, shape index: {}]   ;;  %s5862_s3 = inlined_call_operand.vmem [shape: f32[1,1,128], index: 3, kind: input, shape index: {}]   ;;  %s5863_s4 = inlined_call_operand.vmem [shape: f32[1,128,1], index: 4, kind: input, shape index: {}]   ;;  %s5864_s5 = inlined_call_operand.vmem [shape: f32[2,1,128], index: 5, kind: input, shape index: {}]   ;;  %s5865_s6 = inlined_call_operand.vmem [shape: f32[5,1,1], index: 6, kind: input, shape index: {}]   ;;  %s5866_s7 = inlined_call_operand.vmem [shape: f32[8,1], index: 7, kind: input, shape index: {}]   ;;  %s5867_s8 = inlined_call_operand.vmem [shape: f32[8,1], index: 8, kind: input, shape index: {}]   ;;  %s5868_s9 = inlined_call_operand.vmem [shape: f32[16,8], index: 9, kind: input, shape index: {}]   ;;  %s5869_s10 = inlined_call_operand.vmem [shape: f32[16,1], index: 10, kind: input, shape index: {}]   ;;  %s5870_s11 = inlined_call_operand.vmem [shape: f32[8,16], index: 11, kind: input, shape index: {}]   ;;  %s5871_s12 = inlined_call_operand.vmem [shape: f32[8,1], index: 12, kind: input, shape index: {}]   ;;  %s5872_s13 = inlined_call_operand.vmem [shape: f32[8,1,1], index: 13, kind: input, shape index: {}]   ;;  %s5873_s14 = inlined_call_operand.vmem [shape: f32[8,1,1], index: 14, kind: input, shape index: {}]   ;;  %s5874_s15 = inlined_call_operand.vmem [shape: f32[8,1], index: 15, kind: input, shape index: {}]   ;;  %s5875_s16 = inlined_call_operand.vmem [shape: f32[8,1], index: 16, kind: input, shape index: {}]   ;;  %s5876_s17 = inlined_call_operand.<no memory space> [shape: f32[1], index: 17, kind: input, shape index: {}]   ;;  %s5877_s18 = inlined_call_operand.<no memory space> [shape: f32[1], index: 18, kind: input, shape index: {}]   ;;  %s5878_s19 = inlined_call_operand.vmem [shape: f32[2,1,128], index: 19, kind: output, shape index: {0}]   ;;  %s5879_s20 = inlined_call_operand.vmem [shape: f32[2,1,128], index: 20, kind: output, shape index: {1}]  }
   0x1   :  { %5918 = sst [smem:[#allocation82_spill]] %s5859_s0 }
   0x2   :  { %5919 = sst [smem:[#allocation83_spill]] %s5860_s1 }
   0x3   :  { %5920 = sst [smem:[#allocation84_spill]] %s5861_s2  ;;  %s4420_s2 = smov 0  }
   0x4   :  { %5921 = sst [smem:[#allocation85_spill]] %s5862_s3  ;;  %s4424_s3 = smov 0  }
   0x5   :  { %5922 = sst [smem:[#allocation86_spill]] %s5863_s4 }
   0x6   :  { %26 = sst [smem:[#allocation2]] %s5876_s17 }
   0x7   :  { %27 = sst [smem:[#allocation3]] %s5877_s18 }
   0x8 LB: > { %s45_s17 = sadd.s32 1, %s4299_s25  ;;  %p3063_p0 = scmp.ge.s32.totalorder %s4303_s3, 1  ;;  %s4303_s3 = sphi %s4424_s3, %s33_s3   ;;  %s4299_s25 = sphi %s4422_s25, %s6129_s25   ;;  %s4295_s2 = sphi %s4420_s2, %s6128_s2  }
   0x9   : > { %p47_p1 = scmp.ge.s32.totalorder %s45_s17, 2  ;;  %p623_p2 = scmp.lt.s32.totalorder %s4303_s3, 3 }
   0xb   : > { %s6131_s17 = smov (%p47_p1, %s45_s17), 0  ;;  %p624_p3 = pnand %p3063_p0, %p623_p2 }
   0xd   : > { %627 = sbr.rel (%p624_p3) target bundleno = 1252 (0x4e4), region = 96 }
  0x14   : > { %v3068_v0 = vld [vmem:[%s5865_s6] ss:$0 sm:$0xff]  ;;  %p700_p4 = scmp.lt.s32.totalorder %s4295_s2, 1  ;;  %v4305_v1 = vmov 0   ;;  %v3070_v2 = vld [vmem:[%s5865_s6 + $0x1] ss:$0 sm:$0xff] }
  0x15   : > { %3738 = vset.pattern.permute.xlu1 %v4305_v1  ;;  %3737 = vset.pattern.permute.xlu0 %v4305_v1  ;;  %s5923_s0 = sld [smem:[#allocation82_spill]]  ;;  %v3072_v4 = vld [vmem:[%s5865_s6 + $0x3] ss:$0 sm:$0xff]  ;;  %v3071_v7 = vld [vmem:[%s5865_s6 + $0x2] ss:$0 sm:$0xff]  ;;  %v1027_v13 = vld [vmem:[%s5869_s10 + $0x8] sm:$0xff] }
  0x16   : > { %772 = vperm.xlu1 %3738, %v3068_v0   ;;  %s6133_s2 = smov (!%p700_p4, %s4295_s2), 1  ;;  %v994_v6 = vld [vmem:[%s5866_s7] sm:$0xff]  ;;  %v4306_v18 = vmov 0.0|0.0   ;;  %v4307_v23 = vmov 0.0   ;;  %vm4308_vm0 = vmmov 0   ;;  %s5925_s27 = sld [smem:[#allocation85_spill]] }
  0x17   : > { %s3098_s4 = sshll.u32 %s6133_s2, 4  ;;  %v1026_v8 = vld [vmem:[%s5869_s10] sm:$0xff]  ;;  %3435 = vmatprep.subr.bf16.mxu0 %v4306_v18  ;;  %3438 = vmatprep.subr.bf16.mxu1 %v4306_v18  ;;  %s4504_s30 = scalar_lea.vmem %s5878_s19, %s6133_s2  ;;  %vm782_vm1 = vcmask 130048   ;;  %vm920_vm2 = vcmask 523264   ;;  %vm1038_vm3 = vcmask 64512  }
  0x18   : > { %v3073_v9 = vld [vmem:[%s5865_s6 + $0x4] ss:$0 sm:$0xff]  ;;  %v3081_v14 = vld [vmem:[%s5872_s13 + $0x1] ss:$0 sm:$0xff]  ;;  %v3083_v19 = vld [vmem:[%s5872_s13 + $0x3] ss:$0 sm:$0xff]  ;;  %s4510_s22 = scalar_lea.vmem %s5879_s20, %s6133_s2  ;;  %3401 = vmatprep.mubr.msk.f32.mxu0 %vm4308_vm0, %v4307_v23  ;;  %3420 = vmatprep.mubr.msk.f32.mxu1 %vm4308_vm0, %v4307_v23  ;;  %s723_s29 = scalar_lea.vmem %s5864_s5, %s6133_s2 }
  0x19   : > { %v1011_v11 = vld [vmem:[%s5867_s8] sm:$0xff]  ;;  %734 = vst [vmem:[%s4504_s30] sm:$0x1] %v4307_v23  ;;  %735 = vst [vmem:[%s4510_s22] sm:$0x1] %v4307_v23  ;;  %s5926_s23 = sld [smem:[#allocation83_spill]]  ;;  %s3066_s18 = sshll.u32 %s6133_s2, 3 }
  0x1a   : > { %880 = vperm.xlu1 %3738, %v3070_v2   ;;  %v3080_v20 = vld [vmem:[%s5872_s13] ss:$0 sm:$0xff]  ;;  %v3082_v25 = vld [vmem:[%s5872_s13 + $0x2] ss:$0 sm:$0xff]  ;;  %v3085_v32 = vld [vmem:[%s5872_s13 + $0x5] ss:$0 sm:$0xff] }
  0x1b   : > { %s704_s21 = scalar_lea.vmem %s5923_s0, %s3098_s4  ;;  %v3087_v34 = vld [vmem:[%s5872_s13 + $0x7] ss:$0 sm:$0xff]  ;;  %v3084_v37 = vld [vmem:[%s5872_s13 + $0x4] ss:$0 sm:$0xff]  ;;  %v3089_v38 = vld [vmem:[%s5873_s14 + $0x1] ss:$0 sm:$0xff] }
  0x1c   : > { %v736_v3 = vld [vmem:[%s704_s21] sm:$0xff]  ;;  %v737_v5 = vld [vmem:[%s704_s21 + $0x8] sm:$0xff]  ;;  %s5924_s21 = sld [smem:[#allocation86_spill]]  ;;  %s2900_s26 = sld [smem:[#allocation3]] }
  0x1d   : > { %741 = vperm.xlu0 %3737, %v736_v3   ;;  %v1123_v36 = vld [vmem:[%s5871_s12] sm:$0xff] }
  0x1e   : > { %888 = vperm.xlu1 %3738, %v3072_v4   ;;  %v3086_v39 = vld [vmem:[%s5872_s13 + $0x6] ss:$0 sm:$0xff]  ;;  %v3091_v40 = vld [vmem:[%s5873_s14 + $0x3] ss:$0 sm:$0xff]  ;;  %v3093_v42 = vld [vmem:[%s5873_s14 + $0x5] ss:$0 sm:$0xff] }
  0x1f   : > { %v1353_v41 = vld [vmem:[%s5874_s15] sm:$0xff]  ;;  %s707_s24 = scalar_lea.vmem %s5926_s23, %s6133_s2 }
  0x20   : > { %v3088_v43 = vld [vmem:[%s5873_s14] ss:$0 sm:$0xff]  ;;  %v3095_v44 = vld [vmem:[%s5873_s14 + $0x7] ss:$0 sm:$0xff]  ;;  %v3090_v45 = vld [vmem:[%s5873_s14 + $0x2] ss:$0 sm:$0xff] }
  0x21   : > { %746 = vperm.xlu0 %3737, %v737_v5   ;;  %v1375_v46 = vld [vmem:[%s5875_s16] sm:$0xff] }
  0x22   : > { %997 = vperm.xlu1 %3738, %v994_v6   ;;  %v1202_v10 = vld [vmem:[%s5924_s21] sm:$0xff]  ;;  %v1204_v12 = vld [vmem:[%s5924_s21 + $0x10] sm:$0xff]  ;;  %v1203_v15 = vld [vmem:[%s5924_s21 + $0x8] sm:$0xff] }
  0x23   : > { %v1206_v16 = vld [vmem:[%s5924_s21 + $0x20] sm:$0xff]  ;;  %v1205_v17 = vld [vmem:[%s5924_s21 + $0x18] sm:$0xff]  ;;  %v1208_v21 = vld [vmem:[%s5924_s21 + $0x30] sm:$0xff] }
  0x24   : > { %v1207_v22 = vld [vmem:[%s5924_s21 + $0x28] sm:$0xff]  ;;  %v1210_v24 = vld [vmem:[%s5924_s21 + $0x40] sm:$0xff]  ;;  %v1212_v26 = vld [vmem:[%s5924_s21 + $0x50] sm:$0xff] }
  0x25   : > { %884 = vperm.xlu0 %3737, %v3071_v7   ;;  %v1209_v27 = vld [vmem:[%s5924_s21 + $0x38] sm:$0xff]  ;;  %v1214_v28 = vld [vmem:[%s5924_s21 + $0x60] sm:$0xff]  ;;  %v1211_v29 = vld [vmem:[%s5924_s21 + $0x48] sm:$0xff] }
  0x26   : > { %1030 = vperm.xlu1 %3738, %v1026_v8   ;;  %v1216_v30 = vld [vmem:[%s5924_s21 + $0x70] sm:$0xff]  ;;  %v1213_v31 = vld [vmem:[%s5924_s21 + $0x58] sm:$0xff]  ;;  %v1215_v33 = vld [vmem:[%s5924_s21 + $0x68] sm:$0xff] }
  0x27   : > { %v1217_v35 = vld [vmem:[%s5924_s21 + $0x78] sm:$0xff]  ;;  %v3092_v47 = vld [vmem:[%s5873_s14 + $0x4] ss:$0 sm:$0xff]  ;;  %v3094_v48 = vld [vmem:[%s5873_s14 + $0x6] ss:$0 sm:$0xff] }
  0x28   : > { %v3067_v50 = vld [vmem:[%s5925_s27] ss:$0 sm:$0xff]  ;;  %s5930_s27 = sld [smem:[#allocation84_spill]] }
  0x29   : > { %892 = vperm.xlu0 %3737, %v3073_v9  }
  0x2a   : > { %1221 = vperm.xlu1 %3738, %v1202_v10  }
  0x2d   : > { %1014 = vperm.xlu0 %3737, %v1011_v11  }
  0x2e   : > { %1231 = vperm.xlu1 %3738, %v1204_v12   ;;  %s711_s28 = scalar_lea.vmem %s5930_s27, %s3066_s18  ;;  %s2895_s18 = sld [smem:[#allocation2]] }
  0x31   : > { %1035 = vperm.xlu0 %3737, %v1027_v13  }
  0x32   : > { %1450 = vperm.xlu1 %3738, %v3081_v14  }
  0x35   : > { %1226 = vperm.xlu0 %3737, %v1203_v15  }
  0x36   : > { %1241 = vperm.xlu1 %3738, %v1206_v16  }
  0x39   : > { %1236 = vperm.xlu0 %3737, %v1205_v17  }
  0x3a   : > { %1458 = vperm.xlu1 %3738, %v3083_v19   ;;  %v4611_v19 = vld [vmem:[%s723_s29] ss:$0 sm:$0xff] }
  0x3d   : > { %1446 = vperm.xlu0 %3737, %v3080_v20  }
  0x3e   : > { %1251 = vperm.xlu1 %3738, %v1208_v21  }
  0x41   : > { %1246 = vperm.xlu0 %3737, %v1207_v22  }
  0x42   : > { %1261 = vperm.xlu1 %3738, %v1210_v24  }
  0x45   : > { %1454 = vperm.xlu0 %3737, %v3082_v25  }
  0x46   : > { %1271 = vperm.xlu1 %3738, %v1212_v26  }
  0x49   : > { %1256 = vperm.xlu0 %3737, %v1209_v27  }
  0x4a   : > { %1281 = vperm.xlu1 %3738, %v1214_v28  }
  0x4d   : > { %1266 = vperm.xlu0 %3737, %v1211_v29  }
  0x4e   : > { %1291 = vperm.xlu1 %3738, %v1216_v30  }
  0x51   : > { %1276 = vperm.xlu0 %3737, %v1213_v31  }
  0x52   : > { %1466 = vperm.xlu1 %3738, %v3085_v32  }
  0x55   : > { %1286 = vperm.xlu0 %3737, %v1215_v33  }
  0x56   : > { %1474 = vperm.xlu1 %3738, %v3087_v34  }
  0x59   : > { %1296 = vperm.xlu0 %3737, %v1217_v35  }
  0x5a   : > { %1126 = vperm.xlu1 %3738, %v1123_v36  }
  0x5d   : > { %1462 = vperm.xlu0 %3737, %v3084_v37  }
  0x5e   : > { %1914 = vperm.xlu1 %3738, %v3089_v38  }
  0x61   : > { %1470 = vperm.xlu0 %3737, %v3086_v39  }
  0x62   : > { %1922 = vperm.xlu1 %3738, %v3091_v40  }
  0x65   : > { %1356 = vperm.xlu0 %3737, %v1353_v41  }
  0x66   : > { %1930 = vperm.xlu1 %3738, %v3093_v42  }
  0x69   : > { %1910 = vperm.xlu0 %3737, %v3088_v43  }
  0x6a   : > { %1938 = vperm.xlu1 %3738, %v3095_v44  }
  0x6d   : > { %1918 = vperm.xlu0 %3737, %v3090_v45  }
  0x6e   : > { %1378 = vperm.xlu1 %3738, %v1375_v46   ;;  %v781_v46 = vld [vmem:[%s707_s24] sm:$0x1] }
  0x71   : > { %1926 = vperm.xlu0 %3737, %v3092_v47  }
  0x75   : > { %1934 = vperm.xlu0 %3737, %v3094_v48  }
  0x95   : > { %v773_v49 = vpop.permute.xlu1 %772 }
  0x99   : > { %v881_v51 = vpop.permute.xlu1 %880 }
  0x9c   : > { %v742_v52 = vpop.permute.xlu0 %741 }
  0x9d   : > { %v755_v53 = vsub.f32 %v742_v52, %v3067_v50  ;;  %v889_v55 = vpop.permute.xlu1 %888 }
  0x9f   : > { %v757_v54 = vmul.f32 %v755_v53, %v755_v53 }
  0xa0   : > { %v747_v56 = vpop.permute.xlu0 %746 }
  0xa1   : > { %v759_v57 = vsub.f32 0.0, %v757_v54  ;;  %v756_v58 = vsub.f32 %v747_v56, %v3067_v50  ;;  %v4601_v60 = vpop.permute.xlu1 %997 }
  0xa3   : > { %v758_v59 = vmul.f32 %v756_v58, %v756_v58  ;;  %v775_v61 = vmul.f32 %v773_v49, %v759_v57  ;;  %v895_v0 = vmul.f32 %v881_v51, %v759_v57  ;;  %v899_v12 = vmul.f32 %v889_v55, %v759_v57 }
  0xa4   : > { %v885_v62 = vpop.permute.xlu0 %884 }
  0xa5   : > { %v760_v63 = vsub.f32 0.0, %v758_v59  ;;  %v4603_v1 = vpop.permute.xlu1 %1030  ;;  %v777_v2 = vmul.f32 1.442695, %v775_v61  ;;  %v897_v7 = vmul.f32 %v885_v62, %v759_v57  ;;  %v903_v9 = vmul.f32 1.442695, %v895_v0 }
  0xa6   : > { %v911_v22 = vmul.f32 1.442695, %v899_v12 }
  0xa7   : > { %v898_v3 = vmul.f32 %v885_v62, %v760_v63  ;;  %v776_v5 = vmul.f32 %v773_v49, %v760_v63  ;;  %v896_v6 = vmul.f32 %v881_v51, %v760_v63  ;;  %3739 = vpow2.f32 %v777_v2 }
  0xa8   : > { %v893_v4 = vpop.permute.xlu0 %892  ;;  %v900_v15 = vmul.f32 %v889_v55, %v760_v63  ;;  %v907_v16 = vmul.f32 1.442695, %v897_v7 }
  0xa9   : > { %v779_v8 = vmul.f32 1.442695, %v776_v5  ;;  %v1222_v10 = vpop.permute.xlu1 %1221  ;;  %v905_v11 = vmul.f32 1.442695, %v896_v6  ;;  %v909_v13 = vmul.f32 1.442695, %v898_v3  ;;  %v901_v17 = vmul.f32 %v893_v4, %v759_v57 }
  0xaa   : > { %v902_v20 = vmul.f32 %v893_v4, %v760_v63  ;;  %v913_v25 = vmul.f32 1.442695, %v900_v15  ;;  %v1305_v27 = vsub.f32 %v1222_v10, %v4611_v19 }
  0xab   : > { %3741 = vpow2.f32 %v779_v8  ;;  %v915_v26 = vmul.f32 1.442695, %v901_v17 }
  0xac   : > { %v4609_v14 = vpop.permute.xlu0 %1014  ;;  %3743 = vpow2.f32 %v903_v9  ;;  %v917_v29 = vmul.f32 1.442695, %v902_v20  ;;  %v1321_v35 = vmul.f32 %v1305_v27, %v1305_v27 }
  0xad   : > { %v1232_v21 = vpop.permute.xlu1 %1231  ;;  %3745 = vpow2.f32 %v905_v11 }
  0xae   : > { %3747 = vpow2.f32 %v909_v13  ;;  %v1307_v28 = vsub.f32 %v1232_v21, %v4611_v19  ;;  %v4628_v48 = vsub.f32 0.0, %v1321_v35 }
  0xaf   : > { %3749 = vpow2.f32 %v907_v16 }
  0xb0   : > { %v4613_v24 = vpop.permute.xlu0 %1035  ;;  %3751 = vpow2.f32 %v911_v22  ;;  %v1323_v36 = vmul.f32 %v1307_v28, %v1307_v28 }
  0xb1   : > { %v4617_v30 = vpop.permute.xlu1 %1450  ;;  %v3740_v32 = vpop.eup %3739  ;;  %3753 = vpow2.f32 %v913_v25 }
  0xb2   : > { %3755 = vpow2.f32 %v915_v26  ;;  %v4630_v49 = vsub.f32 0.0, %v1323_v36 }
  0xb3   : > { %3757 = vpow2.f32 %v917_v29 }
  0xb4   : > { %v1227_v31 = vpop.permute.xlu0 %1226 }
  0xb5   : > { %v1306_v33 = vsub.f32 %v1227_v31, %v4611_v19  ;;  %v3742_v34 = vpop.eup %3741  ;;  %v1242_v38 = vpop.permute.xlu1 %1241 }
  0xb6   : > { %v3436_v39 = vpack.c.bf16 %v3742_v34, %v3740_v32  ;;  %v3744_v40 = vpop.eup %3743  ;;  %v1309_v41 = vsub.f32 %v1242_v38, %v4611_v19 }
  0xb7   : > { %v1322_v37 = vmul.f32 %v1306_v33, %v1306_v33  ;;  %v3746_v43 = vpop.eup %3745 }
  0xb8   : > { %v1237_v42 = vpop.permute.xlu0 %1236  ;;  %3437 = vmatpush3.bf16.msra.mxu0 %v3436_v39  ;;  %v3748_v47 = vpop.eup %3747  ;;  %v1325_v50 = vmul.f32 %v1309_v41, %v1309_v41  ;;  %v3439_v51 = vpack.c.bf16 %v3746_v43, %v3744_v40 }
  0xb9   : > { %v4625_v44 = vsub.f32 0.0, %v1322_v37  ;;  %v1308_v45 = vsub.f32 %v1237_v42, %v4611_v19  ;;  %v4632_v53 = vpop.permute.xlu1 %1458  ;;  %v3750_v54 = vpop.eup %3749 }
  0xba   : > { %v4634_v55 = vsub.f32 0.0, %v1325_v50  ;;  %3440 = vmatpush3.bf16.msra.mxu1 %v3439_v51  ;;  %v1525_v57 = vmul.f32 %v4632_v53, %v4628_v48  ;;  %v1527_v59 = vmul.f32 %v4632_v53, %v4630_v49  ;;  %v3442_v62 = vpack.c.bf16 %v3748_v47, %v3750_v54  ;;  %v3752_v63 = vpop.eup %3751 }
  0xbb   : > { %v1324_v52 = vmul.f32 %v1308_v45, %v1308_v45  ;;  %3402 = vmatmul.mubr.msk.f32.vlgmr.msra.gmra.mrb[0].mxu0 %vm782_vm1, %v781_v46  ;;  %v1526_v58 = vmul.f32 %v4632_v53, %v4625_v44  ;;  %3441 = vmatprep.subr.bf16.mxu1 %v4306_v18  ;;  %v3754_v5 = vpop.eup %3753  ;;  %v919_v46 = vld [vmem:[%s711_s28] sm:$0xff] }
  0xbc   : > { %5927 = vst [vmem:[#allocation4_spill] sm:$0xff] %v4634_v55  ;;  %v4637_v56 = vpop.permute.xlu0 %1446  ;;  %v1701_v0 = vmul.f32 1.442695, %v1525_v57  ;;  %v1705_v3 = vmul.f32 1.442695, %v1527_v59  ;;  %v1529_v4 = vmul.f32 %v4632_v53, %v4634_v55  ;;  %v3756_v8 = vpop.eup %3755  ;;  %v3445_v17 = vpack.c.bf16 %v3754_v5, %v3752_v63 }
  0xbd   : > { %v4645_v61 = vsub.f32 0.0, %v1324_v52  ;;  %v1703_v2 = vmul.f32 1.442695, %v1526_v58  ;;  %v1252_v6 = vpop.permute.xlu1 %1251  ;;  %v3758_v12 = vpop.eup %3757 }
  0xbe   : > { %3443 = vmatpush3.bf16.msra.mxu1 %v3442_v62  ;;  %v1311_v9 = vsub.f32 %v1252_v6, %v4611_v19  ;;  %3759 = vpow2.f32 %v1701_v0  ;;  %v1709_v11 = vmul.f32 1.442695, %v1529_v4  ;;  %v3448_v26 = vpack.c.bf16 %v3758_v12, %v3756_v8 }
  0xbf   : > { %v1528_v7 = vmul.f32 %v4632_v53, %v4645_v61  ;;  %3444 = vmatprep.subr.bf16.mxu1 %v4306_v18  ;;  %3761 = vpow2.f32 %v1703_v2 }
  0xc0   : > { %v1247_v10 = vpop.permute.xlu0 %1246  ;;  %v1327_v16 = vmul.f32 %v1311_v9, %v1311_v9  ;;  %3763 = vpow2.f32 %v1705_v3 }
  0xc1   : > { %v1310_v13 = vsub.f32 %v1247_v10, %v4611_v19  ;;  %v1707_v15 = vmul.f32 1.442695, %v1528_v7  ;;  %v1262_v21 = vpop.permute.xlu1 %1261 }
  0xc2   : > { %v4656_v22 = vsub.f32 0.0, %v1327_v16  ;;  %3446 = vmatpush3.bf16.msra.mxu1 %v3445_v17  ;;  %v1313_v25 = vsub.f32 %v1262_v21, %v4611_v19 }
  0xc3   : > { %v1326_v20 = vmul.f32 %v1310_v13, %v1310_v13  ;;  %3765 = vpow2.f32 %v1707_v15  ;;  %3447 = vmatprep.subr.bf16.mxu1 %v4306_v18 }
  0xc4   : > { %5928 = vst [vmem:[#allocation5_spill] sm:$0xff] %v4656_v22  ;;  %v4659_v27 = vpop.permute.xlu0 %1454  ;;  %3767 = vpow2.f32 %v1709_v11  ;;  %v1329_v33 = vmul.f32 %v1313_v25, %v1313_v25  ;;  %v1531_v36 = vmul.f32 %v4632_v53, %v4656_v22 }
  0xc5   : > { %v4661_v28 = vsub.f32 0.0, %v1326_v20  ;;  %v1509_v29 = vmul.f32 %v4659_v27, %v4628_v48  ;;  %v1510_v31 = vmul.f32 %v4659_v27, %v4625_v44  ;;  %v1511_v32 = vmul.f32 %v4659_v27, %v4630_v49  ;;  %v1272_v37 = vpop.permute.xlu1 %1271 }
  0xc6   : > { %v1512_v34 = vmul.f32 %v4659_v27, %v4645_v61  ;;  %v1513_v35 = vmul.f32 %v4659_v27, %v4634_v55  ;;  %v4681_v42 = vsub.f32 0.0, %v1329_v33  ;;  %3449 = vmatpush3.bf16.msra.mxu1 %v3448_v26  ;;  %v1315_v43 = vsub.f32 %v1272_v37, %v4611_v19 }
  0xc7   : > { %5929 = vst [vmem:[#allocation6_spill] sm:$0xff] %v4661_v28  ;;  %v1669_v38 = vmul.f32 1.442695, %v1509_v29  ;;  %v1671_v39 = vmul.f32 1.442695, %v1510_v31  ;;  %v1530_v41 = vmul.f32 %v4632_v53, %v4661_v28  ;;  %v1514_v50 = vmul.f32 %v4659_v27, %v4661_v28 }
  0xc8   : > { %v1673_v40 = vmul.f32 1.442695, %v1511_v32  ;;  %5931 = vst [vmem:[#allocation7_spill] sm:$0xff] %v4681_v42  ;;  %v1257_v45 = vpop.permute.xlu0 %1256  ;;  %v1675_v47 = vmul.f32 1.442695, %v1512_v34  ;;  %v3760_v54 = vpop.eup %3759  ;;  %v1331_v57 = vmul.f32 %v1315_v43, %v1315_v43  ;;  %v1515_v2 = vmul.f32 %v4659_v27, %v4656_v22 }
  0xc9   : > { %v1312_v51 = vsub.f32 %v1257_v45, %v4611_v19  ;;  %3769 = vpow2.f32 %v1669_v38  ;;  %v1711_v52 = vmul.f32 1.442695, %v1530_v41  ;;  %v1677_v58 = vmul.f32 1.442695, %v1513_v35  ;;  %v3762_v62 = vpop.eup %3761  ;;  %3421 = vmatmul.mubr.msk.f32.vlgmr.msra.gmra.mrb[0].mxu1 %vm920_vm2, %v919_v46  ;;  %v1282_v0 = vpop.permute.xlu1 %1281 }
  0xca   : > { %3771 = vpow2.f32 %v1671_v39  ;;  %v1679_v59 = vmul.f32 1.442695, %v1514_v50  ;;  %v1533_v3 = vmul.f32 %v4632_v53, %v4681_v42  ;;  %v4692_v4 = vpop.eup %3763  ;;  %v1317_v5 = vsub.f32 %v1282_v0, %v4611_v19 }
  0xcb   : > { %v1328_v63 = vmul.f32 %v1312_v51, %v1312_v51  ;;  %3773 = vpow2.f32 %v1673_v40  ;;  %v3485_v7 = vpack.c.bf16 %v3762_v62, %v3760_v54  ;;  %v1713_v8 = vmul.f32 1.442695, %v1531_v36 }
  0xcc   : > { %v1267_v6 = vpop.permute.xlu0 %1266  ;;  %3775 = vpow2.f32 %v1675_v47  ;;  %v1681_v12 = vmul.f32 1.442695, %v1515_v2  ;;  %v4700_v15 = vsub.f32 0.0, %v1331_v57  ;;  %v1333_v16 = vmul.f32 %v1317_v5, %v1317_v5 }
  0xcd   : > { %v3766_v9 = vpop.eup %3765  ;;  %v4695_v10 = vsub.f32 0.0, %v1328_v63  ;;  %v1314_v11 = vsub.f32 %v1267_v6, %v4611_v19  ;;  %3777 = vpow2.f32 %v1711_v52  ;;  %3486 = vmatprep.subr.bf16.mxu1 %v3485_v7  ;;  %v1717_v17 = vmul.f32 1.442695, %v1533_v3  ;;  %v1292_v21 = vpop.permute.xlu1 %1291 }
  0xce   : > { %v4698_v13 = vpop.eup %3767  ;;  %5933 = vst [vmem:[#allocation9_spill] sm:$0xff] %v4700_v15  ;;  %3779 = vpow2.f32 %v1677_v58  ;;  %v1319_v29 = vsub.f32 %v1292_v21, %v4611_v19  ;;  %v3489_v32 = vpack.c.bf16 %v3766_v9, %v4692_v4  ;;  %v1517_v33 = vmul.f32 %v4659_v27, %v4681_v42 }
  0xcf   : > { %5932 = vst [vmem:[#allocation8_spill] sm:$0xff] %v4695_v10  ;;  %v1330_v20 = vmul.f32 %v1314_v11, %v1314_v11  ;;  %3781 = vpow2.f32 %v1679_v59  ;;  %v1532_v25 = vmul.f32 %v4632_v53, %v4695_v10  ;;  %v1516_v26 = vmul.f32 %v4659_v27, %v4695_v10 }
  0xd0   : > { %v1277_v31 = vpop.permute.xlu0 %1276  ;;  %3783 = vpow2.f32 %v1713_v8  ;;  %v1335_v37 = vmul.f32 %v1319_v29, %v1319_v29  ;;  %v1685_v39 = vmul.f32 1.442695, %v1517_v33  ;;  %v4717_v47 = vsub.f32 0.0, %v1333_v16 }
  0xd1   : > { %v4710_v34 = vsub.f32 0.0, %v1330_v20  ;;  %v1316_v35 = vsub.f32 %v1277_v31, %v4611_v19  ;;  %v1715_v36 = vmul.f32 1.442695, %v1532_v25  ;;  %3785 = vpow2.f32 %v1681_v12  ;;  %v4728_v5 = vpop.permute.xlu1 %1466 }
  0xd2   : > { %v1683_v38 = vmul.f32 1.442695, %v1516_v26  ;;  %3787 = vpow2.f32 %v1717_v17  ;;  %5935 = vst [vmem:[#allocation11_spill] sm:$0xff] %v4717_v47  ;;  %v1535_v51 = vmul.f32 %v4632_v53, %v4700_v15  ;;  %v1519_v52 = vmul.f32 %v4659_v27, %v4700_v15 }
  0xd3   : > { %5934 = vst [vmem:[#allocation10_spill] sm:$0xff] %v4710_v34  ;;  %v3770_v40 = vpop.eup %3769  ;;  %v1332_v41 = vmul.f32 %v1316_v35, %v1316_v35  ;;  %3789 = vpow2.f32 %v1715_v36  ;;  %v1534_v43 = vmul.f32 %v4632_v53, %v4710_v34  ;;  %v1518_v45 = vmul.f32 %v4659_v27, %v4710_v34 }
  0xd4   : > { %v3772_v46 = vpop.eup %3771  ;;  %v1287_v50 = vpop.permute.xlu0 %1286  ;;  %3791 = vpow2.f32 %v1683_v38  ;;  %v4726_v0 = vsub.f32 0.0, %v1335_v37  ;;  %v1721_v3 = vmul.f32 1.442695, %v1535_v51  ;;  %v1689_v8 = vmul.f32 1.442695, %v1519_v52 }
  0xd5   : > { %v3774_v54 = vpop.eup %3773  ;;  %v4723_v57 = vsub.f32 0.0, %v1332_v41  ;;  %v1318_v58 = vsub.f32 %v1287_v50, %v4611_v19  ;;  %v3487_v59 = vpack.c.bf16 %v3772_v46, %v3770_v40  ;;  %v1719_v62 = vmul.f32 1.442695, %v1534_v43 }
  0xd6   : > { %v3776_v63 = vpop.eup %3775  ;;  %5937 = vst [vmem:[#allocation13_spill] sm:$0xff] %v4726_v0  ;;  %3793 = vpow2.f32 %v1685_v39  ;;  %v1687_v2 = vmul.f32 1.442695, %v1518_v45  ;;  %v1537_v17 = vmul.f32 %v4632_v53, %v4717_v47  ;;  %v1521_v39 = vmul.f32 %v4659_v27, %v4717_v47  ;;  %v4750_v45 = vpop.permute.xlu1 %1474 }
  0xd7   : > { %5936 = vst [vmem:[#allocation12_spill] sm:$0xff] %v4723_v57  ;;  %v3778_v4 = vpop.eup %3777  ;;  %v1334_v6 = vmul.f32 %v1318_v58, %v1318_v58  ;;  %3488 = vmatpush3.bf16.msra.mxu1 %v3487_v59  ;;  %3795 = vpow2.f32 %v1719_v62  ;;  %v1536_v7 = vmul.f32 %v4632_v53, %v4723_v57  ;;  %v3491_v12 = vpack.c.bf16 %v3776_v63, %v3774_v54 }
  0xd8   : > { %v3780_v9 = vpop.eup %3779  ;;  %3490 = vmatprep.subr.bf16.mxu1 %v3489_v32  ;;  %v1297_v11 = vpop.permute.xlu0 %1296  ;;  %3797 = vpow2.f32 %v1687_v2  ;;  %v1520_v16 = vmul.f32 %v4659_v27, %v4723_v57  ;;  %v3493_v26 = vpack.c.bf16 %v3778_v4, %v4698_v13  ;;  %v1725_v35 = vmul.f32 1.442695, %v1537_v17 }
  0xd9   : > { %v3782_v20 = vpop.eup %3781  ;;  %v4736_v21 = vsub.f32 0.0, %v1334_v6  ;;  %v1320_v25 = vsub.f32 %v1297_v11, %v4611_v19  ;;  %v1723_v29 = vmul.f32 1.442695, %v1536_v7  ;;  %3799 = vpow2.f32 %v1721_v3 }
  0xda   : > { %v3784_v31 = vpop.eup %3783  ;;  %v3495_v33 = vpack.c.bf16 %v3782_v20, %v3780_v9  ;;  %v1691_v32 = vmul.f32 1.442695, %v1520_v16  ;;  %v1539_v13 = vmul.f32 %v4632_v53, %v4726_v0  ;;  %v1523_v41 = vmul.f32 %v4659_v27, %v4726_v0 }
  0xdb   : > { %5938 = vst [vmem:[#allocation14_spill] sm:$0xff] %v4736_v21  ;;  %v3786_v36 = vpop.eup %3785  ;;  %v1336_v37 = vmul.f32 %v1320_v25, %v1320_v25  ;;  %3492 = vmatpush3.bf16.msra.mxu1 %v3491_v12  ;;  %3801 = vpow2.f32 %v1723_v29  ;;  %v1538_v38 = vmul.f32 %v4632_v53, %v4736_v21  ;;  %v1522_v19 = vmul.f32 %v4659_v27, %v4736_v21 }
  0xdc   : > { %v3788_v40 = vpop.eup %3787  ;;  %3494 = vmatprep.subr.bf16.mxu1 %v3493_v26  ;;  %3803 = vpow2.f32 %v1691_v32  ;;  %v1693_v51 = vmul.f32 1.442695, %v1521_v39  ;;  %v1729_v59 = vmul.f32 1.442695, %v1539_v13  ;;  %v1697_v3 = vmul.f32 1.442695, %v1523_v41 }
  0xdd   : > { %v3790_v43 = vpop.eup %3789  ;;  %v4752_v46 = vsub.f32 0.0, %v1336_v37  ;;  %3805 = vpow2.f32 %v1689_v8  ;;  %v1727_v50 = vmul.f32 1.442695, %v1538_v38  ;;  %v1695_v58 = vmul.f32 1.442695, %v1522_v19 }
  0xde   : > { %v3792_v52 = vpop.eup %3791  ;;  %v3497_v54 = vpack.c.bf16 %v3790_v43, %v3784_v31  ;;  %3807 = vpow2.f32 %v1725_v35  ;;  %v1589_v4 = vmul.f32 %v4750_v45, %v4628_v48  ;;  %v1590_v6 = vmul.f32 %v4750_v45, %v4625_v44 }
  0xdf   : > { %5939 = vst [vmem:[#allocation15_spill] sm:$0xff] %v4752_v46  ;;  %3496 = vmatpush3.bf16.msra.mxu1 %v3495_v33  ;;  %3809 = vpow2.f32 %v1727_v50  ;;  %v1540_v62 = vmul.f32 %v4632_v53, %v4752_v46  ;;  %v1524_v63 = vmul.f32 %v4659_v27, %v4752_v46  ;;  %v3499_v8 = vpack.c.bf16 %v3792_v52, %v3786_v36 }
  0xe0   : > { %v3794_v2 = vpop.eup %3793  ;;  %3498 = vmatprep.subr.bf16.mxu1 %v3497_v54  ;;  %3811 = vpow2.f32 %v1693_v51  ;;  %v1829_v16 = vmul.f32 1.442695, %v1589_v4  ;;  %v1831_v27 = vmul.f32 1.442695, %v1590_v6 }
  0xe1   : > { %v3796_v7 = vpop.eup %3795  ;;  %3813 = vpow2.f32 %v1695_v58  ;;  %v1731_v9 = vmul.f32 1.442695, %v1540_v62  ;;  %v1699_v11 = vmul.f32 1.442695, %v1524_v63  ;;  %v1024_v58 = vld [vmem:[%s5868_s9] sm:$0xff]  ;;  %v1000_v62 = vlaneseq }
  0xe2   : > { %v3798_v12 = vpop.eup %3797  ;;  %v3501_v53 = vpack.c.bf16 %v3796_v7, %v3788_v40  ;;  %3815 = vpow2.f32 %v1729_v59  ;;  %3425 = vmatprep.mubr.msk.f32.mxu0 %vm1038_vm3, %v1024_v58  ;;  %v1500_v58 = vmul.f32 %v4617_v30, %v4695_v10 }
  0xe3   : > { %3500 = vmatpush3.bf16.msra.mxu1 %v3499_v8  ;;  %3817 = vpow2.f32 %v1731_v9  ;;  %v3800_v17 = vpop.eup %3799  ;;  %v3503_v25 = vpack.c.bf16 %v3798_v12, %v3794_v2 }
  0xe4   : > { %3502 = vmatprep.subr.bf16.mxu1 %v3501_v53  ;;  %3819 = vpow2.f32 %v1697_v3  ;;  %v1001_v3 = vshrl.u32 %v1000_v62, 7  ;;  %v1499_v62 = vmul.f32 %v4617_v30, %v4656_v22 }
  0xe5   : > { %v3802_v20 = vpop.eup %3801  ;;  %3821 = vpow2.f32 %v1699_v11 }
  0xe6   : > { %v3804_v26 = vpop.eup %3803  ;;  %v3505_v29 = vpack.c.bf16 %v3802_v20, %v3800_v17  ;;  %3823 = vpow2.f32 %v1829_v16  ;;  %v1002_v4 = vsub.s32 0, %v1001_v3  ;;  %v1483_v3 = vmul.f32 %v4637_v56, %v4656_v22 }
  0xe7   : > { %v3806_v31 = vpop.eup %3805  ;;  %3504 = vmatpush3.bf16.msra.mxu1 %v3503_v25  ;;  %3825 = vpow2.f32 %v1831_v27 }
  0xe8   : > { %v3808_v33 = vpop.eup %3807  ;;  %3506 = vmatprep.subr.bf16.mxu1 %v3505_v29  ;;  %v3507_v35 = vpack.c.bf16 %v3804_v26, %v3806_v31  ;;  %v1025_v29 = vld [vmem:[%s5868_s9 + $0x8] sm:$0xff]  ;;  %v1477_v31 = vmul.f32 %v4637_v56, %v4628_v48 }
  0xe9   : > { %v3810_v32 = vpop.eup %3809 }
  0xea   : > { %v3812_v36 = vpop.eup %3811  ;;  %v3509_v37 = vpack.c.bf16 %v3810_v32, %v3808_v33  ;;  %v1478_v33 = vmul.f32 %v4637_v56, %v4625_v44 }
  0xeb   : > { %v3814_v38 = vpop.eup %3813  ;;  %3508 = vmatpush3.bf16.msra.mxu1 %v3507_v35  ;;  %v1496_v35 = vmul.f32 %v4617_v30, %v4645_v61 }
  0xec   : > { %v3816_v39 = vpop.eup %3815  ;;  %3510 = vmatprep.subr.bf16.mxu1 %v3509_v37  ;;  %v3511_v19 = vpack.c.bf16 %v3814_v38, %v3812_v36  ;;  %v1605_v36 = vmul.f32 1.442695, %v1477_v31  ;;  %v1479_v37 = vmul.f32 %v4637_v56, %v4630_v49  ;;  %v1607_v38 = vmul.f32 1.442695, %v1478_v33 }
  0xed   : > { %v3818_v40 = vpop.eup %3817  ;;  %v1504_v33 = vmul.f32 %v4617_v30, %v4723_v57 }
  0xee   : > { %v3820_v13 = vpop.eup %3819  ;;  %v3513_v41 = vpack.c.bf16 %v3818_v40, %v3816_v39  ;;  %v1480_v39 = vmul.f32 %v4637_v56, %v4645_v61  ;;  %v1643_v40 = vmul.f32 1.442695, %v1496_v35 }
  0xef   : > { %v3822_v43 = vpop.eup %3821  ;;  %3512 = vmatpush3.bf16.msra.mxu1 %v3511_v19  ;;  %v1498_v19 = vmul.f32 %v4617_v30, %v4661_v28 }
  0xf0   : > { %v3824_v50 = vpop.eup %3823  ;;  %3514 = vmatprep.subr.bf16.mxu1 %v3513_v41  ;;  %v3515_v52 = vpack.c.bf16 %v3822_v43, %v3820_v13  ;;  %v1497_v41 = vmul.f32 %v4617_v30, %v4634_v55  ;;  %v1609_v43 = vmul.f32 1.442695, %v1479_v37  ;;  %v1122_v37 = vld [vmem:[%s5870_s11] sm:$0xff] }
  0xf1   : > { %v3826_v51 = vpop.eup %3825 }
  0xf2   : > { %v3549_v54 = vpack.c.bf16 %v3826_v51, %v3824_v50  ;;  %v1481_v50 = vmul.f32 %v4637_v56, %v4634_v55  ;;  %v1611_v51 = vmul.f32 1.442695, %v1480_v39  ;;  %v1487_v39 = vmul.f32 %v4637_v56, %v4700_v15 }
  0xf3   : > { %3516 = vmatpush3.bf16.msra.mxu1 %v3515_v52  ;;  %v1482_v52 = vmul.f32 %v4637_v56, %v4661_v28 }
  0xf4   : > { %3550 = vmatprep.subr.bf16.mxu1 %v3549_v54  ;;  %v1647_v54 = vmul.f32 1.442695, %v1498_v19 }
 0x18e   : > { %v852_v59 = vpop.f32.mrb[0].mxu0 }
 0x18f   : > { %v856_v63 = vadd.f32 1e-08, %v852_v59  ;;  %v3403_v2 = vpop.f32.mrb[1].mxu0  ;;  %v1003_v6 = vrot.slane %v852_v59, %v1002_v4  ;;  %v1645_v59 = vmul.f32 1.442695, %v1497_v41 }
 0x190   : > { %v1613_v2 = vmul.f32 1.442695, %v1481_v50  ;;  %v1659_v50 = vmul.f32 1.442695, %v1504_v33 }
 0x191   : > { %3827 = vrcp.f32 %v856_v63  ;;  %v1004_v11 = vmul.f32 %v1003_v6, %v4601_v60  ;;  %v1494_v60 = vmul.f32 %v4617_v30, %v4625_v44 }
 0x193   : > { %v1639_v32 = vmul.f32 1.442695, %v1494_v60 }
 0x19b   : > { %v3828_v7 = vpop.eup %3827 }
 0x19c   : > { %v1008_v8 = vrot.slane %v3828_v7, %v1002_v4  ;;  %v990_v9 = vpop.f32.mrb[0].mxu1  ;;  %v1615_v7 = vmul.f32 1.442695, %v1482_v52 }
 0x19d   : > { %v3422_v53 = vpop.f32.mrb[1].mxu1 }
 0x19e   : > { %v1009_v12 = vmul.f32 %v1008_v8, %v990_v9  ;;  %v1484_v8 = vmul.f32 %v4637_v56, %v4695_v10 }
 0x1a0   : > { %v1010_v16 = vadd.f32 %v1009_v12, %v1004_v11  ;;  %v1651_v11 = vmul.f32 1.442695, %v1500_v58  ;;  %v1502_v12 = vmul.f32 %v4617_v30, %v4710_v34 }
 0x1a2   : > { %v1017_v27 = vadd.f32 %v4609_v14, %v1010_v16  ;;  %v1493_v14 = vmul.f32 %v4617_v30, %v4628_v48  ;;  %v1649_v16 = vmul.f32 1.442695, %v1499_v62  ;;  %v1655_v31 = vmul.f32 1.442695, %v1502_v12 }
 0x1a4   : > { %v3075_v17 = vmul.f32 -1.442695, %v1017_v27  ;;  %v1501_v27 = vmul.f32 %v4617_v30, %v4681_v42 }
 0x1a6   : > { %3829 = vpow2.f32 %v3075_v17 }
 0x1b0   : > { %v3830_v20 = vpop.eup %3829 }
 0x1b1   : > { %v1021_v25 = vadd.f32 1.0, %v3830_v20  ;;  %v1617_v20 = vmul.f32 1.442695, %v1483_v3 }
 0x1b3   : > { %3831 = vrcp.f32 %v1021_v25  ;;  %v1485_v25 = vmul.f32 %v4637_v56, %v4681_v42 }
 0x1b4   : > { %3833 = vpow2.f32 %v1639_v32 }
 0x1bd   : > { %v3832_v26 = vpop.eup %3831 }
 0x1be   : > { %3423 = vmatprep.subr.mxu0 %v3832_v26 }
 0x1bf   : > { %3424 = vmatpush3.msra.mxu0 %v3832_v26 }
 0x1c0   : > { %3426 = vmatmul.mubr.msk.f32.vlgmr.msra.gmra.mrb[2].mxu0 %vm1038_vm3, %v1025_v29  ;;  %3450 = vmatprep.subr.bf16.mxu0 %v4306_v18  ;;  %v1637_v18 = vmul.f32 1.442695, %v1493_v14  ;;  %v1486_v29 = vmul.f32 %v4637_v56, %v4710_v34 }
 0x1c1   : > { %3432 = vmatprep.mubr.msk.f32.mxu0 %vm4308_vm0, %v4307_v23  ;;  %v1495_v23 = vmul.f32 %v4617_v30, %v4630_v49 }
 0x1c2   : > { %3835 = vpow2.f32 %v1637_v18  ;;  %v1653_v18 = vmul.f32 1.442695, %v1501_v27  ;;  %v1623_v19 = vmul.f32 1.442695, %v1486_v29  ;;  %v1507_v27 = vmul.f32 %v4617_v30, %v4726_v0 }
 0x1c3   : > { %v1641_v13 = vmul.f32 1.442695, %v1495_v23  ;;  %3837 = vpow2.f32 %v1605_v36  ;;  %v1503_v23 = vmul.f32 %v4617_v30, %v4700_v15 }
 0x1c4   : > { %3839 = vpow2.f32 %v1607_v38  ;;  %v1621_v38 = vmul.f32 1.442695, %v1485_v25 }
 0x1c5   : > { %3841 = vpow2.f32 %v1643_v40  ;;  %v1657_v58 = vmul.f32 1.442695, %v1503_v23 }
 0x1c6   : > { %3843 = vpow2.f32 %v1641_v13  ;;  %v1488_v13 = vmul.f32 %v4637_v56, %v4723_v57 }
 0x1c7   : > { %3845 = vpow2.f32 %v1609_v43 }
 0x1c8   : > { %3847 = vpow2.f32 %v1611_v51  ;;  %v1506_v51 = vmul.f32 %v4617_v30, %v4736_v21 }
 0x1c9   : > { %3849 = vpow2.f32 %v1647_v54 }
 0x1ca   : > { %3851 = vpow2.f32 %v1645_v59  ;;  %v1505_v59 = vmul.f32 %v4617_v30, %v4717_v47 }
 0x1cb   : > { %3853 = vpow2.f32 %v1613_v2  ;;  %v1489_v2 = vmul.f32 %v4637_v56, %v4717_v47 }
 0x1cc   : > { %3855 = vpow2.f32 %v1615_v7 }
 0x1cd   : > { %3857 = vpow2.f32 %v1651_v11  ;;  %v1508_v11 = vmul.f32 %v4617_v30, %v4752_v46  ;;  %v1558_v30 = vmul.f32 %v4728_v5, %v4625_v44 }
 0x1ce   : > { %3859 = vpow2.f32 %v1649_v16  ;;  %v1661_v16 = vmul.f32 1.442695, %v1505_v59 }
 0x1cf   : > { %3861 = vpow2.f32 %v1617_v20  ;;  %v1492_v20 = vmul.f32 %v4637_v56, %v4752_v46 }
 0x1d1   : > { %v1635_v23 = vmul.f32 1.442695, %v1492_v20 }
 0x293   : > { %v3427_v63 = vpop.f32.mrb[2].mxu0 }
 0x294   : > { %v1117_v4 = vadd.f32 %v3427_v63, %v4613_v24  ;;  %v1111_v6 = vpop.f32.mrb[3].mxu0  ;;  %v3834_v24 = vpop.eup %3833  ;;  %v1625_v63 = vmul.f32 1.442695, %v1487_v39 }
 0x295   : > { %v1112_v9 = vadd.f32 %v1111_v6, %v4603_v1  ;;  %v3836_v26 = vpop.eup %3835  ;;  %v1619_v1 = vmul.f32 1.442695, %v1484_v8  ;;  %v1490_v6 = vmul.f32 %v4637_v56, %v4736_v21 }
 0x296   : > { %v1121_v53 = vmax.f32 %v1117_v4, 0.0  ;;  %v3838_v60 = vpop.eup %3837  ;;  %v3453_v35 = vpack.c.bf16 %v3834_v24, %v3836_v26  ;;  %v1627_v4 = vmul.f32 1.442695, %v1488_v13 }
 0x297   : > { %v1120_v17 = vmax.f32 %v1112_v9, 0.0  ;;  %v3840_v32 = vpop.eup %3839  ;;  %3863 = vpow2.f32 %v1619_v1  ;;  %v1663_v9 = vmul.f32 1.442695, %v1506_v51  ;;  %v1631_v26 = vmul.f32 1.442695, %v1490_v6 }
 0x298   : > { %v3842_v36 = vpop.eup %3841  ;;  %v3455_v43 = vpack.c.bf16 %v3840_v32, %v3838_v60  ;;  %3865 = vpow2.f32 %v1655_v31  ;;  %v1557_v1 = vmul.f32 %v4728_v5, %v4628_v48  ;;  %v1665_v32 = vmul.f32 1.442695, %v1507_v27 }
 0x299   : > { %v3451_v14 = vpack.c.bf16 %v1121_v53, %v1120_v17  ;;  %v3844_v40 = vpop.eup %3843  ;;  %3867 = vpow2.f32 %v1653_v18  ;;  %v1629_v17 = vmul.f32 1.442695, %v1489_v2 }
 0x29a   : > { %v3846_v41 = vpop.eup %3845  ;;  %v3457_v54 = vpack.c.bf16 %v3842_v36, %v3844_v40  ;;  %3869 = vpow2.f32 %v1621_v38  ;;  %v1767_v40 = vmul.f32 1.442695, %v1558_v30  ;;  %v1560_v30 = vmul.f32 %v4728_v5, %v4645_v61 }
 0x29b   : > { %3452 = vmatpush3.bf16.msra.mxu0 %v3451_v14  ;;  %v3848_v52 = vpop.eup %3847  ;;  %3871 = vpow2.f32 %v1623_v19  ;;  %v1667_v14 = vmul.f32 1.442695, %v1508_v11 }
 0x29c   : > { %3454 = vmatprep.subr.bf16.mxu0 %v3453_v35  ;;  %v3850_v62 = vpop.eup %3849  ;;  %v3459_v8 = vpack.c.bf16 %v3848_v52, %v3846_v41  ;;  %3873 = vpow2.f32 %v1659_v50  ;;  %v1491_v35 = vmul.f32 %v4637_v56, %v4726_v0 }
 0x29d   : > { %v3852_v3 = vpop.eup %3851  ;;  %3875 = vpow2.f32 %v1657_v58 }
 0x29e   : > { %3433 = vmatmul.mubr.msk.f32.vlgmr.msra.gmra.mrb[4].mxu0 %vm782_vm1, %v1122_v37  ;;  %v3854_v7 = vpop.eup %3853  ;;  %v3461_v53 = vpack.c.bf16 %v3850_v62, %v3852_v3  ;;  %3877 = vpow2.f32 %v1625_v63  ;;  %v1765_v37 = vmul.f32 1.442695, %v1557_v1  ;;  %v1633_v41 = vmul.f32 1.442695, %v1491_v35 }
 0x29f   : > { %3456 = vmatpush3.bf16.msra.mxu0 %v3455_v43  ;;  %v3856_v12 = vpop.eup %3855  ;;  %3879 = vpow2.f32 %v1627_v4  ;;  %v1592_v35 = vmul.f32 %v4750_v45, %v4645_v61 }
 0x2a0   : > { %3458 = vmatprep.subr.bf16.mxu0 %v3457_v54  ;;  %v3858_v24 = vpop.eup %3857  ;;  %v3463_v60 = vpack.c.bf16 %v3856_v12, %v3854_v7  ;;  %3881 = vpow2.f32 %v1663_v9 }
 0x2a1   : > { %v3860_v25 = vpop.eup %3859  ;;  %3883 = vpow2.f32 %v1661_v16 }
 0x2a2   : > { %v3862_v29 = vpop.eup %3861  ;;  %v3465_v33 = vpack.c.bf16 %v3858_v24, %v3860_v25  ;;  %3885 = vpow2.f32 %v1629_v17  ;;  %v4849_v24 = vpop.permute.xlu0 %1462 }
 0x2a3   : > { %3460 = vmatpush3.bf16.msra.mxu0 %v3459_v8  ;;  %v3864_v31 = vpop.eup %3863  ;;  %3887 = vpow2.f32 %v1631_v26  ;;  %v1541_v20 = vmul.f32 %v4849_v24, %v4628_v48  ;;  %v1542_v25 = vmul.f32 %v4849_v24, %v4625_v44 }
 0x2a4   : > { %3462 = vmatprep.subr.bf16.mxu0 %v3461_v53  ;;  %v3866_v18 = vpop.eup %3865  ;;  %v3467_v39 = vpack.c.bf16 %v3864_v31, %v3862_v29  ;;  %3889 = vpow2.f32 %v1667_v14 }
 0x2a5   : > { %v3868_v36 = vpop.eup %3867  ;;  %3891 = vpow2.f32 %v1665_v32  ;;  %v1733_v29 = vmul.f32 1.442695, %v1541_v20  ;;  %v1735_v14 = vmul.f32 1.442695, %v1542_v25 }
 0x2a6   : > { %v3870_v38 = vpop.eup %3869  ;;  %v3469_v13 = vpack.c.bf16 %v3866_v18, %v3868_v36  ;;  %3893 = vpow2.f32 %v1635_v23  ;;  %v4851_v17 = vpop.permute.xlu0 %1470  ;;  %v1543_v23 = vmul.f32 %v4849_v24, %v4630_v49  ;;  %v1771_v36 = vmul.f32 1.442695, %v1560_v30 }
 0x2a7   : > { %3464 = vmatpush3.bf16.msra.mxu0 %v3463_v60  ;;  %v3872_v19 = vpop.eup %3871  ;;  %3895 = vpow2.f32 %v1765_v37  ;;  %v1573_v26 = vmul.f32 %v4851_v17, %v4628_v48  ;;  %v1574_v1 = vmul.f32 %v4851_v17, %v4625_v44  ;;  %v1559_v60 = vmul.f32 %v4728_v5, %v4630_v49 }
 0x2a8   : > { %3466 = vmatprep.subr.bf16.mxu0 %v3465_v33  ;;  %v3874_v43 = vpop.eup %3873  ;;  %v3471_v51 = vpack.c.bf16 %v3872_v19, %v3870_v38  ;;  %3897 = vpow2.f32 %v1767_v40  ;;  %v1591_v33 = vmul.f32 %v4750_v45, %v4630_v49  ;;  %v1544_v37 = vmul.f32 %v4849_v24, %v4645_v61 }
 0x2a9   : > { %v3876_v56 = vpop.eup %3875  ;;  %3899 = vpow2.f32 %v1633_v41  ;;  %v1797_v31 = vmul.f32 1.442695, %v1573_v26  ;;  %v1799_v32 = vmul.f32 1.442695, %v1574_v1  ;;  %v1769_v18 = vmul.f32 1.442695, %v1559_v60 }
 0x2aa   : > { %v3878_v50 = vpop.eup %3877  ;;  %v3473_v54 = vpack.c.bf16 %v3874_v43, %v3876_v56  ;;  %3901 = vpow2.f32 %v1733_v29  ;;  %v1833_v38 = vmul.f32 1.442695, %v1591_v33  ;;  %v1835_v40 = vmul.f32 1.442695, %v1592_v35 }
 0x2ab   : > { %3468 = vmatpush3.bf16.msra.mxu0 %v3467_v39  ;;  %v3880_v52 = vpop.eup %3879  ;;  %3903 = vpow2.f32 %v1735_v14  ;;  %v1575_v39 = vmul.f32 %v4851_v17, %v4630_v49  ;;  %v1576_v19 = vmul.f32 %v4851_v17, %v4645_v61  ;;  %v1561_v41 = vmul.f32 %v4728_v5, %v4634_v55 }
 0x2ac   : > { %3470 = vmatprep.subr.bf16.mxu0 %v3469_v13  ;;  %v3882_v58 = vpop.eup %3881  ;;  %v3475_v63 = vpack.c.bf16 %v3880_v52, %v3878_v50  ;;  %3905 = vpow2.f32 %v1797_v31  ;;  %v1737_v13 = vmul.f32 1.442695, %v1543_v23  ;;  %v1739_v43 = vmul.f32 1.442695, %v1544_v37 }
 0x2ad   : > { %v3884_v59 = vpop.eup %3883  ;;  %3907 = vpow2.f32 %v1799_v32  ;;  %v1562_v56 = vmul.f32 %v4728_v5, %v4661_v28  ;;  %v1801_v50 = vmul.f32 1.442695, %v1575_v39  ;;  %v1803_v52 = vmul.f32 1.442695, %v1576_v19 }
 0x2ae   : > { %v3886_v62 = vpop.eup %3885  ;;  %v3477_v3 = vpack.c.bf16 %v3882_v58, %v3884_v59  ;;  %3909 = vpow2.f32 %v1769_v18  ;;  %v1773_v58 = vmul.f32 1.442695, %v1561_v41  ;;  %v1545_v59 = vmul.f32 %v4849_v24, %v4634_v55 }
 0x2af   : > { %3472 = vmatpush3.bf16.msra.mxu0 %v3471_v51  ;;  %v3888_v2 = vpop.eup %3887  ;;  %3911 = vpow2.f32 %v1771_v36  ;;  %v1593_v51 = vmul.f32 %v4750_v45, %v4634_v55  ;;  %v1595_v26 = vmul.f32 %v4750_v45, %v4656_v22  ;;  %v1596_v60 = vmul.f32 %v4750_v45, %v4695_v10 }
 0x2b0   : > { %3474 = vmatprep.subr.bf16.mxu0 %v3473_v54  ;;  %v3890_v4 = vpop.eup %3889  ;;  %v3479_v8 = vpack.c.bf16 %v3888_v2, %v3886_v62  ;;  %3913 = vpow2.f32 %v1833_v38  ;;  %v1594_v54 = vmul.f32 %v4750_v45, %v4661_v28  ;;  %v1775_v62 = vmul.f32 1.442695, %v1562_v56 }
 0x2b1   : > { %v3892_v6 = vpop.eup %3891  ;;  %3915 = vpow2.f32 %v1835_v40  ;;  %v1547_v31 = vmul.f32 %v4849_v24, %v4656_v22  ;;  %v1548_v35 = vmul.f32 %v4849_v24, %v4695_v10  ;;  %v1841_v23 = vmul.f32 1.442695, %v1595_v26 }
 0x2b2   : > { %v3894_v7 = vpop.eup %3893  ;;  %v3481_v11 = vpack.c.bf16 %v3890_v4, %v3892_v6  ;;  %3917 = vpow2.f32 %v1737_v13  ;;  %v1577_v4 = vmul.f32 %v4851_v17, %v4634_v55  ;;  %v1579_v36 = vmul.f32 %v4851_v17, %v4656_v22 }
 0x2b3   : > { %3476 = vmatpush3.bf16.msra.mxu0 %v3475_v63  ;;  %v3896_v9 = vpop.eup %3895  ;;  %3919 = vpow2.f32 %v1739_v43  ;;  %v1546_v63 = vmul.f32 %v4849_v24, %v4661_v28  ;;  %v1843_v38 = vmul.f32 1.442695, %v1596_v60  ;;  %v1580_v39 = vmul.f32 %v4851_v17, %v4695_v10 }
 0x2b4   : > { %3478 = vmatprep.subr.bf16.mxu0 %v3477_v3  ;;  %v3898_v12 = vpop.eup %3897  ;;  %3921 = vpow2.f32 %v1801_v50  ;;  %v1837_v3 = vmul.f32 1.442695, %v1593_v51  ;;  %v1805_v25 = vmul.f32 1.442695, %v1577_v4  ;;  %v1745_v19 = vmul.f32 1.442695, %v1547_v31 }
 0x2b5   : > { %v3900_v53 = vpop.eup %3899  ;;  %v3517_v27 = vpack.c.bf16 %v3898_v12, %v3896_v9  ;;  %3923 = vpow2.f32 %v1803_v52  ;;  %v1563_v12 = vmul.f32 %v4728_v5, %v4656_v22  ;;  %v1565_v13 = vmul.f32 %v4728_v5, %v4681_v42 }
 0x2b6   : > { %v3483_v16 = vpack.c.bf16 %v3894_v7, %v3900_v53  ;;  %v4889_v2 = vpop.eup %3901  ;;  %v1839_v7 = vmul.f32 1.442695, %v1594_v54  ;;  %3925 = vpow2.f32 %v1773_v58  ;;  %v1747_v43 = vmul.f32 1.442695, %v1548_v35 }
 0x2b7   : > { %3480 = vmatpush3.bf16.msra.mxu0 %v3479_v8  ;;  %v4893_v6 = vpop.eup %3903  ;;  %v1578_v8 = vmul.f32 %v4851_v17, %v4661_v28  ;;  %3927 = vpow2.f32 %v1775_v62  ;;  %v1777_v30 = vmul.f32 1.442695, %v1563_v12  ;;  %v1566_v56 = vmul.f32 %v4728_v5, %v4710_v34 }
 0x2b8   : > { %3482 = vmatprep.subr.bf16.mxu0 %v3481_v11  ;;  %v4897_v9 = vpop.eup %3905  ;;  %v1741_v11 = vmul.f32 1.442695, %v1545_v59  ;;  %3929 = vpow2.f32 %v1837_v3  ;;  %v1809_v51 = vmul.f32 1.442695, %v1579_v36  ;;  %v1597_v52 = vmul.f32 %v4750_v45, %v4681_v42 }
 0x2b9   : > { %v4901_v53 = vpop.eup %3907  ;;  %3931 = vpow2.f32 %v1839_v7  ;;  %v1807_v29 = vmul.f32 1.442695, %v1578_v8  ;;  %v1811_v58 = vmul.f32 1.442695, %v1580_v39  ;;  %v1598_v59 = vmul.f32 %v4750_v45, %v4710_v34 }
 0x2ba   : > { %v4905_v20 = vpop.eup %3909  ;;  %3933 = vpow2.f32 %v1741_v11  ;;  %v1549_v3 = vmul.f32 %v4849_v24, %v4681_v42  ;;  %v1783_v7 = vmul.f32 1.442695, %v1566_v56  ;;  %v1550_v8 = vmul.f32 %v4849_v24, %v4710_v34 }
 0x2bb   : > { %3484 = vmatpush3.bf16.msra.mxu0 %v3483_v16  ;;  %v1743_v16 = vmul.f32 1.442695, %v1546_v63  ;;  %v4909_v1 = vpop.eup %3911  ;;  %v1781_v63 = vmul.f32 1.442695, %v1565_v13  ;;  %v1845_v12 = vmul.f32 1.442695, %v1597_v52  ;;  %v1582_v26 = vmul.f32 %v4851_v17, %v4710_v34 }
 0x2bc   : > { %3518 = vmatprep.subr.bf16.mxu0 %v3517_v27  ;;  %v1564_v27 = vmul.f32 %v4728_v5, %v4695_v10  ;;  %v4913_v14 = vpop.eup %3913  ;;  %v1749_v60 = vmul.f32 1.442695, %v1549_v3  ;;  %v1568_v35 = vmul.f32 %v4728_v5, %v4723_v57  ;;  %v1600_v13 = vmul.f32 %v4750_v45, %v4723_v57 }
 0x2bd   : > { %v4917_v33 = vpop.eup %3915  ;;  %3935 = vpow2.f32 %v1743_v16  ;;  %v1581_v16 = vmul.f32 %v4851_v17, %v4681_v42 }
 0x2be   : > { %v1779_v32 = vmul.f32 1.442695, %v1564_v27  ;;  %v4921_v18 = vpop.eup %3917  ;;  %3937 = vpow2.f32 %v1805_v25  ;;  %v1847_v25 = vmul.f32 1.442695, %v1598_v59  ;;  %v1552_v59 = vmul.f32 %v4849_v24, %v4723_v57 }
 0x2bf   : > { %v4925_v37 = vpop.eup %3919  ;;  %3939 = vpow2.f32 %v1807_v29  ;;  %v1813_v36 = vmul.f32 1.442695, %v1581_v16  ;;  %v1584_v16 = vmul.f32 %v4851_v17, %v4723_v57 }
 0x2c0   : > { %v4929_v40 = vpop.eup %3921  ;;  %3941 = vpow2.f32 %v1777_v30  ;;  %v1567_v30 = vmul.f32 %v4728_v5, %v4700_v15 }
 0x2c1   : > { %v4933_v41 = vpop.eup %3923  ;;  %3943 = vpow2.f32 %v1779_v32  ;;  %v1751_v32 = vmul.f32 1.442695, %v1550_v8 }
 0x2c2   : > { %v4937_v50 = vpop.eup %3925  ;;  %3945 = vpow2.f32 %v1841_v23  ;;  %v1785_v56 = vmul.f32 1.442695, %v1567_v30 }
 0x2c3   : > { %v4941_v54 = vpop.eup %3927  ;;  %3947 = vpow2.f32 %v1843_v38  ;;  %v1599_v38 = vmul.f32 %v4750_v45, %v4700_v15 }
 0x2c4   : > { %v4945_v62 = vpop.eup %3929  ;;  %3949 = vpow2.f32 %v1745_v19  ;;  %v1815_v19 = vmul.f32 1.442695, %v1582_v26 }
 0x2c5   : > { %v4949_v4 = vpop.eup %3931  ;;  %3951 = vpow2.f32 %v1747_v43  ;;  %v1849_v3 = vmul.f32 1.442695, %v1599_v38 }
 0x2c6   : > { %v4953_v11 = vpop.eup %3933  ;;  %3953 = vpow2.f32 %v1809_v51  ;;  %v1551_v51 = vmul.f32 %v4849_v24, %v4700_v15 }
 0x2c7   : > { %v4957_v27 = vpop.eup %3935  ;;  %3955 = vpow2.f32 %v1811_v58  ;;  %v1787_v58 = vmul.f32 1.442695, %v1568_v35  ;;  %v1570_v35 = vmul.f32 %v4728_v5, %v4736_v21 }
 0x2c8   : > { %v4961_v29 = vpop.eup %3937  ;;  %3957 = vpow2.f32 %v1781_v63  ;;  %v1753_v26 = vmul.f32 1.442695, %v1551_v51  ;;  %v1819_v51 = vmul.f32 1.442695, %v1584_v16  ;;  %v1585_v16 = vmul.f32 %v4851_v17, %v4717_v47 }
 0x2c9   : > { %v4965_v31 = vpop.eup %3939  ;;  %3959 = vpow2.f32 %v1783_v7  ;;  %v1583_v7 = vmul.f32 %v4851_v17, %v4700_v15 }
 0x2ca   : > { %v4969_v23 = vpop.eup %3941  ;;  %3961 = vpow2.f32 %v1845_v12  ;;  %v1851_v12 = vmul.f32 1.442695, %v1600_v13 }
 0x2cb   : > { %v4973_v39 = vpop.eup %3943  ;;  %3963 = vpow2.f32 %v1847_v25  ;;  %v1817_v38 = vmul.f32 1.442695, %v1583_v7 }
 0x2cc   : > { %v4977_v43 = vpop.eup %3945  ;;  %3965 = vpow2.f32 %v1749_v60  ;;  %v1569_v60 = vmul.f32 %v4728_v5, %v4717_v47 }
 0x2cd   : > { %v4981_v52 = vpop.eup %3947  ;;  %3967 = vpow2.f32 %v1751_v32  ;;  %v1755_v32 = vmul.f32 1.442695, %v1552_v59 }
 0x2ce   : > { %v4985_v63 = vpop.eup %3949  ;;  %3969 = vpow2.f32 %v1813_v36 }
 0x2cf   : > { %5940 = vst [vmem:[#allocation16_spill] sm:$0xff] %v4985_v63  ;;  %v4989_v8 = vpop.eup %3951  ;;  %3971 = vpow2.f32 %v1815_v19  ;;  %v1601_v19 = vmul.f32 %v4750_v45, %v4717_v47 }
 0x2d0   : > { %5941 = vst [vmem:[#allocation17_spill] sm:$0xff] %v4989_v8  ;;  %v4993_v25 = vpop.eup %3953  ;;  %3973 = vpow2.f32 %v1785_v56  ;;  %v5007_v56 = vpop.permute.xlu1 %1126  ;;  %v1821_v8 = vmul.f32 1.442695, %v1585_v16 }
 0x2d1   : > { %5942 = vst [vmem:[#allocation18_spill] sm:$0xff] %v4993_v25  ;;  %v4997_v30 = vpop.eup %3955  ;;  %3975 = vpow2.f32 %v1787_v58  ;;  %v1602_v58 = vmul.f32 %v4750_v45, %v4736_v21 }
 0x2d2   : > { %5943 = vst [vmem:[#allocation19_spill] sm:$0xff] %v4997_v30  ;;  %v5001_v36 = vpop.eup %3957  ;;  %3977 = vpow2.f32 %v1849_v3  ;;  %v1789_v30 = vmul.f32 1.442695, %v1569_v60  ;;  %v1553_v3 = vmul.f32 %v4849_v24, %v4717_v47 }
 0x2d3   : > { %5944 = vst [vmem:[#allocation20_spill] sm:$0xff] %v5001_v36  ;;  %v5005_v13 = vpop.eup %3959  ;;  %3979 = vpow2.f32 %v1851_v12  ;;  %v1791_v36 = vmul.f32 1.442695, %v1570_v35  ;;  %v1853_v12 = vmul.f32 1.442695, %v1601_v19 }
 0x2d4   : > { %5945 = vst [vmem:[#allocation21_spill] sm:$0xff] %v5005_v13  ;;  %v5011_v59 = vpop.eup %3961  ;;  %3981 = vpow2.f32 %v1753_v26  ;;  %v1554_v13 = vmul.f32 %v4849_v24, %v4736_v21  ;;  %v5025_v26 = vpop.permute.xlu0 %1356  ;;  %v1855_v60 = vmul.f32 1.442695, %v1602_v58 }
 0x2d5   : > { %5946 = vst [vmem:[#allocation22_spill] sm:$0xff] %v5011_v59  ;;  %v5015_v7 = vpop.eup %3963  ;;  %3983 = vpow2.f32 %v1755_v32  ;;  %v1586_v32 = vmul.f32 %v4851_v17, %v4736_v21 }
 0x2d6   : > { %5947 = vst [vmem:[#allocation23_spill] sm:$0xff] %v5015_v7  ;;  %v5019_v25 = vpop.eup %3965  ;;  %3985 = vpow2.f32 %v1817_v38  ;;  %v1757_v7 = vmul.f32 1.442695, %v1553_v3  ;;  %v1571_v38 = vmul.f32 %v4728_v5, %v4726_v0 }
 0x2d7   : > { %5948 = vst [vmem:[#allocation24_spill] sm:$0xff] %v5019_v25  ;;  %v5023_v59 = vpop.eup %3967  ;;  %3987 = vpow2.f32 %v1819_v51  ;;  %v5035_v25 = vpop.permute.xlu1 %1914  ;;  %v1572_v51 = vmul.f32 %v4728_v5, %v4752_v46  ;;  %v1555_v5 = vmul.f32 %v4849_v24, %v4726_v0 }
 0x2d8   : > { %5949 = vst [vmem:[#allocation25_spill] sm:$0xff] %v5023_v59  ;;  %v5029_v35 = vpop.eup %3969  ;;  %3989 = vpow2.f32 %v1789_v30  ;;  %v1759_v59 = vmul.f32 1.442695, %v1554_v13  ;;  %v1603_v30 = vmul.f32 %v4750_v45, %v4726_v0 }
 0x2d9   : > { %5950 = vst [vmem:[#allocation26_spill] sm:$0xff] %v5029_v35  ;;  %v5033_v19 = vpop.eup %3971  ;;  %3991 = vpow2.f32 %v1791_v36  ;;  %v1823_v35 = vmul.f32 1.442695, %v1586_v32  ;;  %v1793_v36 = vmul.f32 1.442695, %v1571_v38 }
 0x2da   : > { %5951 = vst [vmem:[#allocation27_spill] sm:$0xff] %v5033_v19  ;;  %v5039_v58 = vpop.eup %3973  ;;  %3993 = vpow2.f32 %v1853_v12  ;;  %v1604_v19 = vmul.f32 %v4750_v45, %v4752_v46  ;;  %v5053_v12 = vpop.permute.xlu0 %1910  ;;  %v1795_v16 = vmul.f32 1.442695, %v1572_v51  ;;  %v1857_v45 = vmul.f32 1.442695, %v1603_v30 }
 0x2db   : > { %v5043_v3 = vpop.eup %3975  ;;  %3995 = vpow2.f32 %v1855_v60  ;;  %v1556_v60 = vmul.f32 %v4849_v24, %v4752_v46  ;;  %v1761_v24 = vmul.f32 1.442695, %v1555_v5 }
 0x2dc   : > { %5952 = vst [vmem:[#allocation28_spill] sm:$0xff] %v5043_v3  ;;  %v5047_v63 = vpop.eup %3977  ;;  %3997 = vpow2.f32 %v1757_v7  ;;  %v1587_v7 = vmul.f32 %v4851_v17, %v4726_v0 }
 0x2dd   : > { %5953 = vst [vmem:[#allocation29_spill] sm:$0xff] %v5047_v63  ;;  %v5051_v13 = vpop.eup %3979  ;;  %3999 = vpow2.f32 %v1759_v59  ;;  %v5063_v63 = vpop.permute.xlu1 %1922  ;;  %v1588_v59 = vmul.f32 %v4851_v17, %v4752_v46 }
 0x2de   : > { %5954 = vst [vmem:[#allocation30_spill] sm:$0xff] %v5051_v13  ;;  %v5057_v32 = vpop.eup %3981  ;;  %4001 = vpow2.f32 %v1821_v8  ;;  %v1859_v13 = vmul.f32 1.442695, %v1604_v19  ;;  %v1957_v8 = vmul.f32 %v5035_v25, %v4628_v48  ;;  %v1989_v17 = vmul.f32 %v5063_v63, %v4628_v48 }
 0x2df   : > { %5955 = vst [vmem:[#allocation31_spill] sm:$0xff] %v5057_v32  ;;  %v5061_v38 = vpop.eup %3983  ;;  %4003 = vpow2.f32 %v1823_v35  ;;  %v1763_v32 = vmul.f32 1.442695, %v1556_v60  ;;  %v1825_v35 = vmul.f32 1.442695, %v1587_v7 }
 0x2e0   : > { %5956 = vst [vmem:[#allocation32_spill] sm:$0xff] %v5061_v38  ;;  %v5067_v51 = vpop.eup %3985  ;;  %4005 = vpow2.f32 %v1793_v36  ;;  %v1958_v38 = vmul.f32 %v5035_v25, %v4625_v44  ;;  %v5081_v36 = vpop.permute.xlu0 %1918  ;;  %v1827_v5 = vmul.f32 1.442695, %v1588_v59 }
 0x2e1   : > { %5957 = vst [vmem:[#allocation33_spill] sm:$0xff] %v5067_v51  ;;  %v5071_v30 = vpop.eup %3987  ;;  %4007 = vpow2.f32 %v1795_v16  ;;  %v1990_v16 = vmul.f32 %v5063_v63, %v4625_v44  ;;  %v1973_v59 = vmul.f32 %v5081_v36, %v4628_v48 }
 0x2e2   : > { %5958 = vst [vmem:[#allocation34_spill] sm:$0xff] %v5071_v30  ;;  %v5075_v3 = vpop.eup %3989  ;;  %4009 = vpow2.f32 %v1857_v45  ;;  %v2101_v30 = vmul.f32 1.442695, %v1957_v8  ;;  %v1941_v45 = vmul.f32 %v5053_v12, %v4628_v48  ;;  %v1974_v8 = vmul.f32 %v5081_v36, %v4625_v44 }
 0x2e3   : > { %5959 = vst [vmem:[#allocation35_spill] sm:$0xff] %v5075_v3  ;;  %v5079_v19 = vpop.eup %3991  ;;  %4011 = vpow2.f32 %v1859_v13  ;;  %v2103_v3 = vmul.f32 1.442695, %v1958_v38  ;;  %v2165_v13 = vmul.f32 1.442695, %v1989_v17  ;;  %v1959_v38 = vmul.f32 %v5035_v25, %v4630_v49 }
 0x2e4   : > { %5960 = vst [vmem:[#allocation36_spill] sm:$0xff] %v5079_v19  ;;  %v5085_v60 = vpop.eup %3993  ;;  %4013 = vpow2.f32 %v1761_v24  ;;  %v1942_v19 = vmul.f32 %v5053_v12, %v4625_v44  ;;  %v2167_v24 = vmul.f32 1.442695, %v1990_v16  ;;  %v1960_v17 = vmul.f32 %v5035_v25, %v4645_v61 }
 0x2e5   : > { %5961 = vst [vmem:[#allocation37_spill] sm:$0xff] %v5085_v60  ;;  %v5089_v7 = vpop.eup %3995  ;;  %4015 = vpow2.f32 %v1763_v32  ;;  %v2069_v32 = vmul.f32 1.442695, %v1941_v45  ;;  %v1991_v16 = vmul.f32 %v5063_v63, %v4630_v49  ;;  %v1992_v45 = vmul.f32 %v5063_v63, %v4645_v61 }
 0x2e6   : > { %5962 = vst [vmem:[#allocation38_spill] sm:$0xff] %v5089_v7  ;;  %v5093_v51 = vpop.eup %3997  ;;  %4017 = vpow2.f32 %v1825_v35  ;;  %v2071_v35 = vmul.f32 1.442695, %v1942_v19  ;;  %v1943_v19 = vmul.f32 %v5053_v12, %v4630_v49 }
 0x2e7   : > { %5963 = vst [vmem:[#allocation39_spill] sm:$0xff] %v5093_v51  ;;  %v5097_v60 = vpop.eup %3999  ;;  %4019 = vpow2.f32 %v1827_v5  ;;  %v2133_v5 = vmul.f32 1.442695, %v1973_v59  ;;  %v1944_v59 = vmul.f32 %v5053_v12, %v4645_v61 }
 0x2e8   : > { %5964 = vst [vmem:[#allocation40_spill] sm:$0xff] %v5097_v60  ;;  %v5101_v7 = vpop.eup %4001  ;;  %4021 = vpow2.f32 %v2101_v30  ;;  %v2135_v30 = vmul.f32 1.442695, %v1974_v8  ;;  %v1975_v8 = vmul.f32 %v5081_v36, %v4630_v49 }
 0x2e9   : > { %5965 = vst [vmem:[#allocation41_spill] sm:$0xff] %v5101_v7  ;;  %v5105_v51 = vpop.eup %4003  ;;  %4023 = vpow2.f32 %v2103_v3  ;;  %v2105_v3 = vmul.f32 1.442695, %v1959_v38  ;;  %v1976_v38 = vmul.f32 %v5081_v36, %v4645_v61 }
 0x2ea   : > { %5966 = vst [vmem:[#allocation42_spill] sm:$0xff] %v5105_v51  ;;  %v5109_v60 = vpop.eup %4005  ;;  %4025 = vpow2.f32 %v2165_v13  ;;  %v2107_v13 = vmul.f32 1.442695, %v1960_v17  ;;  %v1961_v17 = vmul.f32 %v5035_v25, %v4634_v55 }
 0x2eb   : > { %5967 = vst [vmem:[#allocation43_spill] sm:$0xff] %v5109_v60  ;;  %v5113_v7 = vpop.eup %4007  ;;  %4027 = vpow2.f32 %v2167_v24  ;;  %v2169_v24 = vmul.f32 1.442695, %v1991_v16  ;;  %v1962_v16 = vmul.f32 %v5035_v25, %v4661_v28 }
 0x2ec   : > { %5968 = vst [vmem:[#allocation44_spill] sm:$0xff] %v5113_v7  ;;  %v5117_v51 = vpop.eup %4009  ;;  %4029 = vpow2.f32 %v2069_v32  ;;  %v2171_v32 = vmul.f32 1.442695, %v1992_v45  ;;  %v1993_v45 = vmul.f32 %v5063_v63, %v4634_v55 }
 0x2ed   : > { %5969 = vst [vmem:[#allocation45_spill] sm:$0xff] %v5117_v51  ;;  %v5121_v60 = vpop.eup %4011  ;;  %4031 = vpow2.f32 %v2071_v35  ;;  %v2073_v35 = vmul.f32 1.442695, %v1943_v19  ;;  %v1994_v19 = vmul.f32 %v5063_v63, %v4661_v28 }
 0x2ee   : > { %5970 = vst [vmem:[#allocation46_spill] sm:$0xff] %v5121_v60  ;;  %v5125_v7 = vpop.eup %4013  ;;  %4033 = vpow2.f32 %v2133_v5  ;;  %v2075_v5 = vmul.f32 1.442695, %v1944_v59  ;;  %v1945_v59 = vmul.f32 %v5053_v12, %v4634_v55 }
 0x2ef   : > { %5971 = vst [vmem:[#allocation47_spill] sm:$0xff] %v5125_v7  ;;  %v5129_v51 = vpop.eup %4015  ;;  %4035 = vpow2.f32 %v2135_v30  ;;  %v2137_v30 = vmul.f32 1.442695, %v1975_v8  ;;  %v1946_v8 = vmul.f32 %v5053_v12, %v4661_v28 }
 0x2f0   : > { %5972 = vst [vmem:[#allocation48_spill] sm:$0xff] %v5129_v51  ;;  %v5133_v60 = vpop.eup %4017  ;;  %4037 = vpow2.f32 %v2105_v3  ;;  %v2139_v3 = vmul.f32 1.442695, %v1976_v38  ;;  %v1977_v38 = vmul.f32 %v5081_v36, %v4634_v55 }
 0x2f1   : > { %5973 = vst [vmem:[#allocation49_spill] sm:$0xff] %v5133_v60  ;;  %v5137_v7 = vpop.eup %4019  ;;  %4039 = vpow2.f32 %v2107_v13  ;;  %v2109_v13 = vmul.f32 1.442695, %v1961_v17  ;;  %v1978_v17 = vmul.f32 %v5081_v36, %v4661_v28 }
 0x2f2   : > { %5974 = vst [vmem:[#allocation50_spill] sm:$0xff] %v5137_v7  ;;  %v5141_v51 = vpop.eup %4021  ;;  %4041 = vpow2.f32 %v2169_v24  ;;  %v2111_v24 = vmul.f32 1.442695, %v1962_v16  ;;  %v1963_v16 = vmul.f32 %v5035_v25, %v4656_v22 }
 0x2f3   : > { %5975 = vst [vmem:[#allocation51_spill] sm:$0xff] %v5141_v51  ;;  %v5145_v60 = vpop.eup %4023  ;;  %4043 = vpow2.f32 %v2171_v32  ;;  %v2173_v32 = vmul.f32 1.442695, %v1993_v45  ;;  %v1964_v45 = vmul.f32 %v5035_v25, %v4695_v10 }
 0x2f4   : > { %5976 = vst [vmem:[#allocation52_spill] sm:$0xff] %v5145_v60  ;;  %v5149_v7 = vpop.eup %4025  ;;  %4045 = vpow2.f32 %v2073_v35  ;;  %v2175_v35 = vmul.f32 1.442695, %v1994_v19  ;;  %v1995_v19 = vmul.f32 %v5063_v63, %v4656_v22 }
 0x2f5   : > { %5977 = vst [vmem:[#allocation53_spill] sm:$0xff] %v5149_v7  ;;  %v5153_v51 = vpop.eup %4027  ;;  %4047 = vpow2.f32 %v2075_v5  ;;  %v2077_v5 = vmul.f32 1.442695, %v1945_v59  ;;  %v1996_v59 = vmul.f32 %v5063_v63, %v4695_v10 }
 0x2f6   : > { %5978 = vst [vmem:[#allocation54_spill] sm:$0xff] %v5153_v51  ;;  %v5157_v60 = vpop.eup %4029  ;;  %4049 = vpow2.f32 %v2137_v30  ;;  %v2079_v30 = vmul.f32 1.442695, %v1946_v8  ;;  %v1947_v8 = vmul.f32 %v5053_v12, %v4656_v22 }
 0x2f7   : > { %5979 = vst [vmem:[#allocation55_spill] sm:$0xff] %v5157_v60  ;;  %v5161_v7 = vpop.eup %4031  ;;  %4051 = vpow2.f32 %v2139_v3  ;;  %v2141_v3 = vmul.f32 1.442695, %v1977_v38  ;;  %v1948_v38 = vmul.f32 %v5053_v12, %v4695_v10 }
 0x2f8   : > { %v5165_v51 = vpop.eup %4033  ;;  %4053 = vpow2.f32 %v2109_v13  ;;  %v2143_v13 = vmul.f32 1.442695, %v1978_v17  ;;  %v1979_v17 = vmul.f32 %v5081_v36, %v4656_v22 }
 0x2f9   : > { %v5169_v60 = vpop.eup %4035  ;;  %4055 = vpow2.f32 %v2111_v24  ;;  %v2113_v24 = vmul.f32 1.442695, %v1963_v16  ;;  %v1980_v16 = vmul.f32 %v5081_v36, %v4695_v10 }
 0x2fa   : > { %5980 = vst [vmem:[#allocation56_spill] sm:$0xff] %v5169_v60  ;;  %v5173_v55 = vpop.eup %4037  ;;  %4057 = vpow2.f32 %v2173_v32  ;;  %v2115_v32 = vmul.f32 1.442695, %v1964_v45  ;;  %v1965_v45 = vmul.f32 %v5035_v25, %v4681_v42 }
 0x2fb   : > { %5981 = vst [vmem:[#allocation57_spill] sm:$0xff] %v5173_v55  ;;  %v5177_v28 = vpop.eup %4039  ;;  %4059 = vpow2.f32 %v2175_v35  ;;  %v2177_v35 = vmul.f32 1.442695, %v1995_v19  ;;  %v1966_v19 = vmul.f32 %v5035_v25, %v4710_v34 }
 0x2fc   : > { %5982 = vst [vmem:[#allocation58_spill] sm:$0xff] %v5177_v28  ;;  %v5181_v60 = vpop.eup %4041  ;;  %4061 = vpow2.f32 %v2077_v5  ;;  %v2179_v5 = vmul.f32 1.442695, %v1996_v59  ;;  %v1997_v59 = vmul.f32 %v5063_v63, %v4681_v42 }
 0x2fd   : > { %5983 = vst [vmem:[#allocation59_spill] sm:$0xff] %v5181_v60  ;;  %v5185_v55 = vpop.eup %4043  ;;  %4063 = vpow2.f32 %v2079_v30  ;;  %v2081_v30 = vmul.f32 1.442695, %v1947_v8  ;;  %v1998_v8 = vmul.f32 %v5063_v63, %v4710_v34 }
 0x2fe   : > { %5984 = vst [vmem:[#allocation60_spill] sm:$0xff] %v5185_v55  ;;  %v5189_v28 = vpop.eup %4045  ;;  %4065 = vpow2.f32 %v2141_v3  ;;  %v2083_v3 = vmul.f32 1.442695, %v1948_v38  ;;  %v1949_v38 = vmul.f32 %v5053_v12, %v4681_v42 }
 0x2ff   : > { %5985 = vst [vmem:[#allocation61_spill] sm:$0xff] %v5189_v28  ;;  %v5193_v60 = vpop.eup %4047  ;;  %4067 = vpow2.f32 %v2143_v13  ;;  %v2145_v13 = vmul.f32 1.442695, %v1979_v17  ;;  %v1950_v17 = vmul.f32 %v5053_v12, %v4710_v34 }
 0x300   : > { %v5197_v55 = vpop.eup %4049  ;;  %4069 = vpow2.f32 %v2113_v24  ;;  %v2147_v24 = vmul.f32 1.442695, %v1980_v16  ;;  %v1981_v16 = vmul.f32 %v5081_v36, %v4681_v42 }
 0x301   : > { %v5201_v28 = vpop.eup %4051  ;;  %4071 = vpow2.f32 %v2115_v32  ;;  %v2117_v32 = vmul.f32 1.442695, %v1965_v45  ;;  %v2183_v45 = vmul.f32 1.442695, %v1998_v8  ;;  %v1968_v8 = vmul.f32 %v5035_v25, %v4723_v57 }
 0x302   : > { %5986 = vst [vmem:[#allocation62_spill] sm:$0xff] %v5201_v28  ;;  %v5205_v22 = vpop.eup %4053  ;;  %4073 = vpow2.f32 %v2177_v35  ;;  %v2119_v35 = vmul.f32 1.442695, %v1966_v19 }
 0x303   : > { %5987 = vst [vmem:[#allocation63_spill] sm:$0xff] %v5205_v22  ;;  %v5209_v10 = vpop.eup %4055  ;;  %4075 = vpow2.f32 %v2179_v5  ;;  %v2181_v5 = vmul.f32 1.442695, %v1997_v59  ;;  %v1967_v59 = vmul.f32 %v5035_v25, %v4700_v15 }
 0x304   : > { %5988 = vst [vmem:[#allocation64_spill] sm:$0xff] %v5209_v10  ;;  %v5213_v28 = vpop.eup %4057  ;;  %4077 = vpow2.f32 %v2081_v30 }
 0x305   : > { %5989 = vst [vmem:[#allocation65_spill] sm:$0xff] %v5213_v28  ;;  %v5217_v22 = vpop.eup %4059  ;;  %4079 = vpow2.f32 %v2083_v3  ;;  %v1982_v3 = vmul.f32 %v5081_v36, %v4710_v34 }
 0x306   : > { %v5221_v10 = vpop.eup %4061  ;;  %4081 = vpow2.f32 %v2145_v13  ;;  %v2085_v13 = vmul.f32 1.442695, %v1949_v38  ;;  %v1999_v38 = vmul.f32 %v5063_v63, %v4700_v15 }
 0x307   : > { %5990 = vst [vmem:[#allocation66_spill] sm:$0xff] %v5221_v10  ;;  %v5225_v28 = vpop.eup %4063  ;;  %4083 = vpow2.f32 %v2147_v24  ;;  %v2087_v24 = vmul.f32 1.442695, %v1950_v17  ;;  %v2000_v17 = vmul.f32 %v5063_v63, %v4723_v57 }
 0x308   : > { %5991 = vst [vmem:[#allocation67_spill] sm:$0xff] %v5225_v28  ;;  %v5231_v19 = vpop.eup %4065  ;;  %4085 = vpow2.f32 %v2117_v32  ;;  %v2149_v32 = vmul.f32 1.442695, %v1981_v16  ;;  %v1951_v16 = vmul.f32 %v5053_v12, %v4700_v15 }
 0x309   : > { %5992 = vst [vmem:[#allocation68_spill] sm:$0xff] %v5231_v19  ;;  %v5237_v42 = vpop.eup %4067  ;;  %4087 = vpow2.f32 %v2119_v35  ;;  %v2151_v35 = vmul.f32 1.442695, %v1982_v3  ;;  %v1952_v3 = vmul.f32 %v5053_v12, %v4723_v57 }
 0x30a   : > { %5993 = vst [vmem:[#allocation69_spill] sm:$0xff] %v5237_v42  ;;  %v5243_v34 = vpop.eup %4069  ;;  %4089 = vpow2.f32 %v2181_v5  ;;  %v2121_v5 = vmul.f32 1.442695, %v1967_v59  ;;  %v1984_v59 = vmul.f32 %v5081_v36, %v4723_v57  ;;  %v1970_v57 = vmul.f32 %v5035_v25, %v4736_v21 }
 0x30b   : > { %5994 = vst [vmem:[#allocation70_spill] sm:$0xff] %v5243_v34  ;;  %v5249_v19 = vpop.eup %4071  ;;  %4091 = vpow2.f32 %v2183_v45  ;;  %v2123_v45 = vmul.f32 1.442695, %v1968_v8  ;;  %v1969_v8 = vmul.f32 %v5035_v25, %v4717_v47 }
 0x30c   : > { %5995 = vst [vmem:[#allocation71_spill] sm:$0xff] %v5249_v19  ;;  %v5255_v42 = vpop.eup %4073  ;;  %4093 = vpow2.f32 %v2085_v13  ;;  %v1983_v13 = vmul.f32 %v5081_v36, %v4700_v15  ;;  %v2089_v15 = vmul.f32 1.442695, %v1951_v16  ;;  %v2001_v16 = vmul.f32 %v5063_v63, %v4717_v47 }
 0x30d   : > { %5996 = vst [vmem:[#allocation72_spill] sm:$0xff] %v5255_v42  ;;  %v5261_v34 = vpop.eup %4075  ;;  %4095 = vpow2.f32 %v2087_v24  ;;  %v2185_v42 = vmul.f32 1.442695, %v1999_v38  ;;  %v2187_v24 = vmul.f32 1.442695, %v2000_v17 }
 0x30e   : > { %5997 = vst [vmem:[#allocation73_spill] sm:$0xff] %v5261_v34  ;;  %v5267_v19 = vpop.eup %4077  ;;  %4097 = vpow2.f32 %v2149_v32  ;;  %v2153_v38 = vmul.f32 1.442695, %v1983_v13  ;;  %v1953_v13 = vmul.f32 %v5053_v12, %v4717_v47 }
 0x30f   : > { %5998 = vst [vmem:[#allocation74_spill] sm:$0xff] %v5267_v19  ;;  %v5273_v10 = vpop.eup %4079  ;;  %4099 = vpow2.f32 %v2151_v35 }
 0x310   : > { %5999 = vst [vmem:[#allocation75_spill] sm:$0xff] %v5273_v10  ;;  %v5279_v34 = vpop.eup %4081  ;;  %4101 = vpow2.f32 %v2121_v5  ;;  %v2155_v5 = vmul.f32 1.442695, %v1984_v59  ;;  %v1954_v59 = vmul.f32 %v5053_v12, %v4736_v21 }
 0x311   : > { %6000 = vst [vmem:[#allocation76_spill] sm:$0xff] %v5279_v34  ;;  %v5285_v10 = vpop.eup %4083  ;;  %4103 = vpow2.f32 %v2123_v45  ;;  %v2091_v34 = vmul.f32 1.442695, %v1952_v3  ;;  %v2002_v45 = vmul.f32 %v5063_v63, %v4736_v21 }
 0x312   : > { %v5292_v19 = vpop.eup %4085  ;;  %4105 = vpow2.f32 %v2185_v42  ;;  %v2127_v42 = vmul.f32 1.442695, %v1970_v57  ;;  %v2189_v57 = vmul.f32 1.442695, %v2001_v16  ;;  %v2093_v16 = vmul.f32 1.442695, %v1953_v13 }
 0x313   : > { %6001 = vst [vmem:[#allocation77_spill] sm:$0xff] %v5292_v19  ;;  %v5296_v28 = vpop.eup %4087  ;;  %4107 = vpow2.f32 %v2187_v24  ;;  %v2191_v19 = vmul.f32 1.442695, %v2002_v45  ;;  %v6007_v45 = vpack.c.bf16 %v4901_v53, %v4897_v9  ;;  %v1972_v13 = vmul.f32 %v5035_v25, %v4752_v46 }
 0x314   : > { %6002 = vst [vmem:[#allocation78_spill] sm:$0xff] %v5296_v28  ;;  %v5304_v3 = vpop.eup %4089  ;;  %4109 = vpow2.f32 %v2089_v15  ;;  %v2003_v53 = vmul.f32 %v5063_v63, %v4726_v0 }
 0x315   : > { %6003 = vst [vmem:[#allocation79_spill] sm:$0xff] %v5304_v3  ;;  %4111 = vpow2.f32 %v2091_v34  ;;  %v1985_v3 = vmul.f32 %v5081_v36, %v4717_v47  ;;  %v1986_v34 = vmul.f32 %v5081_v36, %v4736_v21  ;;  %v6008_v21 = vpack.c.bf16 %v4909_v1, %v4905_v20 }
 0x316   : > { %4113 = vpow2.f32 %v2153_v38  ;;  %v2004_v1 = vmul.f32 %v5063_v63, %v4752_v46  ;;  %v6017_v63 = vpack.c.bf16 %v4933_v41, %v4929_v40  ;;  %v6023_v40 = vld [vmem:[#allocation25_spill] sm:$0xff] }
 0x317   : > { %4115 = vpow2.f32 %v2155_v5  ;;  %v6006_v5 = vpack.c.bf16 %v4893_v6, %v4889_v2  ;;  %v6009_v2 = vld [vmem:[#allocation16_spill] sm:$0xff]  ;;  %v6010_v6 = vld [vmem:[#allocation17_spill] sm:$0xff]  ;;  %v2157_v9 = vmul.f32 1.442695, %v1985_v3 }
 0x318   : > { %v6014_v3 = vld [vmem:[#allocation20_spill] sm:$0xff] }
 0x371   : > { %v1198_v32 = vpop.f32.mrb[4].mxu0 }
 0x372   : > { %v5288_v30 = vadd.f32 %v1198_v32, %v5007_v56  ;;  %v3434_v35 = vpop.f32.mrb[5].mxu0  ;;  %v2125_v32 = vmul.f32 1.442695, %v1969_v8 }
 0x373   : > { %v5310_v35 = vpop.eup %4091 }
 0x374   : > { %v5300_v56 = vmul.f32 %v5025_v26, %v5288_v30  ;;  %6004 = vst [vmem:[#allocation80_spill] sm:$0xff] %v5310_v35  ;;  %v5315_v17 = vpop.eup %4093  ;;  %4117 = vpow2.f32 %v2125_v32  ;;  %v5335_v35 = vpop.permute.xlu1 %1930  ;;  %v2095_v32 = vmul.f32 1.442695, %v1954_v59  ;;  %v6012_v59 = vld [vmem:[#allocation18_spill] sm:$0xff] }
 0x375   : > { %6005 = vst [vmem:[#allocation81_spill] sm:$0xff] %v5315_v17  ;;  %v5321_v28 = vpop.eup %4095  ;;  %4119 = vpow2.f32 %v2127_v42 }
 0x376   : > { %v1361_v26 = vrot.slane %v5300_v56, 1  ;;  %v1365_v24 = vrot.slane %v5300_v56, 3  ;;  %v1363_v8 = vrot.slane %v5300_v56, 2  ;;  %v5327_v17 = vpop.eup %4097  ;;  %v1369_v38 = vrot.slane %v5300_v56, 5 }
 0x377   : > { %4121 = vpow2.f32 %v2189_v57 }
 0x378   : > { %2390 = vmatprep.mubr.f32.mxu0 %v1361_v26  ;;  %2460 = vmatprep.mubr.f32.mxu1 %v1365_v24  ;;  %v1971_v26 = vmul.f32 %v5035_v25, %v4726_v0  ;;  %v5333_v24 = vpop.eup %4099  ;;  %v6011_v25 = vpack.c.bf16 %v4917_v33, %v4913_v14  ;;  %4123 = vpow2.f32 %v2191_v19  ;;  %v1955_v14 = vmul.f32 %v5053_v12, %v4726_v0 }
 0x379   : > { %2391 = vmatmul.mubr.f32.vlgmr.msra.gmra.mrb[6].mxu0 %v5300_v56  ;;  %2461 = vmatmul.mubr.f32.vlgmr.msra.gmra.mrb[2].mxu1 %v1363_v8  ;;  %v1373_v8 = vrot.slane %v5300_v56, 7  ;;  %v5346_v15 = vpop.eup %4101  ;;  %4125 = vpow2.f32 %v2093_v16  ;;  %v6016_v19 = vpack.c.bf16 %v4925_v37, %v4921_v18  ;;  %v2131_v16 = vmul.f32 1.442695, %v1972_v13  ;;  %v6022_v37 = vld [vmem:[#allocation24_spill] sm:$0xff] }
 0x37a   : > { %3520 = vmatpush3.bf16.msra.mxu0 %v6006_v5  ;;  %3552 = vmatpush3.bf16.msra.mxu1 %v6007_v45  ;;  %v5355_v42 = vpop.eup %4103  ;;  %v6013_v45 = vld [vmem:[#allocation19_spill] sm:$0xff]  ;;  %v2129_v47 = vmul.f32 1.442695, %v1971_v26  ;;  %4127 = vpow2.f32 %v2095_v32  ;;  %v1956_v26 = vmul.f32 %v5053_v12, %v4752_v46  ;;  %v6021_v18 = vpack.c.bf16 %v4949_v4, %v4945_v62  ;;  %v5398_v12 = vpop.permute.xlu1 %1938 }
 0x37b   : > { %3522 = vmatprep.subr.bf16.mxu0 %v6008_v21  ;;  %2530 = vmatprep.mubr.f32.mxu0 %v1369_v38  ;;  %v3563_v20 = vpack.c.bf16 %v6013_v45, %v6012_v59  ;;  %v2159_v21 = vmul.f32 1.442695, %v1986_v34  ;;  %v5364_v57 = vpop.eup %4105  ;;  %v6015_v38 = vld [vmem:[#allocation21_spill] sm:$0xff]  ;;  %v6018_v34 = vld [vmem:[#allocation22_spill] sm:$0xff]  ;;  %4129 = vpow2.f32 %v2157_v9  ;;  %v1987_v32 = vmul.f32 %v5081_v36, %v4726_v0  ;;  %v6026_v9 = vld [vmem:[#allocation28_spill] sm:$0xff] }
 0x37c   : > { %3554 = vmatprep.subr.bf16.mxu1 %v6011_v25  ;;  %2600 = vmatprep.mubr.f32.mxu1 %v1373_v8  ;;  %v3533_v5 = vpack.c.bf16 %v6015_v38, %v6014_v3  ;;  %v5370_v33 = vpop.eup %4107  ;;  %v5372_v8 = vpop.permute.xlu0 %1926  ;;  %v6019_v25 = vld [vmem:[#allocation23_spill] sm:$0xff]  ;;  %v6020_v3 = vpack.c.bf16 %v4941_v54, %v4937_v50  ;;  %v2193_v38 = vmul.f32 1.442695, %v2003_v53  ;;  %v2195_v54 = vmul.f32 1.442695, %v2004_v1  ;;  %v6030_v1 = vld [vmem:[#allocation30_spill] sm:$0xff] }
 0x37d   : > { %v3565_v59 = vpack.c.bf16 %v6019_v25, %v6018_v34  ;;  %v5384_v45 = vpop.eup %4109  ;;  %4131 = vpow2.f32 %v2159_v21  ;;  %v1988_v62 = vmul.f32 %v5081_v36, %v4752_v46  ;;  %v3537_v53 = vpack.c.bf16 %v6026_v9, %v5039_v58  ;;  %v6029_v36 = vld [vmem:[#allocation29_spill] sm:$0xff] }
 0x37e   : > { %3524 = vmatpush3.bf16.msra.mxu0 %v6016_v19  ;;  %3556 = vmatpush3.bf16.msra.mxu1 %v6017_v63  ;;  %v5396_v13 = vpop.eup %4111  ;;  %v6024_v19 = vld [vmem:[#allocation26_spill] sm:$0xff]  ;;  %v6025_v63 = vld [vmem:[#allocation27_spill] sm:$0xff]  ;;  %4133 = vpow2.f32 %v2129_v47  ;;  %v2097_v34 = vmul.f32 1.442695, %v1955_v14  ;;  %v2021_v25 = vmul.f32 %v5335_v35, %v4628_v48  ;;  %v6028_v21 = vpack.c.bf16 %v4965_v31, %v4961_v29  ;;  %v6034_v29 = vld [vmem:[#allocation32_spill] sm:$0xff] }
 0x37f   : > { %3526 = vmatprep.subr.bf16.mxu0 %v6020_v3  ;;  %3558 = vmatprep.subr.bf16.mxu1 %v6021_v18  ;;  %v3567_v50 = vpack.c.bf16 %v6025_v63, %v6024_v19  ;;  %v5404_v4 = vpop.eup %4113  ;;  %v6027_v18 = vpack.c.bf16 %v4957_v27, %v4953_v11  ;;  %v3569_v19 = vpack.c.bf16 %v6030_v1, %v6029_v36  ;;  %4135 = vpow2.f32 %v2131_v16  ;;  %v6033_v27 = vld [vmem:[#allocation31_spill] sm:$0xff]  ;;  %v6036_v36 = vld [vmem:[#allocation34_spill] sm:$0xff] }
 0x380   : > { %v5410_v3 = vpop.eup %4115  ;;  %v2099_v58 = vmul.f32 1.442695, %v1956_v26  ;;  %v2022_v47 = vmul.f32 %v5335_v35, %v4625_v44  ;;  %v6031_v63 = vpack.c.bf16 %v4973_v39, %v4969_v23  ;;  %v6032_v11 = vpack.c.bf16 %v4981_v52, %v4977_v43  ;;  %v6037_v1 = vld [vmem:[#allocation35_spill] sm:$0xff] }
 0x381   : > { %v5422_v14 = vpop.eup %4117  ;;  %4137 = vpow2.f32 %v2193_v38  ;;  %v2161_v9 = vmul.f32 1.442695, %v1987_v32  ;;  %v2053_v16 = vmul.f32 %v5398_v12, %v4628_v48  ;;  %v2163_v39 = vmul.f32 1.442695, %v1988_v62  ;;  %v6038_v38 = vld [vmem:[#allocation36_spill] sm:$0xff]  ;;  %v6041_v62 = vld [vmem:[#allocation38_spill] sm:$0xff] }
 0x382   : > { %3528 = vmatpush3.bf16.msra.mxu0 %v6027_v18  ;;  %3560 = vmatpush3.bf16.msra.mxu1 %v6028_v21  ;;  %v5434_v26 = vpop.eup %4119  ;;  %v5436_v18 = vpop.permute.xlu0 %1934  ;;  %v6035_v21 = vld [vmem:[#allocation33_spill] sm:$0xff]  ;;  %4139 = vpow2.f32 %v2195_v54  ;;  %v2054_v43 = vmul.f32 %v5398_v12, %v4625_v44  ;;  %v3541_v32 = vpack.c.bf16 %v6038_v38, %v6037_v1  ;;  %v2231_v41 = vmul.f32 1.442695, %v2022_v47  ;;  %v6043_v38 = vld [vmem:[#allocation40_spill] sm:$0xff] }
 0x383   : > { %3530 = vmatprep.subr.bf16.mxu0 %v6031_v63  ;;  %3562 = vmatprep.subr.bf16.mxu1 %v6032_v11  ;;  %v3571_v23 = vpack.c.bf16 %v6036_v36, %v6035_v21  ;;  %v5442_v52 = vpop.eup %4121  ;;  %4141 = vpow2.f32 %v2097_v34  ;;  %v2229_v63 = vmul.f32 1.442695, %v2021_v25  ;;  %v2005_v11 = vmul.f32 %v5372_v8, %v4628_v48  ;;  %v6040_v54 = vld [vmem:[#allocation37_spill] sm:$0xff]  ;;  %v6042_v25 = vld [vmem:[#allocation39_spill] sm:$0xff] }
 0x384   : > { %v5448_v31 = vpop.eup %4123  ;;  %v6039_v21 = vpack.c.bf16 %v6010_v6, %v6009_v2  ;;  %v3573_v36 = vpack.c.bf16 %v6041_v62, %v6040_v54  ;;  %4143 = vpow2.f32 %v2099_v58  ;;  %v2006_v1 = vmul.f32 %v5372_v8, %v4625_v44  ;;  %v6045_v58 = vld [vmem:[#allocation42_spill] sm:$0xff]  ;;  %v6047_v62 = vld [vmem:[#allocation44_spill] sm:$0xff] }
 0x385   : > { %v5457_v34 = vpop.eup %4125  ;;  %v3543_v46 = vpack.c.bf16 %v6043_v38, %v6042_v25  ;;  %4145 = vpow2.f32 %v2161_v9  ;;  %v2293_v0 = vmul.f32 1.442695, %v2053_v16  ;;  %v2037_v2 = vmul.f32 %v5436_v18, %v4628_v48 }
 0x386   : > { %3532 = vmatpush3.bf16.msra.mxu0 %v6039_v21  ;;  %3564 = vmatpush3.bf16.msra.mxu1 %v3563_v20  ;;  %v5463_v6 = vpop.eup %4127  ;;  %v6044_v20 = vld [vmem:[#allocation41_spill] sm:$0xff]  ;;  %4147 = vpow2.f32 %v2163_v39  ;;  %v2295_v21 = vmul.f32 1.442695, %v2054_v43  ;;  %v2038_v54 = vmul.f32 %v5436_v18, %v4625_v44  ;;  %v2197_v9 = vmul.f32 1.442695, %v2005_v11  ;;  %v6051_v43 = vld [vmem:[#allocation46_spill] sm:$0xff] }
 0x387   : > { %3534 = vmatprep.subr.bf16.mxu0 %v3533_v5  ;;  %3566 = vmatprep.subr.bf16.mxu1 %v3565_v59  ;;  %v3575_v47 = vpack.c.bf16 %v6045_v58, %v6044_v20  ;;  %v5469_v5 = vpop.eup %4129  ;;  %v6046_v59 = vld [vmem:[#allocation43_spill] sm:$0xff]  ;;  %4149 = vpow2.f32 %v2229_v63  ;;  %v2023_v48 = vmul.f32 %v5335_v35, %v4630_v49  ;;  %v6049_v38 = vpack.c.bf16 %v6023_v40, %v6022_v37  ;;  %v6050_v39 = vld [vmem:[#allocation45_spill] sm:$0xff] }
 0x388   : > { %v3545_v25 = vpack.c.bf16 %v6047_v62, %v6046_v59  ;;  %v5475_v16 = vpop.eup %4131  ;;  %v3577_v44 = vpack.c.bf16 %v6051_v43, %v6050_v39  ;;  %4151 = vpow2.f32 %v2231_v41  ;;  %v2199_v20 = vmul.f32 1.442695, %v2006_v1  ;;  %v6053_v11 = vld [vmem:[#allocation47_spill] sm:$0xff]  ;;  %v6054_v59 = vld [vmem:[#allocation48_spill] sm:$0xff]  ;;  %v6056_v41 = vld [vmem:[#allocation50_spill] sm:$0xff] }
 0x389   : > { %6048 = vst [vmem:[#allocation16_spill] sm:$0xff] %v5475_v16  ;;  %v2024_v58 = vmul.f32 %v5335_v35, %v4645_v61  ;;  %v5484_v63 = vpop.eup %4133  ;;  %4153 = vpow2.f32 %v2293_v0  ;;  %v2261_v16 = vmul.f32 1.442695, %v2037_v2  ;;  %v2055_v37 = vmul.f32 %v5398_v12, %v4630_v49  ;;  %v6059_v43 = vld [vmem:[#allocation52_spill] sm:$0xff] }
 0x38a   : > { %3536 = vmatpush3.bf16.msra.mxu0 %v6049_v38  ;;  %3568 = vmatpush3.bf16.msra.mxu1 %v3567_v50  ;;  %6052 = vst [vmem:[#allocation17_spill] sm:$0xff] %v5484_v63  ;;  %v5490_v40 = vpop.eup %4135  ;;  %v6055_v50 = vld [vmem:[#allocation49_spill] sm:$0xff]  ;;  %4155 = vpow2.f32 %v2295_v21  ;;  %v2263_v38 = vmul.f32 1.442695, %v2038_v54  ;;  %v2056_v39 = vmul.f32 %v5398_v12, %v4645_v61  ;;  %v2233_v0 = vmul.f32 1.442695, %v2023_v48 }
 0x38b   : > { %3538 = vmatprep.subr.bf16.mxu0 %v3537_v53  ;;  %3570 = vmatprep.subr.bf16.mxu1 %v3569_v19  ;;  %v3579_v1 = vpack.c.bf16 %v6056_v41, %v6055_v50  ;;  %v5496_v53 = vpop.eup %4137  ;;  %v6058_v19 = vld [vmem:[#allocation51_spill] sm:$0xff]  ;;  %4157 = vpow2.f32 %v2197_v9  ;;  %v2007_v2 = vmul.f32 %v5372_v8, %v4630_v49  ;;  %v6061_v50 = vpack.c.bf16 %v6034_v29, %v6033_v27  ;;  %v6062_v21 = vld [vmem:[#allocation53_spill] sm:$0xff]  ;;  %v6063_v54 = vld [vmem:[#allocation54_spill] sm:$0xff] }
 0x38c   : > { %6057 = vst [vmem:[#allocation18_spill] sm:$0xff] %v5496_v53  ;;  %v3581_v62 = vpack.c.bf16 %v6059_v43, %v6058_v19  ;;  %v5502_v63 = vpop.eup %4139  ;;  %v3613_v41 = vpack.c.bf16 %v6063_v54, %v6062_v21  ;;  %4159 = vpow2.f32 %v2199_v20  ;;  %v2235_v53 = vmul.f32 1.442695, %v2024_v58  ;;  %v6065_v48 = vld [vmem:[#allocation55_spill] sm:$0xff]  ;;  %v6070_v21 = vld [vmem:[#allocation58_spill] sm:$0xff]  ;;  %v1379_v54 = vpop.permute.xlu1 %1378 }
 0x38d   : > { %6060 = vst [vmem:[#allocation19_spill] sm:$0xff] %v5502_v63  ;;  %v2008_v19 = vmul.f32 %v5372_v8, %v4645_v61  ;;  %v5511_v9 = vpop.eup %4141  ;;  %4161 = vpow2.f32 %v2261_v16  ;;  %v2297_v63 = vmul.f32 1.442695, %v2055_v37  ;;  %v2039_v27 = vmul.f32 %v5436_v18, %v4630_v49  ;;  %v6071_v37 = vld [vmem:[#allocation4_spill] sm:$0xff] }
 0x38e   : > { %3540 = vmatpush3.bf16.msra.mxu0 %v6061_v50  ;;  %3572 = vmatpush3.bf16.msra.mxu1 %v3571_v23  ;;  %6064 = vst [vmem:[#allocation20_spill] sm:$0xff] %v5511_v9  ;;  %v5517_v29 = vpop.eup %4143  ;;  %v6067_v23 = vld [vmem:[#allocation56_spill] sm:$0xff]  ;;  %4163 = vpow2.f32 %v2263_v38  ;;  %v2299_v58 = vmul.f32 1.442695, %v2056_v39  ;;  %v2040_v50 = vmul.f32 %v5436_v18, %v4645_v61  ;;  %v2201_v16 = vmul.f32 1.442695, %v2007_v2 }
 0x38f   : > { %3542 = vmatprep.subr.bf16.mxu0 %v3541_v32  ;;  %3574 = vmatprep.subr.bf16.mxu1 %v3573_v36  ;;  %6066 = vst [vmem:[#allocation21_spill] sm:$0xff] %v5517_v29  ;;  %v5523_v32 = vpop.eup %4145  ;;  %v6069_v36 = vld [vmem:[#allocation57_spill] sm:$0xff]  ;;  %4165 = vpow2.f32 %v2233_v0  ;;  %v2025_v49 = vmul.f32 %v5335_v35, %v6071_v37  ;;  %v2203_v38 = vmul.f32 1.442695, %v2008_v19  ;;  %v6073_v39 = vld [vmem:[#allocation6_spill] sm:$0xff]  ;;  %v2057_v61 = vmul.f32 %v5398_v12, %v6071_v37  ;;  %v6075_v0 = vld [vmem:[#allocation59_spill] sm:$0xff] }
 0x390   : > { %6068 = vst [vmem:[#allocation22_spill] sm:$0xff] %v5523_v32  ;;  %v5529_v43 = vpop.eup %4147  ;;  %4167 = vpow2.f32 %v2235_v53  ;;  %v2026_v20 = vmul.f32 %v5335_v35, %v6073_v39  ;;  %v6076_v2 = vld [vmem:[#allocation60_spill] sm:$0xff]  ;;  %v6077_v9 = vld [vmem:[#allocation61_spill] sm:$0xff]  ;;  %v5544_v19 = vmul.f32 %v1379_v54, %v5288_v30  ;;  %v6079_v30 = vpack.c.bf16 %v6054_v59, %v6053_v11 }
 0x391   : > { %6072 = vst [vmem:[#allocation23_spill] sm:$0xff] %v5529_v43  ;;  %v5535_v32 = vpop.eup %4149  ;;  %v3617_v29 = vpack.c.bf16 %v6076_v2, %v6075_v0  ;;  %4169 = vpow2.f32 %v2297_v63  ;;  %v2267_v43 = vmul.f32 1.442695, %v2040_v50  ;;  %v2237_v2 = vmul.f32 1.442695, %v2025_v49 }
 0x392   : > { %3544 = vmatpush3.bf16.msra.mxu0 %v3543_v46  ;;  %3576 = vmatpush3.bf16.msra.mxu1 %v3575_v47  ;;  %6074 = vst [vmem:[#allocation24_spill] sm:$0xff] %v5535_v32  ;;  %v2265_v47 = vmul.f32 1.442695, %v2039_v27  ;;  %v5541_v53 = vpop.eup %4151  ;;  %4171 = vpow2.f32 %v2299_v58  ;;  %v2058_v32 = vmul.f32 %v5398_v12, %v6073_v39  ;;  %v2009_v63 = vmul.f32 %v5372_v8, %v6071_v37 }
 0x393   : > { %3546 = vmatprep.subr.bf16.mxu0 %v3545_v25  ;;  %3578 = vmatprep.subr.bf16.mxu1 %v3577_v44  ;;  %v5548_v25 = vpop.eup %4153  ;;  %v6078_v44 = vld [vmem:[#allocation62_spill] sm:$0xff]  ;;  %4173 = vpow2.f32 %v2201_v16  ;;  %v2239_v58 = vmul.f32 1.442695, %v2026_v20  ;;  %v2301_v50 = vmul.f32 1.442695, %v2057_v61  ;;  %v2010_v54 = vmul.f32 %v5372_v8, %v6073_v39 }
 0x394   : > { %v3619_v0 = vpack.c.bf16 %v6078_v44, %v5197_v55  ;;  %v5554_v27 = vpop.eup %4155  ;;  %4175 = vpow2.f32 %v2203_v38  ;;  %v1367_v55 = vrot.slane %v5300_v56, 4  ;;  %v1371_v16 = vrot.slane %v5300_v56, 6 }
 0x395   : > { %v5561_v46 = vpop.eup %4157  ;;  %4177 = vpow2.f32 %v2265_v47  ;;  %v2041_v11 = vmul.f32 %v5436_v18, %v6071_v37  ;;  %v2303_v20 = vmul.f32 1.442695, %v2058_v32  ;;  %v2042_v49 = vmul.f32 %v5436_v18, %v6073_v39  ;;  %v6082_v32 = vld [vmem:[#allocation63_spill] sm:$0xff]  ;;  %v6083_v39 = vld [vmem:[#allocation64_spill] sm:$0xff] }
 0x396   : > { %3548 = vmatpush3.bf16.msra.mxu0 %v6079_v30  ;;  %3580 = vmatpush3.bf16.msra.mxu1 %v3579_v1  ;;  %v5567_v59 = vpop.eup %4159  ;;  %v1383_v1 = vrot.slane %v5544_v19, 1  ;;  %4179 = vpow2.f32 %v2267_v43  ;;  %v2205_v56 = vmul.f32 1.442695, %v2009_v63  ;;  %v6081_v43 = vpack.c.bf16 %v5161_v7, %v6065_v48  ;;  %v6084_v30 = vld [vmem:[#allocation8_spill] sm:$0xff] }
 0x397   : > { %3582 = vmatprep.subr.bf16.mxu0 %v3581_v62  ;;  %3614 = vmatprep.subr.bf16.mxu1 %v3613_v41  ;;  %v5572_v38 = vpop.eup %4161  ;;  %v1387_v62 = vrot.slane %v5544_v19, 3  ;;  %4181 = vpow2.f32 %v2237_v2  ;;  %v6080_v41 = vld [vmem:[#allocation5_spill] sm:$0xff]  ;;  %v3589_v47 = vpack.c.bf16 %v6083_v39, %v6082_v32  ;;  %v2207_v44 = vmul.f32 1.442695, %v2010_v54  ;;  %v6089_v32 = vld [vmem:[#allocation67_spill] sm:$0xff] }
 0x398   : > { %v2027_v37 = vmul.f32 %v5335_v35, %v6080_v41  ;;  %v5577_v61 = vpop.eup %4163  ;;  %4183 = vpow2.f32 %v2239_v58  ;;  %v6085_v63 = vpack.c.bf16 %v6067_v23, %v5165_v51  ;;  %v2269_v48 = vmul.f32 1.442695, %v2041_v11  ;;  %v6090_v11 = vld [vmem:[#allocation68_spill] sm:$0xff] }
 0x399   : > { %2531 = vmatmul.mubr.f32.vlgmr.msra.gmra.mrb[8].mxu0 %v1367_v55  ;;  %2601 = vmatmul.mubr.f32.vlgmr.msra.gmra.mrb[4].mxu1 %v1371_v16  ;;  %v2028_v55 = vmul.f32 %v5335_v35, %v6084_v30  ;;  %v5586_v2 = vpop.eup %4165  ;;  %v6086_v16 = vld [vmem:[#allocation65_spill] sm:$0xff]  ;;  %4185 = vpow2.f32 %v2301_v50  ;;  %v6087_v54 = vpack.c.bf16 %v6070_v21, %v6069_v36  ;;  %v2271_v23 = vmul.f32 1.442695, %v2042_v49  ;;  %v6094_v49 = vld [vmem:[#allocation71_spill] sm:$0xff] }
 0x39a   : > { %3584 = vmatpush3.bf16.msra.mxu0 %v6081_v43  ;;  %2673 = vmatprep.mubr.f32.mxu0 %v1383_v1  ;;  %v3621_v7 = vpack.c.bf16 %v5217_v22, %v6086_v16  ;;  %v2059_v1 = vmul.f32 %v5398_v12, %v6080_v41  ;;  %v5595_v58 = vpop.eup %4167  ;;  %v6088_v43 = vld [vmem:[#allocation66_spill] sm:$0xff]  ;;  %4187 = vpow2.f32 %v2303_v20  ;;  %v2060_v22 = vmul.f32 %v5398_v12, %v6084_v30 }
 0x39b   : > { %3616 = vmatpush3.bf16.msra.mxu1 %v6085_v63  ;;  %2743 = vmatprep.mubr.f32.mxu1 %v1387_v62  ;;  %v3591_v51 = vpack.c.bf16 %v6089_v32, %v6088_v43  ;;  %v5604_v50 = vpop.eup %4169  ;;  %v6091_v62 = vld [vmem:[#allocation69_spill] sm:$0xff]  ;;  %4189 = vpow2.f32 %v2205_v56  ;;  %v2241_v63 = vmul.f32 1.442695, %v2027_v37  ;;  %v2011_v36 = vmul.f32 %v5372_v8, %v6080_v41  ;;  %v6093_v20 = vld [vmem:[#allocation70_spill] sm:$0xff]  ;;  %v6095_v56 = vld [vmem:[#allocation72_spill] sm:$0xff] }
 0x39c   : > { %3586 = vmatprep.subr.bf16.mxu0 %v6087_v54  ;;  %3618 = vmatprep.subr.bf16.mxu1 %v3617_v29  ;;  %v3623_v39 = vpack.c.bf16 %v6091_v62, %v6090_v11  ;;  %v5610_v21 = vpop.eup %4171  ;;  %v6092_v29 = vpack.c.bf16 %v5193_v60, %v6077_v9  ;;  %v3593_v16 = vpack.c.bf16 %v6094_v49, %v6093_v20  ;;  %4191 = vpow2.f32 %v2207_v44  ;;  %v6096_v37 = vld [vmem:[#allocation73_spill] sm:$0xff]  ;;  %v6097_v44 = vld [vmem:[#allocation74_spill] sm:$0xff]  ;;  %v6100_v49 = vld [vmem:[#allocation76_spill] sm:$0xff] }
 0x39d   : > { %v2243_v54 = vmul.f32 1.442695, %v2028_v55  ;;  %v2012_v43 = vmul.f32 %v5372_v8, %v6084_v30  ;;  %v5619_v32 = vpop.eup %4173  ;;  %v3625_v11 = vpack.c.bf16 %v6096_v37, %v6095_v56  ;;  %4193 = vpow2.f32 %v2269_v48  ;;  %v6098_v55 = vld [vmem:[#allocation75_spill] sm:$0xff] }
 0x39e   : > { %3588 = vmatpush3.bf16.msra.mxu0 %v6092_v29  ;;  %v2305_v62 = vmul.f32 1.442695, %v2059_v1  ;;  %v2043_v60 = vmul.f32 %v5436_v18, %v6080_v41  ;;  %v5625_v9 = vpop.eup %4175  ;;  %v3595_v29 = vpack.c.bf16 %v6098_v55, %v6097_v44  ;;  %4195 = vpow2.f32 %v2271_v23  ;;  %v6101_v56 = vld [vmem:[#allocation7_spill] sm:$0xff]  ;;  %v6103_v44 = vld [vmem:[#allocation78_spill] sm:$0xff] }
 0x39f   : > { %3620 = vmatpush3.bf16.msra.mxu1 %v3619_v0  ;;  %3590 = vmatprep.subr.bf16.mxu0 %v3589_v47  ;;  %v2307_v20 = vmul.f32 1.442695, %v2060_v22  ;;  %v2044_v0 = vmul.f32 %v5436_v18, %v6084_v30  ;;  %v5631_v47 = vpop.eup %4177  ;;  %v3627_v48 = vpack.c.bf16 %v5285_v10, %v6100_v49  ;;  %4197 = vpow2.f32 %v2241_v63  ;;  %v6104_v55 = vld [vmem:[#allocation10_spill] sm:$0xff] }
 0x3a0   : > { %3622 = vmatprep.subr.bf16.mxu1 %v3621_v7  ;;  %6099 = vst [vmem:[#allocation25_spill] sm:$0xff] %v5631_v47  ;;  %v2209_v1 = vmul.f32 1.442695, %v2011_v36  ;;  %v2029_v41 = vmul.f32 %v5335_v35, %v6101_v56  ;;  %v5637_v37 = vpop.eup %4179  ;;  %v6102_v7 = vld [vmem:[#allocation77_spill] sm:$0xff]  ;;  %4199 = vpow2.f32 %v2243_v54  ;;  %v2211_v22 = vmul.f32 1.442695, %v2012_v43 }
 0x3a1   : > { %v3597_v23 = vpack.c.bf16 %v6103_v44, %v6102_v7  ;;  %v2030_v30 = vmul.f32 %v5335_v35, %v6104_v55  ;;  %v5643_v47 = vpop.eup %4181  ;;  %4201 = vpow2.f32 %v2305_v62  ;;  %v2273_v10 = vmul.f32 1.442695, %v2043_v60  ;;  %v6107_v54 = vld [vmem:[#allocation79_spill] sm:$0xff]  ;;  %v6108_v43 = vld [vmem:[#allocation80_spill] sm:$0xff]  ;;  %v6109_v7 = vld [vmem:[#allocation81_spill] sm:$0xff] }
 0x3a2   : > { %3592 = vmatpush3.bf16.msra.mxu0 %v3591_v51  ;;  %6105 = vst [vmem:[#allocation26_spill] sm:$0xff] %v5643_v47  ;;  %v2061_v63 = vmul.f32 %v5398_v12, %v6101_v56  ;;  %v2062_v51 = vmul.f32 %v5398_v12, %v6104_v55  ;;  %v5649_v36 = vpop.eup %4183  ;;  %v3629_v49 = vpack.c.bf16 %v6108_v43, %v6107_v54  ;;  %4203 = vpow2.f32 %v2307_v20 }
 0x3a3   : > { %3624 = vmatpush3.bf16.msra.mxu1 %v3623_v39  ;;  %3594 = vmatprep.subr.bf16.mxu0 %v3593_v16  ;;  %6106 = vst [vmem:[#allocation27_spill] sm:$0xff] %v5649_v36  ;;  %v3599_v44 = vpack.c.bf16 %v5321_v28, %v6109_v7  ;;  %v2275_v39 = vmul.f32 1.442695, %v2044_v0  ;;  %v5655_v16 = vpop.eup %4185  ;;  %v3631_v62 = vpack.c.bf16 %v5333_v24, %v5327_v17  ;;  %4205 = vpow2.f32 %v2209_v1 }
 0x3a4   : > { %3626 = vmatprep.subr.bf16.mxu1 %v3625_v11  ;;  %v2245_v60 = vmul.f32 1.442695, %v2029_v41  ;;  %v2013_v47 = vmul.f32 %v5372_v8, %v6101_v56  ;;  %v5661_v36 = vpop.eup %4187  ;;  %v3601_v11 = vpack.c.bf16 %v5355_v42, %v5346_v15  ;;  %4207 = vpow2.f32 %v2211_v22 }
 0x3a5   : > { %v2247_v28 = vmul.f32 1.442695, %v2030_v30  ;;  %v2014_v20 = vmul.f32 %v5372_v8, %v6104_v55  ;;  %v5667_v0 = vpop.eup %4189  ;;  %4209 = vpow2.f32 %v2273_v10  ;;  %v2309_v17 = vmul.f32 1.442695, %v2061_v63  ;;  %v6111_v30 = vld [vmem:[#allocation12_spill] sm:$0xff] }
 0x3a6   : > { %3596 = vmatpush3.bf16.msra.mxu0 %v3595_v29  ;;  %v2311_v24 = vmul.f32 1.442695, %v2062_v51  ;;  %v2045_v1 = vmul.f32 %v5436_v18, %v6101_v56  ;;  %v5671_v41 = vpop.eup %4191  ;;  %v3633_v15 = vpack.c.bf16 %v5370_v33, %v5364_v57  ;;  %4211 = vpow2.f32 %v2275_v39  ;;  %v6110_v29 = vld [vmem:[#allocation9_spill] sm:$0xff] }
 0x3a7   : > { %3628 = vmatpush3.bf16.msra.mxu1 %v3627_v48  ;;  %3598 = vmatprep.subr.bf16.mxu0 %v3597_v23  ;;  %v2046_v42 = vmul.f32 %v5436_v18, %v6104_v55  ;;  %v2031_v48 = vmul.f32 %v5335_v35, %v6110_v29  ;;  %v5679_v23 = vpop.eup %4193  ;;  %v3603_v22 = vpack.c.bf16 %v5396_v13, %v5384_v45  ;;  %4213 = vpow2.f32 %v2245_v60 }
 0x3a8   : > { %3630 = vmatprep.subr.bf16.mxu1 %v3629_v49  ;;  %v2213_v56 = vmul.f32 1.442695, %v2013_v47  ;;  %v2032_v10 = vmul.f32 %v5335_v35, %v6111_v30  ;;  %v5685_v63 = vpop.eup %4195  ;;  %4215 = vpow2.f32 %v2247_v28  ;;  %v2215_v57 = vmul.f32 1.442695, %v2014_v20 }
 0x3a9   : > { %v2063_v33 = vmul.f32 %v5398_v12, %v6110_v29  ;;  %v2064_v55 = vmul.f32 %v5398_v12, %v6111_v30  ;;  %v5691_v51 = vpop.eup %4197  ;;  %4217 = vpow2.f32 %v2309_v17  ;;  %v2277_v45 = vmul.f32 1.442695, %v2045_v1 }
 0x3aa   : > { %3600 = vmatpush3.bf16.msra.mxu0 %v3599_v44  ;;  %v2015_v13 = vmul.f32 %v5372_v8, %v6110_v29  ;;  %v2016_v47 = vmul.f32 %v5372_v8, %v6111_v30  ;;  %v5697_v54 = vpop.eup %4199  ;;  %v3635_v43 = vpack.c.bf16 %v5410_v3, %v5404_v4  ;;  %4219 = vpow2.f32 %v2311_v24 }
 0x3ab   : > { %3632 = vmatpush3.bf16.msra.mxu1 %v3631_v62  ;;  %3602 = vmatprep.subr.bf16.mxu0 %v3601_v11  ;;  %v2279_v49 = vmul.f32 1.442695, %v2046_v42  ;;  %v2249_v7 = vmul.f32 1.442695, %v2031_v48  ;;  %v5701_v44 = vpop.eup %4201  ;;  %v3605_v39 = vpack.c.bf16 %v5434_v26, %v5422_v14  ;;  %4221 = vpow2.f32 %v2213_v56  ;;  %v6114_v48 = vld [vmem:[#allocation16_spill] sm:$0xff]  ;;  %v6115_v56 = vld [vmem:[#allocation17_spill] sm:$0xff] }
 0x3ac   : > { %3634 = vmatprep.subr.bf16.mxu1 %v3633_v15  ;;  %v2251_v62 = vmul.f32 1.442695, %v2032_v10  ;;  %v2047_v60 = vmul.f32 %v5436_v18, %v6110_v29  ;;  %v5707_v11 = vpop.eup %4203  ;;  %v3637_v28 = vpack.c.bf16 %v5448_v31, %v5442_v52  ;;  %4223 = vpow2.f32 %v2215_v57  ;;  %v6112_v31 = vld [vmem:[#allocation11_spill] sm:$0xff]  ;;  %v6113_v15 = vld [vmem:[#allocation14_spill] sm:$0xff] }
 0x3ad   : > { %v2313_v4 = vmul.f32 1.442695, %v2063_v33  ;;  %v2315_v3 = vmul.f32 1.442695, %v2064_v55  ;;  %v5711_v20 = vpop.eup %4205  ;;  %4225 = vpow2.f32 %v2277_v45  ;;  %v2217_v14 = vmul.f32 1.442695, %v2015_v13 }
 0x3ae   : > { %3604 = vmatpush3.bf16.msra.mxu0 %v3603_v22  ;;  %v2219_v26 = vmul.f32 1.442695, %v2016_v47  ;;  %v2048_v17 = vmul.f32 %v5436_v18, %v6111_v30  ;;  %v5715_v24 = vpop.eup %4207  ;;  %v3607_v1 = vpack.c.bf16 %v5463_v6, %v5457_v34  ;;  %4227 = vpow2.f32 %v2279_v49  ;;  %v6116_v34 = vld [vmem:[#allocation18_spill] sm:$0xff]  ;;  %v6117_v6 = vld [vmem:[#allocation19_spill] sm:$0xff]  ;;  %v6118_v49 = vld [vmem:[#allocation20_spill] sm:$0xff] }
 0x3af   : > { %3636 = vmatpush3.bf16.msra.mxu1 %v3635_v43  ;;  %3606 = vmatprep.subr.bf16.mxu0 %v3605_v39  ;;  %v2033_v52 = vmul.f32 %v5335_v35, %v6112_v31  ;;  %v2034_v42 = vmul.f32 %v5335_v35, %v6113_v15  ;;  %v5723_v29 = vpop.eup %4209  ;;  %v3639_v22 = vpack.c.bf16 %v6114_v48, %v5469_v5  ;;  %4229 = vpow2.f32 %v2249_v7  ;;  %v6119_v7 = vld [vmem:[#allocation21_spill] sm:$0xff]  ;;  %v6122_v48 = vld [vmem:[#allocation24_spill] sm:$0xff] }
 0x3b0   : > { %3638 = vmatprep.subr.bf16.mxu1 %v3637_v28  ;;  %v3609_v30 = vpack.c.bf16 %v5490_v40, %v6115_v56  ;;  %v2281_v10 = vmul.f32 1.442695, %v2047_v60  ;;  %v5729_v57 = vpop.eup %4211  ;;  %v3641_v33 = vpack.c.bf16 %v6117_v6, %v6116_v34  ;;  %4231 = vpow2.f32 %v2251_v62 }
 0x3b1   : > { %v2065_v55 = vmul.f32 %v5398_v12, %v6112_v31  ;;  %v2066_v45 = vmul.f32 %v5398_v12, %v6113_v15  ;;  %v5737_v13 = vpop.eup %4213  ;;  %4233 = vpow2.f32 %v2313_v4  ;;  %v2283_v5 = vmul.f32 1.442695, %v2048_v17  ;;  %v6121_v4 = vld [vmem:[#allocation23_spill] sm:$0xff] }
 0x3b2   : > { %3608 = vmatpush3.bf16.msra.mxu0 %v3607_v1  ;;  %v2017_v40 = vmul.f32 %v5372_v8, %v6112_v31  ;;  %v2018_v47 = vmul.f32 %v5372_v8, %v6113_v15  ;;  %v5743_v43 = vpop.eup %4215  ;;  %v3611_v39 = vpack.c.bf16 %v6119_v7, %v6118_v49  ;;  %4235 = vpow2.f32 %v2315_v3  ;;  %v6120_v1 = vld [vmem:[#allocation22_spill] sm:$0xff] }
 0x3b3   : > { %3640 = vmatpush3.bf16.msra.mxu1 %v3639_v22  ;;  %3610 = vmatprep.subr.bf16.mxu0 %v3609_v30  ;;  %v2253_v62 = vmul.f32 1.442695, %v2033_v52  ;;  %v2255_v60 = vmul.f32 1.442695, %v2034_v42  ;;  %v5747_v28 = vpop.eup %4217  ;;  %v3643_v17 = vpack.c.bf16 %v6121_v4, %v6120_v1  ;;  %v3645_v22 = vpack.c.bf16 %v5541_v53, %v6122_v48  ;;  %v6127_v1 = vld [vmem:[#allocation27_spill] sm:$0xff] }
 0x3b4   : > { %3642 = vmatprep.subr.bf16.mxu1 %v3641_v33  ;;  %4237 = vpow2.f32 %v2217_v14  ;;  %v2049_v56 = vmul.f32 %v5436_v18, %v6112_v31  ;;  %v5755_v30 = vpop.eup %4219  ;;  %v3677_v3 = vpack.c.bf16 %v5554_v27, %v5548_v25  ;;  %v2317_v52 = vmul.f32 1.442695, %v2065_v55  ;;  %v6123_v27 = vld [vmem:[#allocation13_spill] sm:$0xff] }
 0x3b5   : > { %4239 = vpow2.f32 %v2219_v26  ;;  %v2319_v42 = vmul.f32 1.442695, %v2066_v45  ;;  %v5759_v34 = vpop.eup %4221  ;;  %v2221_v6 = vmul.f32 1.442695, %v2017_v40  ;;  %v2223_v53 = vmul.f32 1.442695, %v2018_v47 }
 0x3b6   : > { %3612 = vmatpush3.bf16.msra.mxu0 %v3611_v39  ;;  %4241 = vpow2.f32 %v2281_v10  ;;  %v2050_v14 = vmul.f32 %v5436_v18, %v6113_v15  ;;  %v5763_v31 = vpop.eup %4223  ;;  %v1385_v33 = vrot.slane %v5544_v19, 2  ;;  %v3647_v25 = vpack.c.bf16 %v5567_v59, %v5561_v46 }
 0x3b7   : > { %3644 = vmatpush3.bf16.msra.mxu1 %v3643_v17  ;;  %3646 = vmatprep.subr.bf16.mxu0 %v3645_v22  ;;  %4243 = vpow2.f32 %v2283_v5  ;;  %v2035_v26 = vmul.f32 %v5335_v35, %v6123_v27  ;;  %v5770_v55 = vpop.eup %4225  ;;  %v1391_v10 = vrot.slane %v5544_v19, 5  ;;  %v3679_v15 = vpack.c.bf16 %v5577_v61, %v5572_v38  ;;  %v6124_v5 = vld [vmem:[#allocation15_spill] sm:$0xff] }
 0x3b8   : > { %3678 = vmatprep.subr.bf16.mxu1 %v3677_v3  ;;  %4245 = vpow2.f32 %v2253_v62  ;;  %v2285_v45 = vmul.f32 1.442695, %v2049_v56  ;;  %v5776_v40 = vpop.eup %4227  ;;  %v1395_v46 = vrot.slane %v5544_v19, 7  ;;  %v3649_v59 = vpack.c.bf16 %v5595_v58, %v5586_v2 }
 0x3b9   : > { %2674 = vmatmul.mubr.f32.vlgmr.msra.gmra.mrb[10].mxu0 %v5544_v19  ;;  %4247 = vpow2.f32 %v2255_v60  ;;  %v2036_v47 = vmul.f32 %v5335_v35, %v6124_v5  ;;  %v5783_v49 = vpop.eup %4229  ;;  %v3681_v38 = vpack.c.bf16 %v5610_v21, %v5604_v50  ;;  %v2287_v61 = vmul.f32 1.442695, %v2050_v14  ;;  %v6125_v50 = vld [vmem:[#allocation25_spill] sm:$0xff]  ;;  %v6126_v60 = vld [vmem:[#allocation26_spill] sm:$0xff] }
 0x3ba   : > { %2744 = vmatmul.mubr.f32.vlgmr.msra.gmra.mrb[6].mxu1 %v1385_v33  ;;  %3648 = vmatpush3.bf16.msra.mxu0 %v3647_v25  ;;  %4249 = vpow2.f32 %v2317_v52  ;;  %v2067_v7 = vmul.f32 %v5398_v12, %v6123_v27  ;;  %v5789_v39 = vpop.eup %4231  ;;  %v3651_v2 = vpack.c.bf16 %v5625_v9, %v5619_v32  ;;  %v2257_v35 = vmul.f32 1.442695, %v2035_v26 }
 0x3bb   : > { %2813 = vmatprep.mubr.f32.mxu0 %v1391_v10  ;;  %3680 = vmatpush3.bf16.msra.mxu1 %v3679_v15  ;;  %4251 = vpow2.f32 %v2319_v42  ;;  %v2068_v58 = vmul.f32 %v5398_v12, %v6124_v5  ;;  %v5795_v62 = vpop.eup %4233  ;;  %v3683_v21 = vpack.c.bf16 %v5637_v37, %v6125_v50  ;;  %v3653_v4 = vpack.c.bf16 %v6127_v1, %v6126_v60 }
 0x3bc   : > { %2883 = vmatprep.mubr.f32.mxu1 %v1395_v46  ;;  %3650 = vmatprep.subr.bf16.mxu0 %v3649_v59  ;;  %4253 = vpow2.f32 %v2221_v6  ;;  %v2019_v17 = vmul.f32 %v5372_v8, %v6123_v27  ;;  %v5803_v48 = vpop.eup %4235  ;;  %v3685_v32 = vpack.c.bf16 %v5661_v36, %v5655_v16  ;;  %v2259_v12 = vmul.f32 1.442695, %v2036_v47 }
 0x3bd   : > { %3682 = vmatprep.subr.bf16.mxu1 %v3681_v38  ;;  %4255 = vpow2.f32 %v2223_v53  ;;  %v2020_v9 = vmul.f32 %v5372_v8, %v6124_v5  ;;  %v2321_v37 = vmul.f32 1.442695, %v2067_v7  ;;  %v2051_v56 = vmul.f32 %v5436_v18, %v6123_v27 }
 0x3be   : > { %3652 = vmatpush3.bf16.msra.mxu0 %v3651_v2  ;;  %v5809_v22 = vpop.eup %4237  ;;  %4257 = vpow2.f32 %v2285_v45  ;;  %v3655_v52 = vpack.c.bf16 %v5671_v41, %v5667_v0  ;;  %v2323_v36 = vmul.f32 1.442695, %v2068_v58  ;;  %v2052_v16 = vmul.f32 %v5436_v18, %v6124_v5 }
 0x3bf   : > { %3684 = vmatpush3.bf16.msra.mxu1 %v3683_v21  ;;  %3654 = vmatprep.subr.bf16.mxu0 %v3653_v4  ;;  %v4240_v3 = vpop.eup %4239  ;;  %4259 = vpow2.f32 %v2287_v61  ;;  %v3687_v42 = vpack.c.bf16 %v5685_v63, %v5679_v23  ;;  %v3657_v6 = vpack.c.bf16 %v5697_v54, %v5691_v51  ;;  %v2225_v53 = vmul.f32 1.442695, %v2019_v17 }
 0x3c0   : > { %3686 = vmatprep.subr.bf16.mxu1 %v3685_v32  ;;  %v4242_v8 = vpop.eup %4241  ;;  %4261 = vpow2.f32 %v2257_v35  ;;  %v3689_v33 = vpack.c.bf16 %v5707_v11, %v5701_v44  ;;  %v2227_v0 = vmul.f32 1.442695, %v2020_v9  ;;  %v2289_v18 = vmul.f32 1.442695, %v2051_v56  ;;  %v2325_v56 = vld [vmem:[%s4504_s30] sm:$0x1] }
 0x3c1   : > { %v4244_v14 = vpop.eup %4243  ;;  %4263 = vpow2.f32 %v2259_v12  ;;  %v3659_v23 = vpack.c.bf16 %v5715_v24, %v5711_v20  ;;  %v2291_v63 = vmul.f32 1.442695, %v2052_v16  ;;  %v3691_v54 = vpack.c.bf16 %v5729_v57, %v5723_v29 }
 0x3c2   : > { %3656 = vmatpush3.bf16.msra.mxu0 %v3655_v52  ;;  %v4246_v41 = vpop.eup %4245  ;;  %4265 = vpow2.f32 %v2321_v37  ;;  %v3661_v44 = vpack.c.bf16 %v5743_v43, %v5737_v13  ;;  %v3693_v27 = vpack.c.bf16 %v5755_v30, %v5747_v28  ;;  %v3663_v24 = vpack.c.bf16 %v5763_v31, %v5759_v34 }
 0x3c3   : > { %3688 = vmatpush3.bf16.msra.mxu1 %v3687_v42  ;;  %3658 = vmatprep.subr.bf16.mxu0 %v3657_v6  ;;  %v4248_v25 = vpop.eup %4247  ;;  %4267 = vpow2.f32 %v2323_v36  ;;  %v3695_v57 = vpack.c.bf16 %v5776_v40, %v5770_v55  ;;  %v3665_v13 = vpack.c.bf16 %v5789_v39, %v5783_v49  ;;  %v3697_v28 = vpack.c.bf16 %v5803_v48, %v5795_v62 }
 0x3c4   : > { %3690 = vmatprep.subr.bf16.mxu1 %v3689_v33  ;;  %v4250_v51 = vpop.eup %4249  ;;  %4269 = vpow2.f32 %v2225_v53  ;;  %v3667_v34 = vpack.c.bf16 %v4240_v3, %v5809_v22  ;;  %v3699_v15 = vpack.c.bf16 %v4244_v14, %v4242_v8  ;;  %v3669_v45 = vpack.c.bf16 %v4248_v25, %v4246_v41 }
 0x3c5   : > { %v4252_v11 = vpop.eup %4251  ;;  %4271 = vpow2.f32 %v2227_v0  ;;  %v1389_v35 = vrot.slane %v5544_v19, 4  ;;  %v1393_v58 = vrot.slane %v5544_v19, 6  ;;  %v2896_v36 = vstv %s2895_s18 }
 0x3c6   : > { %3660 = vmatpush3.bf16.msra.mxu0 %v3659_v23  ;;  %v4254_v26 = vpop.eup %4253  ;;  %4273 = vpow2.f32 %v2289_v18  ;;  %v3701_v55 = vpack.c.bf16 %v4252_v11, %v4250_v51  ;;  %v2608_v11 = vld [vmem:[%s4510_s22] sm:$0x1] }
 0x3c7   : > { %3692 = vmatpush3.bf16.msra.mxu1 %v3691_v54  ;;  %3662 = vmatprep.subr.bf16.mxu0 %v3661_v44  ;;  %v4256_v20 = vpop.eup %4255  ;;  %4275 = vpow2.f32 %v2291_v63 }
 0x3c8   : > { %3694 = vmatprep.subr.bf16.mxu1 %v3693_v27  ;;  %v4258_v29 = vpop.eup %4257  ;;  %v3671_v5 = vpack.c.bf16 %v4256_v20, %v4254_v26  ;;  %v2901_v20 = vstv %s2900_s26 }
 0x3c9   : > { %v4260_v43 = vpop.eup %4259 }
 0x3ca   : > { %3664 = vmatpush3.bf16.msra.mxu0 %v3663_v24  ;;  %v4262_v30 = vpop.eup %4261  ;;  %v3703_v49 = vpack.c.bf16 %v4260_v43, %v4258_v29 }
 0x3cb   : > { %3696 = vmatpush3.bf16.msra.mxu1 %v3695_v57  ;;  %3666 = vmatprep.subr.bf16.mxu0 %v3665_v13  ;;  %v4264_v10 = vpop.eup %4263 }
 0x3cc   : > { %3698 = vmatprep.subr.bf16.mxu1 %v3697_v28  ;;  %v4266_v31 = vpop.eup %4265  ;;  %v3673_v38 = vpack.c.bf16 %v4264_v10, %v4262_v30 }
 0x3cd   : > { %v4268_v46 = vpop.eup %4267 }
 0x3ce   : > { %3668 = vmatpush3.bf16.msra.mxu0 %v3667_v34  ;;  %v4270_v40 = vpop.eup %4269  ;;  %v3705_v7 = vpack.c.bf16 %v4268_v46, %v4266_v31 }
 0x3cf   : > { %3700 = vmatpush3.bf16.msra.mxu1 %v3699_v15  ;;  %3670 = vmatprep.subr.bf16.mxu0 %v3669_v45  ;;  %v4272_v59 = vpop.eup %4271 }
 0x3d0   : > { %3702 = vmatprep.subr.bf16.mxu1 %v3701_v55  ;;  %v4274_v47 = vpop.eup %4273  ;;  %v3675_v39 = vpack.c.bf16 %v4272_v59, %v4270_v40 }
 0x3d1   : > { %v4276_v61 = vpop.eup %4275 }
 0x3d2   : > { %3672 = vmatpush3.bf16.msra.mxu0 %v3671_v5  ;;  %v3707_v2 = vpack.c.bf16 %v4276_v61, %v4274_v47 }
 0x3d3   : > { %3704 = vmatpush3.bf16.msra.mxu1 %v3703_v49  ;;  %3674 = vmatprep.subr.bf16.mxu0 %v3673_v38 }
 0x3d4   : > { %3706 = vmatprep.subr.bf16.mxu1 %v3705_v7 }
 0x3d6   : > { %3676 = vmatpush3.bf16.msra.mxu0 %v3675_v39 }
 0x3d7   : > { %3708 = vmatpush3.bf16.msra.mxu1 %v3707_v2 }
 0x3d9   : > { %2814 = vmatmul.mubr.f32.vlgmr.msra.gmra.mrb[12].mxu0 %v1389_v35 }
 0x3da   : > { %2884 = vmatmul.mubr.f32.vlgmr.msra.gmra.mrb[8].mxu1 %v1393_v58 }
 0x44c   : > { %v3149_v62 = vpop.f32.mrb[6].mxu0  ;;  %v3184_v50 = vpop.f32.mrb[2].mxu1 }
 0x44d   : > { %v3150_v21 = vpop.f32.mrb[7].mxu0  ;;  %v3185_v60 = vpop.f32.mrb[3].mxu1 }
 0x44e   : > { %v3151_v1 = vadd.f32 %v3150_v21, %v3149_v62  ;;  %v3186_v4 = vadd.f32 %v3185_v60, %v3184_v50 }
 0x450   : > { %v2463_v17 = vadd.f32 %v3186_v4, %v3151_v1 }
 0x46c   : > { %v3219_v48 = vpop.f32.mrb[8].mxu0  ;;  %v3254_v32 = vpop.f32.mrb[4].mxu1 }
 0x46d   : > { %v3220_v12 = vpop.f32.mrb[9].mxu0  ;;  %v3255_v9 = vpop.f32.mrb[5].mxu1 }
 0x46e   : > { %v3221_v22 = vadd.f32 %v3220_v12, %v3219_v48  ;;  %v3256_v37 = vadd.f32 %v3255_v9, %v3254_v32 }
 0x470   : > { %v2533_v19 = vadd.f32 %v3221_v22, %v2463_v17 }
 0x472   : > { %v2603_v3 = vadd.f32 %v3256_v37, %v2533_v19 }
 0x474   : > { %v2606_v52 = vadd.f32 %v2603_v3, %v2325_v56 }
 0x476   : > { %2607 = vst [vmem:[%s4504_s30] sm:$0x1] %v2606_v52 }
 0x47d   : > { %v2894_v16 = vld [vmem:[%s4504_s30] sm:$0x1] }
 0x47e   : > { %v2897_v8 = vadd.f32 %v2896_v36, %v2894_v16 }
 0x480   : > { %2898 = vst [vmem:[%s4504_s30] sm:$0x1] %v2897_v8 }
 0x48c   : > { %v3289_v42 = vpop.f32.mrb[10].mxu0 }
 0x48d   : > { %v3324_v6 = vpop.f32.mrb[6].mxu1  ;;  %v3290_v53 = vpop.f32.mrb[11].mxu0 }
 0x48e   : > { %v3291_v14 = vadd.f32 %v3290_v53, %v3289_v42  ;;  %v3325_v33 = vpop.f32.mrb[7].mxu1 }
 0x48f   : > { %v3326_v0 = vadd.f32 %v3325_v33, %v3324_v6 }
 0x491   : > { %v2746_v41 = vadd.f32 %v3326_v0, %v3291_v14 }
 0x4ac   : > { %v3359_v18 = vpop.f32.mrb[12].mxu0 }
 0x4ad   : > { %v3394_v25 = vpop.f32.mrb[8].mxu1  ;;  %v3360_v23 = vpop.f32.mrb[13].mxu0 }
 0x4ae   : > { %v3361_v63 = vadd.f32 %v3360_v23, %v3359_v18  ;;  %v3395_v51 = vpop.f32.mrb[9].mxu1 }
 0x4af   : > { %v3396_v54 = vadd.f32 %v3395_v51, %v3394_v25 }
 0x4b0   : > { %v2816_v44 = vadd.f32 %v3361_v63, %v2746_v41 }
 0x4b2   : > { %v2886_v27 = vadd.f32 %v3396_v54, %v2816_v44 }
 0x4b4   : > { %v2889_v26 = vadd.f32 %v2886_v27, %v2608_v11 }
 0x4b6   : > { %2890 = vst [vmem:[%s4510_s22] sm:$0x1] %v2889_v26 }
 0x4bd   : > { %v2899_v24 = vld [vmem:[%s4510_s22] sm:$0x1] }
 0x4be   : > { %v2902_v29 = vadd.f32 %v2901_v20, %v2899_v24 }
 0x4c0   : > { %v2904_v57 = vand.u32 2147483647, %v2902_v29  ;;  %v2903_v55 = vmax.f32 %v2902_v29, 0.0 }
 0x4c2   : > { %v2905_v13 = vsub.f32 0.0, %v2904_v57 }
 0x4c4   : > { %v2906_v43 = vmul.f32 1.442695, %v2905_v13 }
 0x4c6   : > { %4277 = vpow2.f32 %v2906_v43 }
 0x4d0   : > { %v4278_v28 = vpop.eup %4277 }
 0x4d1   : > { %v2908_v30 = vadd.f32 1.0, %v4278_v28  ;;  %v2911_v10 = vmul.f32 -0.5, %v4278_v28  ;;  %v2914_v31 = vand.u32 2147483647, %v4278_v28 }
 0x4d3   : > { %4279 = vlog2.f32 %v2908_v30  ;;  %v2912_v34 = vadd.f32 1.0, %v2911_v10  ;;  %vm2915_vm4 = vcmp.lt.f32.partialorder %v2914_v31, 0.0004427343 }
 0x4d5   : > { %v2913_v46 = vmul.f32 %v4278_v28, %v2912_v34 }
 0x4dd   : > { %v4280_v15 = vpop.eup %4279 }
 0x4de   : > { %v2910_v45 = vmul.f32 0.6931472, %v4280_v15 }
 0x4e0   : > { %v2916_v40 = vsel %vm2915_vm4, %v2913_v46, %v2910_v45 }
 0x4e1   : > { %v2917_v59 = vadd.f32 %v2916_v40, %v2903_v55 }
 0x4e3   : > { %2918 = vst [vmem:[%s4510_s22] sm:$0x1] %v2917_v59 }
 0x4e4 PF: > { %s33_s3 = sadd.s32 1, %s4303_s3   ;;  %s6128_s2 = smov %s4299_s25 }
 0x4e5   : > { %p30_p5 = scmp.ge.s32.totalorder %s33_s3, 4   ;;  %s6129_s25 = smov %s6131_s17 }
 0x4e7   :  { %32 = sbr.rel (!%p30_p5) target bundleno = 8 (0x8), region = 161 }

</bundles_post_ra>
